<compile_context>
chip_gen: v7x
topology: tpu7x:2x2x1
jax: 0.10.0
libtpu: 0.0.40
codegen_flags: <defaults>
</compile_context>

<pallas_src>
import jax
import jax.numpy as jnp
from jax.experimental import pallas as pl
from jax.experimental.pallas import tpu as pltpu

TRUNK_DIM = 768
ACTION_DIM = 4
HIDDEN_DIMS = [768, 512, 384, 256]
NUM_CRITICS = 2
LN_EPS = 1e-5  # nn.LayerNorm default

# ---- row layout of the packed small-operand slab: (NUM_CRITICS, SLAB_ROWS, 768) f32
ROW_B0, ROW_G0, ROW_BE0, ROW_SC0 = 0, 1, 2, 3        # layer 0: bias, gamma, beta, scale
ROW_B1, ROW_G1, ROW_BE1, ROW_SC1 = 4, 5, 6, 7        # layer 1
ROW_B2, ROW_G2, ROW_BE2, ROW_SC2 = 8, 9, 10, 11      # layer 2
ROW_B3, ROW_G3, ROW_BE3, ROW_SC3 = 12, 13, 14, 15    # layer 3
ROW_W4, ROW_B4 = 16, 17                               # final 256 -> 1 projection
ROW_W0A = 18                                          # rows 18..21: action part of layer 0
SLAB_ROWS = 24                                        # padded to a sublane multiple


def _ln_relu(y, gamma, beta):
    """LayerNorm (f32) + affine + ReLU over the last (lane) axis."""
    mu = jnp.mean(y, axis=-1, keepdims=True)
    var = jnp.mean(jnp.square(y - mu), axis=-1, keepdims=True)
    y = (y - mu) * jax.lax.rsqrt(var + LN_EPS)
    return jnp.maximum(y * gamma + beta, 0.0)


def _multicritic_kernel(s_ref, a_ref, slab_ref, w0_ref, w1_ref, w2_ref, w3_ref, out_ref):
    """One grid step = (one critic, one batch tile). Full MLP in VMEM."""
    s = s_ref[...]          # (TB, 768) bf16 (cast done in the wrapper)
    a = a_ref[...]          # (TB, 4)   f32

    # ---- Layer 0: int8-dequant state GEMM (bf16 MXU, f32 acc) + action rank-1 updates.
    w0 = w0_ref[0].astype(jnp.float32).astype(jnp.bfloat16)      # register-fused dequant
    y = jnp.dot(s, w0, preferred_element_type=jnp.float32)
    y = y * slab_ref[0, ROW_SC0, :]                               # per-out-channel scale
    for k in range(ACTION_DIM):                                   # K=4 -> 4 VPU rank-1 updates
        y = y + a[:, k:k + 1] * slab_ref[0, ROW_W0A + k, :]
    y = y + slab_ref[0, ROW_B0, :]
    h = _ln_relu(y, slab_ref[0, ROW_G0, :], slab_ref[0, ROW_BE0, :])

    # ---- Layers 1..3: Linear (int8 dequant -> bf16 MXU) + LN + ReLU.
    def qlayer(h, w_ref, dout, r0):
        w = w_ref[0].astype(jnp.float32).astype(jnp.bfloat16)
        y = jnp.dot(h.astype(jnp.bfloat16), w, preferred_element_type=jnp.float32)
        y = y * slab_ref[0, r0 + 3, :dout] + slab_ref[0, r0 + 0, :dout]
        return _ln_relu(y, slab_ref[0, r0 + 1, :dout], slab_ref[0, r0 + 2, :dout])

    h = qlayer(h, w1_ref, HIDDEN_DIMS[1], ROW_B1)
    h = qlayer(h, w2_ref, HIDDEN_DIMS[2], ROW_B2)
    h = qlayer(h, w3_ref, HIDDEN_DIMS[3], ROW_B3)

    # ---- Final 256 -> 1 projection on VPU/XLU (mul + lane reduce); no N=1 MXU matmul.
    w4 = slab_ref[0, ROW_W4, :HIDDEN_DIMS[3]]
    q = jnp.sum(h * w4, axis=-1, keepdims=True) + slab_ref[0, ROW_B4, :1]
    out_ref[0] = q.astype(out_ref.dtype)


# ----------------------------------------------------------------------------- params
def _quantize_cols(w):
    """Symmetric int8 quantization with per-output-column f32 scales.
    w: (C, din, dout) f32 -> (int8 (C, din, dout), scale (C, dout) f32)."""
    amax = jnp.max(jnp.abs(w), axis=1)                     # (C, dout)
    scale = jnp.maximum(amax, 1e-12) / 127.0
    w_i8 = jnp.clip(jnp.round(w / scale[:, None, :]), -127, 127).astype(jnp.int8)
    return w_i8, scale


def init_params(key):
    """PyTorch-Linear-style uniform init, then int8 per-channel weight quantization."""
    dims = [TRUNK_DIM + ACTION_DIM] + HIDDEN_DIMS
    n_lin = len(HIDDEN_DIMS) + 1
    keys = jax.random.split(key, 2 * n_lin)
    ki = 0

    params = {}
    slab = jnp.zeros((NUM_CRITICS, SLAB_ROWS, TRUNK_DIM), jnp.float32)

    # Layer 0: split into quantized state slab (MXU) and f32 action rows (VPU, in slab).
    din, dout = dims[0], dims[1]
    lim = 1.0 / float(din) ** 0.5
    w0 = jax.random.uniform(keys[ki], (NUM_CRITICS, din, dout), jnp.float32, -lim, lim); ki += 1
    b0 = jax.random.uniform(keys[ki], (NUM_CRITICS, dout), jnp.float32, -lim, lim); ki += 1
    w0s_i8, sc0 = _quantize_cols(w0[:, :TRUNK_DIM, :])
    params["w0_i8"] = w0s_i8
    slab = slab.at[:, ROW_B0, :dout].set(b0)
    slab = slab.at[:, ROW_G0, :dout].set(1.0)        # LayerNorm gamma=1, beta=0
    slab = slab.at[:, ROW_SC0, :dout].set(sc0)
    slab = slab.at[:, ROW_W0A:ROW_W0A + ACTION_DIM, :dout].set(w0[:, TRUNK_DIM:, :])

    row0 = [ROW_B1, ROW_B2, ROW_B3]
    for i in range(1, len(HIDDEN_DIMS)):
        din, dout = dims[i], dims[i + 1]
        lim = 1.0 / float(din) ** 0.5
        w = jax.random.uniform(keys[ki], (NUM_CRITICS, din, dout), jnp.float32, -lim, lim); ki += 1
        b = jax.random.uniform(keys[ki], (NUM_CRITICS, dout), jnp.float32, -lim, lim); ki += 1
        w_i8, sc = _quantize_cols(w)
        params[f"w{i}_i8"] = w_i8
        r0 = row0[i - 1]
        slab = slab.at[:, r0 + 0, :dout].set(b)
        slab = slab.at[:, r0 + 1, :dout].set(1.0)
        slab = slab.at[:, r0 + 3, :dout].set(sc)

    # Final 256 -> 1 projection: kept f32 in the slab (lane reduce in the kernel).
    din = dims[-1]
    lim = 1.0 / float(din) ** 0.5
    w4 = jax.random.uniform(keys[ki], (NUM_CRITICS, din), jnp.float32, -lim, lim); ki += 1
    b4 = jax.random.uniform(keys[ki], (NUM_CRITICS, 1), jnp.float32, -lim, lim); ki += 1
    slab = slab.at[:, ROW_W4, :din].set(w4)
    slab = slab.at[:, ROW_B4, :1].set(b4)

    params["slab"] = slab
    return params


# ----------------------------------------------------------------------------- forward
def multicritic_forward_stacked(state, action, params, *, batch_tile=256):
    """Pallas forward -> stacked (NUM_CRITICS, B, 1) Q values."""
    B = state.shape[0]
    TB = min(B, batch_tile)
    num_b = -(-B // TB)
    Bp = num_b * TB
    if Bp != B:
        state = jnp.pad(state, ((0, Bp - B), (0, 0)))
        action = jnp.pad(action, ((0, Bp - B), (0, 0)))

    # Cast activations in the wrapper: halves the state HBM read at training batches.
    state = state.astype(jnp.bfloat16)
    action = action.astype(jnp.float32)

    d0, d1, d2, d3 = HIDDEN_DIMS
    in_specs = [
        pl.BlockSpec((TB, TRUNK_DIM), lambda c, b: (b, 0)),             # state tile
        pl.BlockSpec((TB, ACTION_DIM), lambda c, b: (b, 0)),            # action tile
        pl.BlockSpec((1, SLAB_ROWS, TRUNK_DIM), lambda c, b: (c, 0, 0)),  # packed small operands
        pl.BlockSpec((1, TRUNK_DIM, d0), lambda c, b: (c, 0, 0)),       # int8 weights
        pl.BlockSpec((1, d0, d1), lambda c, b: (c, 0, 0)),
        pl.BlockSpec((1, d1, d2), lambda c, b: (c, 0, 0)),
        pl.BlockSpec((1, d2, d3), lambda c, b: (c, 0, 0)),
    ]
    args = [state, action, params["slab"],
            params["w0_i8"], params["w1_i8"], params["w2_i8"], params["w3_i8"]]

    # Advisory cost hint: memory-bound (stream ~all param bytes once, tiny flops).
    flops = 0
    d_prev = TRUNK_DIM + ACTION_DIM
    for d in HIDDEN_DIMS + [1]:
        flops += 2 * d_prev * d
        d_prev = d
    flops *= Bp * NUM_CRITICS
    bytes_accessed = sum(int(a.size) * a.dtype.itemsize for a in args) + NUM_CRITICS * Bp * 4
    cost = pl.CostEstimate(
        flops=int(flops),
        transcendentals=int(NUM_CRITICS * Bp * len(HIDDEN_DIMS)),  # rsqrt per LN row
        bytes_accessed=int(bytes_accessed),
    )

    out = pl.pallas_call(
        _multicritic_kernel,
        out_shape=jax.ShapeDtypeStruct((NUM_CRITICS, Bp, 1), jnp.float32),
        grid_spec=pltpu.PrefetchScalarGridSpec(
            num_scalar_prefetch=0,
            grid=(NUM_CRITICS, num_b),   # critic outer -> weights DMA'd once per critic
            in_specs=in_specs,
            out_specs=pl.BlockSpec((1, TB, 1), lambda c, b: (c, b, 0)),
        ),
        compiler_params=pltpu.CompilerParams(
            dimension_semantics=("parallel", "arbitrary"),
        ),
        cost_estimate=cost,
    )(*args)
    return out[:, :B, :]


def multicritic_forward(state, action, params):
    """Mirrors MultiCritic.forward: list of (B, 1) Q values (one per critic)."""
    out = multicritic_forward_stacked(state, action, params)
    return [out[c] for c in range(NUM_CRITICS)]


# ----------------------------------------------------------------------------- reference
def _ref_ln_relu(y, g, b):
    mu = y.mean(-1, keepdims=True)
    var = jnp.square(y - mu).mean(-1, keepdims=True)
    y = (y - mu) * jax.lax.rsqrt(var + LN_EPS)
    return jnp.maximum(y * g + b, 0.0)


def ref_forward(state, action, params):
    """Pure-JAX reference using the same int8 weights / bf16 activation semantics."""
    slab = params["slab"]
    s = state.astype(jnp.bfloat16).astype(jnp.float32)
    a = action.astype(jnp.float32)
    outs = []
    for c in range(NUM_CRITICS):
        d0 = HIDDEN_DIMS[0]
        w0s = params["w0_i8"][c].astype(jnp.float32) * slab[c, ROW_SC0, :d0][None, :]
        w0a = slab[c, ROW_W0A:ROW_W0A + ACTION_DIM, :d0]
        y = s @ w0s + a @ w0a + slab[c, ROW_B0, :d0]
        h = _ref_ln_relu(y, slab[c, ROW_G0, :d0], slab[c, ROW_BE0, :d0])
        rows = [ROW_B1, ROW_B2, ROW_B3]
        for i in range(1, len(HIDDEN_DIMS)):
            dout = HIDDEN_DIMS[i]
            r0 = rows[i - 1]
            w = params[f"w{i}_i8"][c].astype(jnp.float32) * slab[c, r0 + 3, :dout][None, :]
            y = h.astype(jnp.bfloat16).astype(jnp.float32) @ w + slab[c, r0, :dout]
            h = _ref_ln_relu(y, slab[c, r0 + 1, :dout], slab[c, r0 + 2, :dout])
        w4 = slab[c, ROW_W4, :HIDDEN_DIMS[-1]]
        outs.append(jnp.sum(h * w4, axis=-1, keepdims=True) + slab[c, ROW_B4, 0])
    return outs


if __name__ == "__main__":
    key = jax.random.PRNGKey(0)
    k_params, k_state, k_action = jax.random.split(key, 3)

    B = 2
    state = jax.random.normal(k_state, (B, TRUNK_DIM), jnp.float32)
    action = jax.random.normal(k_action, (B, ACTION_DIM), jnp.float32)

    params = init_params(k_params)

    q_stack = jax.block_until_ready(multicritic_forward_stacked(state, action, params))
    q_values = [q_stack[c] for c in range(NUM_CRITICS)]

    q_ref = ref_forward(state, action, params)
    for q, r in zip(q_values, q_ref):
        assert q.shape == (B, 1), q.shape
        assert jnp.allclose(q, r, atol=1e-2, rtol=1e-2), (q, r)

    # min_q (SAC target) directly from the stacked output.
    min_q = jnp.min(q_stack, axis=0)
    min_q_ref = jnp.min(jnp.stack(q_ref, axis=0), axis=0)
    assert jnp.allclose(min_q, min_q_ref, atol=1e-2, rtol=1e-2)

    print("KERNEL_OK")
</pallas_src>

<mosaic_0001>
module attributes {stable_mosaic.version = 11 : i64} {
  func.func @_multicritic_kernel(%arg0: i32, %arg1: i32, %arg2: memref<2x768xbf16, #tpu.memory_space<vmem>>, %arg3: memref<2x4xf32, #tpu.memory_space<vmem>>, %arg4: memref<1x24x768xf32, #tpu.memory_space<vmem>>, %arg5: memref<1x768x768xi8, #tpu.memory_space<vmem>>, %arg6: memref<1x768x512xi8, #tpu.memory_space<vmem>>, %arg7: memref<1x512x384xi8, #tpu.memory_space<vmem>>, %arg8: memref<1x384x256xi8, #tpu.memory_space<vmem>>, %arg9: memref<1x2x1xf32, #tpu.memory_space<vmem>>) attributes {dimension_semantics = [#tpu.dimension_semantics<parallel>, #tpu.dimension_semantics<arbitrary>], iteration_bounds = array<i64: 2, 1>, scalar_prefetch = 0 : i64, scratch_operands = 0 : i64, tpu.core_type = #tpu.core_type<tc>, window_params = [{transform_indices = @transform_0, window_bounds = array<i64: 2, 768>}, {transform_indices = @transform_1, window_bounds = array<i64: 2, 4>}, {transform_indices = @transform_2, window_bounds = array<i64: 1, 24, 768>}, {transform_indices = @transform_3, window_bounds = array<i64: 1, 768, 768>}, {transform_indices = @transform_4, window_bounds = array<i64: 1, 768, 512>}, {transform_indices = @transform_5, window_bounds = array<i64: 1, 512, 384>}, {transform_indices = @transform_6, window_bounds = array<i64: 1, 384, 256>}, {transform_indices = @transform_7, window_bounds = array<i64: 1, 2, 1>}]} {
    %c0 = arith.constant 0 : index
    %c0_0 = arith.constant 0 : index
    %0 = vector.load %arg2[%c0, %c0_0] : memref<2x768xbf16, #tpu.memory_space<vmem>>, vector<2x768xbf16>
    %c0_1 = arith.constant 0 : index
    %c0_2 = arith.constant 0 : index
    %1 = vector.load %arg3[%c0_1, %c0_2] : memref<2x4xf32, #tpu.memory_space<vmem>>, vector<2x4xf32>
    %c0_3 = arith.constant 0 : index
    %c0_4 = arith.constant 0 : index
    %c0_5 = arith.constant 0 : index
    %2 = vector.load %arg5[%c0_3, %c0_4, %c0_5] : memref<1x768x768xi8, #tpu.memory_space<vmem>>, vector<1x768x768xi8>
    %3 = vector.shape_cast %2 : vector<1x768x768xi8> to vector<768x768xi8>
    %4 = arith.sitofp %3 : vector<768x768xi8> to vector<768x768xf32>
    %5 = arith.truncf %4 : vector<768x768xf32> to vector<768x768xbf16>
    %cst = arith.constant dense<0.000000e+00> : vector<2x768xf32>
    %6 = tpu.matmul %0, %5, %cst {dimension_numbers = #tpu.dot_dimension_numbers<[1], [0], [0], [1], [0, 0, 1, 1], [], []>} : vector<2x768xbf16>, vector<768x768xbf16>, vector<2x768xf32> -> vector<2x768xf32>
    %c0_6 = arith.constant 0 : index
    %c3 = arith.constant 3 : index
    %c0_7 = arith.constant 0 : index
    %7 = vector.load %arg4[%c0_6, %c3, %c0_7] : memref<1x24x768xf32, #tpu.memory_space<vmem>>, vector<1x1x768xf32>
    %8 = vector.shape_cast %7 : vector<1x1x768xf32> to vector<768xf32>
    %9 = vector.shape_cast %8 : vector<768xf32> to vector<1x768xf32>
    %10 = vector.broadcast %9 : vector<1x768xf32> to vector<2x768xf32>
    %11 = arith.mulf %6, %10 : vector<2x768xf32>
    %12 = vector.extract_strided_slice %1 {offsets = [0, 0], sizes = [2, 1], strides = [1, 1]} : vector<2x4xf32> to vector<2x1xf32>
    %c0_8 = arith.constant 0 : index
    %c18 = arith.constant 18 : index
    %c0_9 = arith.constant 0 : index
    %13 = vector.load %arg4[%c0_8, %c18, %c0_9] : memref<1x24x768xf32, #tpu.memory_space<vmem>>, vector<1x1x768xf32>
    %14 = vector.shape_cast %13 : vector<1x1x768xf32> to vector<768xf32>
    %15 = vector.shape_cast %14 : vector<768xf32> to vector<1x768xf32>
    %16 = vector.broadcast %12 : vector<2x1xf32> to vector<2x768xf32>
    %17 = vector.broadcast %15 : vector<1x768xf32> to vector<2x768xf32>
    %18 = arith.mulf %16, %17 : vector<2x768xf32>
    %19 = arith.addf %11, %18 : vector<2x768xf32>
    %20 = vector.extract_strided_slice %1 {offsets = [0, 1], sizes = [2, 1], strides = [1, 1]} : vector<2x4xf32> to vector<2x1xf32>
    %c0_10 = arith.constant 0 : index
    %c19 = arith.constant 19 : index
    %c0_11 = arith.constant 0 : index
    %21 = vector.load %arg4[%c0_10, %c19, %c0_11] : memref<1x24x768xf32, #tpu.memory_space<vmem>>, vector<1x1x768xf32>
    %22 = vector.shape_cast %21 : vector<1x1x768xf32> to vector<768xf32>
    %23 = vector.shape_cast %22 : vector<768xf32> to vector<1x768xf32>
    %24 = vector.broadcast %20 : vector<2x1xf32> to vector<2x768xf32>
    %25 = vector.broadcast %23 : vector<1x768xf32> to vector<2x768xf32>
    %26 = arith.mulf %24, %25 : vector<2x768xf32>
    %27 = arith.addf %19, %26 : vector<2x768xf32>
    %28 = vector.extract_strided_slice %1 {offsets = [0, 2], sizes = [2, 1], strides = [1, 1]} : vector<2x4xf32> to vector<2x1xf32>
    %c0_12 = arith.constant 0 : index
    %c20 = arith.constant 20 : index
    %c0_13 = arith.constant 0 : index
    %29 = vector.load %arg4[%c0_12, %c20, %c0_13] : memref<1x24x768xf32, #tpu.memory_space<vmem>>, vector<1x1x768xf32>
    %30 = vector.shape_cast %29 : vector<1x1x768xf32> to vector<768xf32>
    %31 = vector.shape_cast %30 : vector<768xf32> to vector<1x768xf32>
    %32 = vector.broadcast %28 : vector<2x1xf32> to vector<2x768xf32>
    %33 = vector.broadcast %31 : vector<1x768xf32> to vector<2x768xf32>
    %34 = arith.mulf %32, %33 : vector<2x768xf32>
    %35 = arith.addf %27, %34 : vector<2x768xf32>
    %36 = vector.extract_strided_slice %1 {offsets = [0, 3], sizes = [2, 1], strides = [1, 1]} : vector<2x4xf32> to vector<2x1xf32>
    %c0_14 = arith.constant 0 : index
    %c21 = arith.constant 21 : index
    %c0_15 = arith.constant 0 : index
    %37 = vector.load %arg4[%c0_14, %c21, %c0_15] : memref<1x24x768xf32, #tpu.memory_space<vmem>>, vector<1x1x768xf32>
    %38 = vector.shape_cast %37 : vector<1x1x768xf32> to vector<768xf32>
    %39 = vector.shape_cast %38 : vector<768xf32> to vector<1x768xf32>
    %40 = vector.broadcast %36 : vector<2x1xf32> to vector<2x768xf32>
    %41 = vector.broadcast %39 : vector<1x768xf32> to vector<2x768xf32>
    %42 = arith.mulf %40, %41 : vector<2x768xf32>
    %43 = arith.addf %35, %42 : vector<2x768xf32>
    %c0_16 = arith.constant 0 : index
    %c0_17 = arith.constant 0 : index
    %c0_18 = arith.constant 0 : index
    %44 = vector.load %arg4[%c0_16, %c0_17, %c0_18] : memref<1x24x768xf32, #tpu.memory_space<vmem>>, vector<1x1x768xf32>
    %45 = vector.shape_cast %44 : vector<1x1x768xf32> to vector<768xf32>
    %46 = vector.shape_cast %45 : vector<768xf32> to vector<1x768xf32>
    %47 = vector.broadcast %46 : vector<1x768xf32> to vector<2x768xf32>
    %48 = arith.addf %43, %47 : vector<2x768xf32>
    %c0_19 = arith.constant 0 : index
    %c1 = arith.constant 1 : index
    %c0_20 = arith.constant 0 : index
    %49 = vector.load %arg4[%c0_19, %c1, %c0_20] : memref<1x24x768xf32, #tpu.memory_space<vmem>>, vector<1x1x768xf32>
    %50 = vector.shape_cast %49 : vector<1x1x768xf32> to vector<768xf32>
    %c0_21 = arith.constant 0 : index
    %c2 = arith.constant 2 : index
    %c0_22 = arith.constant 0 : index
    %51 = vector.load %arg4[%c0_21, %c2, %c0_22] : memref<1x24x768xf32, #tpu.memory_space<vmem>>, vector<1x1x768xf32>
    %52 = vector.shape_cast %51 : vector<1x1x768xf32> to vector<768xf32>
    %cst_23 = arith.constant dense<0.000000e+00> : vector<2xf32>
    %53 = vector.multi_reduction <add>, %48, %cst_23 [1] : vector<2x768xf32> to vector<2xf32>
    %54 = vector.shape_cast %53 : vector<2xf32> to vector<2x1xf32>
    %cst_24 = arith.constant 7.680000e+02 : f32
    %55 = vector.broadcast %cst_24 : f32 to vector<2x1xf32>
    %56 = arith.divf %54, %55 : vector<2x1xf32>
    %57 = vector.broadcast %56 : vector<2x1xf32> to vector<2x768xf32>
    %58 = arith.subf %48, %57 : vector<2x768xf32>
    %59 = arith.mulf %58, %58 : vector<2x768xf32>
    %cst_25 = arith.constant dense<0.000000e+00> : vector<2xf32>
    %60 = vector.multi_reduction <add>, %59, %cst_25 [1] : vector<2x768xf32> to vector<2xf32>
    %61 = vector.shape_cast %60 : vector<2xf32> to vector<2x1xf32>
    %cst_26 = arith.constant 7.680000e+02 : f32
    %62 = vector.broadcast %cst_26 : f32 to vector<2x1xf32>
    %63 = arith.divf %61, %62 : vector<2x1xf32>
    %64 = vector.broadcast %56 : vector<2x1xf32> to vector<2x768xf32>
    %65 = arith.subf %48, %64 : vector<2x768xf32>
    %cst_27 = arith.constant 9.99999974E-6 : f32
    %66 = vector.broadcast %cst_27 : f32 to vector<2x1xf32>
    %67 = arith.addf %63, %66 : vector<2x1xf32>
    %68 = math.rsqrt %67 : vector<2x1xf32>
    %69 = vector.broadcast %68 : vector<2x1xf32> to vector<2x768xf32>
    %70 = arith.mulf %65, %69 : vector<2x768xf32>
    %71 = vector.shape_cast %50 : vector<768xf32> to vector<1x768xf32>
    %72 = vector.broadcast %71 : vector<1x768xf32> to vector<2x768xf32>
    %73 = arith.mulf %70, %72 : vector<2x768xf32>
    %74 = vector.shape_cast %52 : vector<768xf32> to vector<1x768xf32>
    %75 = vector.broadcast %74 : vector<1x768xf32> to vector<2x768xf32>
    %76 = arith.addf %73, %75 : vector<2x768xf32>
    %cst_28 = arith.constant 0.000000e+00 : f32
    %77 = vector.broadcast %cst_28 : f32 to vector<2x768xf32>
    %78 = arith.maximumf %76, %77 : vector<2x768xf32>
    %c0_29 = arith.constant 0 : index
    %c0_30 = arith.constant 0 : index
    %c0_31 = arith.constant 0 : index
    %79 = vector.load %arg6[%c0_29, %c0_30, %c0_31] : memref<1x768x512xi8, #tpu.memory_space<vmem>>, vector<1x768x512xi8>
    %80 = vector.shape_cast %79 : vector<1x768x512xi8> to vector<768x512xi8>
    %81 = arith.sitofp %80 : vector<768x512xi8> to vector<768x512xf32>
    %82 = arith.truncf %81 : vector<768x512xf32> to vector<768x512xbf16>
    %83 = arith.truncf %78 : vector<2x768xf32> to vector<2x768xbf16>
    %cst_32 = arith.constant dense<0.000000e+00> : vector<2x512xf32>
    %84 = tpu.matmul %83, %82, %cst_32 {dimension_numbers = #tpu.dot_dimension_numbers<[1], [0], [0], [1], [0, 0, 1, 1], [], []>} : vector<2x768xbf16>, vector<768x512xbf16>, vector<2x512xf32> -> vector<2x512xf32>
    %c0_33 = arith.constant 0 : index
    %c7 = arith.constant 7 : index
    %c0_34 = arith.constant 0 : index
    %85 = vector.load %arg4[%c0_33, %c7, %c0_34] : memref<1x24x768xf32, #tpu.memory_space<vmem>>, vector<1x1x512xf32>
    %86 = vector.shape_cast %85 : vector<1x1x512xf32> to vector<512xf32>
    %87 = vector.shape_cast %86 : vector<512xf32> to vector<1x512xf32>
    %88 = vector.broadcast %87 : vector<1x512xf32> to vector<2x512xf32>
    %89 = arith.mulf %84, %88 : vector<2x512xf32>
    %c0_35 = arith.constant 0 : index
    %c4 = arith.constant 4 : index
    %c0_36 = arith.constant 0 : index
    %90 = vector.load %arg4[%c0_35, %c4, %c0_36] : memref<1x24x768xf32, #tpu.memory_space<vmem>>, vector<1x1x512xf32>
    %91 = vector.shape_cast %90 : vector<1x1x512xf32> to vector<512xf32>
    %92 = vector.shape_cast %91 : vector<512xf32> to vector<1x512xf32>
    %93 = vector.broadcast %92 : vector<1x512xf32> to vector<2x512xf32>
    %94 = arith.addf %89, %93 : vector<2x512xf32>
    %c0_37 = arith.constant 0 : index
    %c5 = arith.constant 5 : index
    %c0_38 = arith.constant 0 : index
    %95 = vector.load %arg4[%c0_37, %c5, %c0_38] : memref<1x24x768xf32, #tpu.memory_space<vmem>>, vector<1x1x512xf32>
    %96 = vector.shape_cast %95 : vector<1x1x512xf32> to vector<512xf32>
    %c0_39 = arith.constant 0 : index
    %c6 = arith.constant 6 : index
    %c0_40 = arith.constant 0 : index
    %97 = vector.load %arg4[%c0_39, %c6, %c0_40] : memref<1x24x768xf32, #tpu.memory_space<vmem>>, vector<1x1x512xf32>
    %98 = vector.shape_cast %97 : vector<1x1x512xf32> to vector<512xf32>
    %cst_41 = arith.constant dense<0.000000e+00> : vector<2xf32>
    %99 = vector.multi_reduction <add>, %94, %cst_41 [1] : vector<2x512xf32> to vector<2xf32>
    %100 = vector.shape_cast %99 : vector<2xf32> to vector<2x1xf32>
    %cst_42 = arith.constant 5.120000e+02 : f32
    %101 = vector.broadcast %cst_42 : f32 to vector<2x1xf32>
    %102 = arith.divf %100, %101 : vector<2x1xf32>
    %103 = vector.broadcast %102 : vector<2x1xf32> to vector<2x512xf32>
    %104 = arith.subf %94, %103 : vector<2x512xf32>
    %105 = arith.mulf %104, %104 : vector<2x512xf32>
    %cst_43 = arith.constant dense<0.000000e+00> : vector<2xf32>
    %106 = vector.multi_reduction <add>, %105, %cst_43 [1] : vector<2x512xf32> to vector<2xf32>
    %107 = vector.shape_cast %106 : vector<2xf32> to vector<2x1xf32>
    %cst_44 = arith.constant 5.120000e+02 : f32
    %108 = vector.broadcast %cst_44 : f32 to vector<2x1xf32>
    %109 = arith.divf %107, %108 : vector<2x1xf32>
    %110 = vector.broadcast %102 : vector<2x1xf32> to vector<2x512xf32>
    %111 = arith.subf %94, %110 : vector<2x512xf32>
    %cst_45 = arith.constant 9.99999974E-6 : f32
    %112 = vector.broadcast %cst_45 : f32 to vector<2x1xf32>
    %113 = arith.addf %109, %112 : vector<2x1xf32>
    %114 = math.rsqrt %113 : vector<2x1xf32>
    %115 = vector.broadcast %114 : vector<2x1xf32> to vector<2x512xf32>
    %116 = arith.mulf %111, %115 : vector<2x512xf32>
    %117 = vector.shape_cast %96 : vector<512xf32> to vector<1x512xf32>
    %118 = vector.broadcast %117 : vector<1x512xf32> to vector<2x512xf32>
    %119 = arith.mulf %116, %118 : vector<2x512xf32>
    %120 = vector.shape_cast %98 : vector<512xf32> to vector<1x512xf32>
    %121 = vector.broadcast %120 : vector<1x512xf32> to vector<2x512xf32>
    %122 = arith.addf %119, %121 : vector<2x512xf32>
    %cst_46 = arith.constant 0.000000e+00 : f32
    %123 = vector.broadcast %cst_46 : f32 to vector<2x512xf32>
    %124 = arith.maximumf %122, %123 : vector<2x512xf32>
    %c0_47 = arith.constant 0 : index
    %c0_48 = arith.constant 0 : index
    %c0_49 = arith.constant 0 : index
    %125 = vector.load %arg7[%c0_47, %c0_48, %c0_49] : memref<1x512x384xi8, #tpu.memory_space<vmem>>, vector<1x512x384xi8>
    %126 = vector.shape_cast %125 : vector<1x512x384xi8> to vector<512x384xi8>
    %127 = arith.sitofp %126 : vector<512x384xi8> to vector<512x384xf32>
    %128 = arith.truncf %127 : vector<512x384xf32> to vector<512x384xbf16>
    %129 = arith.truncf %124 : vector<2x512xf32> to vector<2x512xbf16>
    %cst_50 = arith.constant dense<0.000000e+00> : vector<2x384xf32>
    %130 = tpu.matmul %129, %128, %cst_50 {dimension_numbers = #tpu.dot_dimension_numbers<[1], [0], [0], [1], [0, 0, 1, 1], [], []>} : vector<2x512xbf16>, vector<512x384xbf16>, vector<2x384xf32> -> vector<2x384xf32>
    %c0_51 = arith.constant 0 : index
    %c11 = arith.constant 11 : index
    %c0_52 = arith.constant 0 : index
    %131 = vector.load %arg4[%c0_51, %c11, %c0_52] : memref<1x24x768xf32, #tpu.memory_space<vmem>>, vector<1x1x384xf32>
    %132 = vector.shape_cast %131 : vector<1x1x384xf32> to vector<384xf32>
    %133 = vector.shape_cast %132 : vector<384xf32> to vector<1x384xf32>
    %134 = vector.broadcast %133 : vector<1x384xf32> to vector<2x384xf32>
    %135 = arith.mulf %130, %134 : vector<2x384xf32>
    %c0_53 = arith.constant 0 : index
    %c8 = arith.constant 8 : index
    %c0_54 = arith.constant 0 : index
    %136 = vector.load %arg4[%c0_53, %c8, %c0_54] : memref<1x24x768xf32, #tpu.memory_space<vmem>>, vector<1x1x384xf32>
    %137 = vector.shape_cast %136 : vector<1x1x384xf32> to vector<384xf32>
    %138 = vector.shape_cast %137 : vector<384xf32> to vector<1x384xf32>
    %139 = vector.broadcast %138 : vector<1x384xf32> to vector<2x384xf32>
    %140 = arith.addf %135, %139 : vector<2x384xf32>
    %c0_55 = arith.constant 0 : index
    %c9 = arith.constant 9 : index
    %c0_56 = arith.constant 0 : index
    %141 = vector.load %arg4[%c0_55, %c9, %c0_56] : memref<1x24x768xf32, #tpu.memory_space<vmem>>, vector<1x1x384xf32>
    %142 = vector.shape_cast %141 : vector<1x1x384xf32> to vector<384xf32>
    %c0_57 = arith.constant 0 : index
    %c10 = arith.constant 10 : index
    %c0_58 = arith.constant 0 : index
    %143 = vector.load %arg4[%c0_57, %c10, %c0_58] : memref<1x24x768xf32, #tpu.memory_space<vmem>>, vector<1x1x384xf32>
    %144 = vector.shape_cast %143 : vector<1x1x384xf32> to vector<384xf32>
    %cst_59 = arith.constant dense<0.000000e+00> : vector<2xf32>
    %145 = vector.multi_reduction <add>, %140, %cst_59 [1] : vector<2x384xf32> to vector<2xf32>
    %146 = vector.shape_cast %145 : vector<2xf32> to vector<2x1xf32>
    %cst_60 = arith.constant 3.840000e+02 : f32
    %147 = vector.broadcast %cst_60 : f32 to vector<2x1xf32>
    %148 = arith.divf %146, %147 : vector<2x1xf32>
    %149 = vector.broadcast %148 : vector<2x1xf32> to vector<2x384xf32>
    %150 = arith.subf %140, %149 : vector<2x384xf32>
    %151 = arith.mulf %150, %150 : vector<2x384xf32>
    %cst_61 = arith.constant dense<0.000000e+00> : vector<2xf32>
    %152 = vector.multi_reduction <add>, %151, %cst_61 [1] : vector<2x384xf32> to vector<2xf32>
    %153 = vector.shape_cast %152 : vector<2xf32> to vector<2x1xf32>
    %cst_62 = arith.constant 3.840000e+02 : f32
    %154 = vector.broadcast %cst_62 : f32 to vector<2x1xf32>
    %155 = arith.divf %153, %154 : vector<2x1xf32>
    %156 = vector.broadcast %148 : vector<2x1xf32> to vector<2x384xf32>
    %157 = arith.subf %140, %156 : vector<2x384xf32>
    %cst_63 = arith.constant 9.99999974E-6 : f32
    %158 = vector.broadcast %cst_63 : f32 to vector<2x1xf32>
    %159 = arith.addf %155, %158 : vector<2x1xf32>
    %160 = math.rsqrt %159 : vector<2x1xf32>
    %161 = vector.broadcast %160 : vector<2x1xf32> to vector<2x384xf32>
    %162 = arith.mulf %157, %161 : vector<2x384xf32>
    %163 = vector.shape_cast %142 : vector<384xf32> to vector<1x384xf32>
    %164 = vector.broadcast %163 : vector<1x384xf32> to vector<2x384xf32>
    %165 = arith.mulf %162, %164 : vector<2x384xf32>
    %166 = vector.shape_cast %144 : vector<384xf32> to vector<1x384xf32>
    %167 = vector.broadcast %166 : vector<1x384xf32> to vector<2x384xf32>
    %168 = arith.addf %165, %167 : vector<2x384xf32>
    %cst_64 = arith.constant 0.000000e+00 : f32
    %169 = vector.broadcast %cst_64 : f32 to vector<2x384xf32>
    %170 = arith.maximumf %168, %169 : vector<2x384xf32>
    %c0_65 = arith.constant 0 : index
    %c0_66 = arith.constant 0 : index
    %c0_67 = arith.constant 0 : index
    %171 = vector.load %arg8[%c0_65, %c0_66, %c0_67] : memref<1x384x256xi8, #tpu.memory_space<vmem>>, vector<1x384x256xi8>
    %172 = vector.shape_cast %171 : vector<1x384x256xi8> to vector<384x256xi8>
    %173 = arith.sitofp %172 : vector<384x256xi8> to vector<384x256xf32>
    %174 = arith.truncf %173 : vector<384x256xf32> to vector<384x256xbf16>
    %175 = arith.truncf %170 : vector<2x384xf32> to vector<2x384xbf16>
    %cst_68 = arith.constant dense<0.000000e+00> : vector<2x256xf32>
    %176 = tpu.matmul %175, %174, %cst_68 {dimension_numbers = #tpu.dot_dimension_numbers<[1], [0], [0], [1], [0, 0, 1, 1], [], []>} : vector<2x384xbf16>, vector<384x256xbf16>, vector<2x256xf32> -> vector<2x256xf32>
    %c0_69 = arith.constant 0 : index
    %c15 = arith.constant 15 : index
    %c0_70 = arith.constant 0 : index
    %177 = vector.load %arg4[%c0_69, %c15, %c0_70] : memref<1x24x768xf32, #tpu.memory_space<vmem>>, vector<1x1x256xf32>
    %178 = vector.shape_cast %177 : vector<1x1x256xf32> to vector<256xf32>
    %179 = vector.shape_cast %178 : vector<256xf32> to vector<1x256xf32>
    %180 = vector.broadcast %179 : vector<1x256xf32> to vector<2x256xf32>
    %181 = arith.mulf %176, %180 : vector<2x256xf32>
    %c0_71 = arith.constant 0 : index
    %c12 = arith.constant 12 : index
    %c0_72 = arith.constant 0 : index
    %182 = vector.load %arg4[%c0_71, %c12, %c0_72] : memref<1x24x768xf32, #tpu.memory_space<vmem>>, vector<1x1x256xf32>
    %183 = vector.shape_cast %182 : vector<1x1x256xf32> to vector<256xf32>
    %184 = vector.shape_cast %183 : vector<256xf32> to vector<1x256xf32>
    %185 = vector.broadcast %184 : vector<1x256xf32> to vector<2x256xf32>
    %186 = arith.addf %181, %185 : vector<2x256xf32>
    %c0_73 = arith.constant 0 : index
    %c13 = arith.constant 13 : index
    %c0_74 = arith.constant 0 : index
    %187 = vector.load %arg4[%c0_73, %c13, %c0_74] : memref<1x24x768xf32, #tpu.memory_space<vmem>>, vector<1x1x256xf32>
    %188 = vector.shape_cast %187 : vector<1x1x256xf32> to vector<256xf32>
    %c0_75 = arith.constant 0 : index
    %c14 = arith.constant 14 : index
    %c0_76 = arith.constant 0 : index
    %189 = vector.load %arg4[%c0_75, %c14, %c0_76] : memref<1x24x768xf32, #tpu.memory_space<vmem>>, vector<1x1x256xf32>
    %190 = vector.shape_cast %189 : vector<1x1x256xf32> to vector<256xf32>
    %cst_77 = arith.constant dense<0.000000e+00> : vector<2xf32>
    %191 = vector.multi_reduction <add>, %186, %cst_77 [1] : vector<2x256xf32> to vector<2xf32>
    %192 = vector.shape_cast %191 : vector<2xf32> to vector<2x1xf32>
    %cst_78 = arith.constant 2.560000e+02 : f32
    %193 = vector.broadcast %cst_78 : f32 to vector<2x1xf32>
    %194 = arith.divf %192, %193 : vector<2x1xf32>
    %195 = vector.broadcast %194 : vector<2x1xf32> to vector<2x256xf32>
    %196 = arith.subf %186, %195 : vector<2x256xf32>
    %197 = arith.mulf %196, %196 : vector<2x256xf32>
    %cst_79 = arith.constant dense<0.000000e+00> : vector<2xf32>
    %198 = vector.multi_reduction <add>, %197, %cst_79 [1] : vector<2x256xf32> to vector<2xf32>
    %199 = vector.shape_cast %198 : vector<2xf32> to vector<2x1xf32>
    %cst_80 = arith.constant 2.560000e+02 : f32
    %200 = vector.broadcast %cst_80 : f32 to vector<2x1xf32>
    %201 = arith.divf %199, %200 : vector<2x1xf32>
    %202 = vector.broadcast %194 : vector<2x1xf32> to vector<2x256xf32>
    %203 = arith.subf %186, %202 : vector<2x256xf32>
    %cst_81 = arith.constant 9.99999974E-6 : f32
    %204 = vector.broadcast %cst_81 : f32 to vector<2x1xf32>
    %205 = arith.addf %201, %204 : vector<2x1xf32>
    %206 = math.rsqrt %205 : vector<2x1xf32>
    %207 = vector.broadcast %206 : vector<2x1xf32> to vector<2x256xf32>
    %208 = arith.mulf %203, %207 : vector<2x256xf32>
    %209 = vector.shape_cast %188 : vector<256xf32> to vector<1x256xf32>
    %210 = vector.broadcast %209 : vector<1x256xf32> to vector<2x256xf32>
    %211 = arith.mulf %208, %210 : vector<2x256xf32>
    %212 = vector.shape_cast %190 : vector<256xf32> to vector<1x256xf32>
    %213 = vector.broadcast %212 : vector<1x256xf32> to vector<2x256xf32>
    %214 = arith.addf %211, %213 : vector<2x256xf32>
    %cst_82 = arith.constant 0.000000e+00 : f32
    %215 = vector.broadcast %cst_82 : f32 to vector<2x256xf32>
    %216 = arith.maximumf %214, %215 : vector<2x256xf32>
    %c0_83 = arith.constant 0 : index
    %c16 = arith.constant 16 : index
    %c0_84 = arith.constant 0 : index
    %217 = vector.load %arg4[%c0_83, %c16, %c0_84] : memref<1x24x768xf32, #tpu.memory_space<vmem>>, vector<1x1x256xf32>
    %218 = vector.shape_cast %217 : vector<1x1x256xf32> to vector<256xf32>
    %219 = vector.shape_cast %218 : vector<256xf32> to vector<1x256xf32>
    %220 = vector.broadcast %219 : vector<1x256xf32> to vector<2x256xf32>
    %221 = arith.mulf %216, %220 : vector<2x256xf32>
    %cst_85 = arith.constant dense<0.000000e+00> : vector<2xf32>
    %222 = vector.multi_reduction <add>, %221, %cst_85 [1] : vector<2x256xf32> to vector<2xf32>
    %223 = vector.shape_cast %222 : vector<2xf32> to vector<2x1xf32>
    %c0_86 = arith.constant 0 : index
    %c17 = arith.constant 17 : index
    %c0_87 = arith.constant 0 : index
    %224 = vector.load %arg4[%c0_86, %c17, %c0_87] : memref<1x24x768xf32, #tpu.memory_space<vmem>>, vector<1x1x1xf32>
    %225 = vector.shape_cast %224 : vector<1x1x1xf32> to vector<1xf32>
    %226 = vector.shape_cast %225 : vector<1xf32> to vector<1x1xf32>
    %227 = vector.broadcast %226 : vector<1x1xf32> to vector<2x1xf32>
    %228 = arith.addf %223, %227 : vector<2x1xf32>
    %c0_88 = arith.constant 0 : index
    %c0_89 = arith.constant 0 : index
    %c0_90 = arith.constant 0 : index
    %229 = vector.load %arg9[%c0_88, %c0_89, %c0_90] : memref<1x2x1xf32, #tpu.memory_space<vmem>>, vector<1x2x1xf32>
    %230 = vector.shape_cast %229 : vector<1x2x1xf32> to vector<2x1xf32>
    %231 = vector.shape_cast %228 : vector<2x1xf32> to vector<1x2x1xf32>
    tpu.vector_store %arg9[%c0_88, %c0_89, %c0_90], %231 {strides = array<i32>} : memref<1x2x1xf32, #tpu.memory_space<vmem>>, vector<1x2x1xf32>,
    return
  }
  func.func @transform_0(%arg0: i32, %arg1: i32) -> (i32, i32) {
    %c0_i32 = arith.constant 0 : i32
    %c0_i32_0 = arith.constant 0 : i32
    return %arg1, %c0_i32 : i32, i32
  }
  func.func @transform_1(%arg0: i32, %arg1: i32) -> (i32, i32) {
    %c0_i32 = arith.constant 0 : i32
    %c0_i32_0 = arith.constant 0 : i32
    return %arg1, %c0_i32 : i32, i32
  }
  func.func @transform_2(%arg0: i32, %arg1: i32) -> (i32, i32, i32) {
    %c0_i32 = arith.constant 0 : i32
    %c0_i32_0 = arith.constant 0 : i32
    %c0_i32_1 = arith.constant 0 : i32
    return %arg0, %c0_i32, %c0_i32_0 : i32, i32, i32
  }
  func.func @transform_3(%arg0: i32, %arg1: i32) -> (i32, i32, i32) {
    %c0_i32 = arith.constant 0 : i32
    %c0_i32_0 = arith.constant 0 : i32
    %c0_i32_1 = arith.constant 0 : i32
    return %arg0, %c0_i32, %c0_i32_0 : i32, i32, i32
  }
  func.func @transform_4(%arg0: i32, %arg1: i32) -> (i32, i32, i32) {
    %c0_i32 = arith.constant 0 : i32
    %c0_i32_0 = arith.constant 0 : i32
    %c0_i32_1 = arith.constant 0 : i32
    return %arg0, %c0_i32, %c0_i32_0 : i32, i32, i32
  }
  func.func @transform_5(%arg0: i32, %arg1: i32) -> (i32, i32, i32) {
    %c0_i32 = arith.constant 0 : i32
    %c0_i32_0 = arith.constant 0 : i32
    %c0_i32_1 = arith.constant 0 : i32
    return %arg0, %c0_i32, %c0_i32_0 : i32, i32, i32
  }
  func.func @transform_6(%arg0: i32, %arg1: i32) -> (i32, i32, i32) {
    %c0_i32 = arith.constant 0 : i32
    %c0_i32_0 = arith.constant 0 : i32
    %c0_i32_1 = arith.constant 0 : i32
    return %arg0, %c0_i32, %c0_i32_0 : i32, i32, i32
  }
  func.func @transform_7(%arg0: i32, %arg1: i32) -> (i32, i32, i32) {
    %c0_i32 = arith.constant 0 : i32
    %c0_i32_0 = arith.constant 0 : i32
    return %arg0, %arg1, %c0_i32 : i32, i32, i32
  }
}

</mosaic_0001>

<bundles_post_ra>
// kernel: tpu_custom_call.1
= control target key start
LH: loop header
LB: loop body
LE: loop exit
PB: predicated region body
PF: predicated region fallthrough
CT: control target
= control target key end

     0   :  { %s5061_s0 = inlined_call_operand.hbm [shape: bf16[2,768], index: 0, kind: input, shape index: {}]   ;;  %s5062_s1 = inlined_call_operand.hbm [shape: f32[2,4], index: 1, kind: input, shape index: {}]   ;;  %s5063_s2 = inlined_call_operand.hbm [shape: f32[2,24,768], index: 2, kind: input, shape index: {}]   ;;  %s5064_s3 = inlined_call_operand.hbm [shape: s8[2,768,768], index: 3, kind: input, shape index: {}]   ;;  %s5065_s4 = inlined_call_operand.hbm [shape: s8[2,768,512], index: 4, kind: input, shape index: {}]   ;;  %s5066_s5 = inlined_call_operand.hbm [shape: s8[2,512,384], index: 5, kind: input, shape index: {}]   ;;  %s5067_s6 = inlined_call_operand.hbm [shape: s8[2,384,256], index: 6, kind: input, shape index: {}]   ;;  %s5068_s7 = inlined_call_operand.vmem [shape: f32[2,2,1], index: 7, kind: output, shape index: {}]  }
   0x1   :  { %5083 = sst [smem:[#allocation17_spill]] %s5061_s0 }
   0x2   :  { %5084 = sst [smem:[#allocation18_spill]] %s5063_s2 }
   0x3   :  { %5085 = sst [smem:[#allocation19_spill]] %s5064_s3 }
   0x4   :  { %5086 = sst [smem:[#allocation20_spill]] %s5065_s4 }
   0x5   :  { %12 = vsyncpa [#allocation3], 0 }
   0x6   :  { %13 = vsyncpa [#allocation5], 0  ;;  %s3945_s24 = smov 0   ;;  %s3947_s25 = smov 0  }
   0x7   :  { %s3949_s26 = smov 0   ;;  %s3951_s27 = smov 0  }
   0x8   :  { %s3953_s28 = smov 0   ;;  %s3955_s29 = smov 0  }
   0x9 LB: > { %5087 = sst [smem:[#allocation14_spill]] %s3871_s26  ;;  %s5069_s30 = sadd.s32 4294967295, %s3883_s29   ;;  %s3883_s29 = sphi %s3955_s29, %s19_s29   ;;  %s3879_s28 = sphi %s3953_s28, %s5118_s28   ;;  %s3875_s27 = sphi %s3951_s27, %s5117_s27   ;;  %s3871_s26 = sphi %s3949_s26, %s5113_s26   ;;  %s3867_s25 = sphi %s3947_s25, %s5116_s25   ;;  %s3863_s24 = sphi %s3945_s24, %s5115_s24  }
   0xa   : > { %s31_s8 = sadd.s32 1, %s3879_s28  ;;  %s90_s9 = sadd.s32 1, %s3871_s26 }
   0xb   : > { %p33_p0 = scmp.ge.s32.totalorder %s31_s8, 2  ;;  %p97_p1 = scmp.ne.s32.totalorder %s3871_s26, %s3867_s25 }
   0xc   : > { %p98_p2 = scmp.eq.s32.totalorder %s3883_s29, 0  ;;  %p103_p4 = scmp.ne.s32.totalorder %s3867_s25, %s3863_s24 }
   0xd   : > { %s5120_s8 = smov (%p33_p0, %s31_s8), 0  ;;  %p3990_p5 = scmp.eq.s32.totalorder %s5069_s30, 0 }
   0xe   : > { %5088 = sst [smem:[#allocation15_spill]] %s5120_s8  ;;  %p3981_p3 = por %p98_p2, %p97_p1 }
   0xf   : > { %s87_s11 = ssub.s32 %s3879_s28, %s5120_s8  ;;  %p3349_p7 = scmp.ge.s32.totalorder %s3883_s29, 1 }
  0x10   : > { %s5090_s12 = scalar_select %p3990_p5, 1, 0 }
  0x11   : > { %p88_p6 = scmp.eq.s32.totalorder %s87_s11, 0  ;;  %p3997_p8 = por %p3990_p5, %p103_p4 }
  0x12   : > { %p246_p9 = scmp.lt.s32.totalorder %s3883_s29, 3  ;;  %s3885_s16 = smov [#allocation2]  }
  0x13   : > { %s5091_s13 = scalar_select %p3997_p8, 1, 0 }
  0x14   : > { %s4003_s14 = scalar_select %p88_p6, %s3871_s26, %s90_s9  }
  0x15   : > { %p4005_p10 = pnand %p3349_p7, %p246_p9  ;;  %s262_s17 = sshll.u32 %s3885_s16, 4  ;;  %s263_s17 = int_to_ptr.vmem [resolvable:$true] %s262_s17 }
  0x16   : > { %5092 = sst [smem:[#allocation16_spill]] %s4003_s14  ;;  %p3539_p12 = scmp.lt.s32.totalorder %s3883_s29, 2 }
  0x17   : > { %s5093_s15 = scalar_select %p4005_p10, 1, 0 }
  0x18   : > { %p3514_p11 = pneg %p4005_p10  ;;  %s286_s19 = sand.u32 1, %s3883_s29  }
  0x19   : > { %p4021_p0 = pnand %p3539_p12, %p3981_p3  ;;  %s4026_s21 = sand.u32 1, %s3871_s26  }
  0x1a   : > { %p4014_p13 = pnand %p3514_p11, %p3990_p5  ;;  %s5096_s0 = sld [smem:[#allocation17_spill]] }
  0x1b   : > { %s5095_s20 = scalar_select %p4021_p0, 1, 0 }
  0x1c   : > { %s5094_s18 = scalar_select %p4014_p13, 1, 0 }
  0x1d   : > { %p5076_p2 = pneg %p4014_p13 }
  0x20   : > { %s3619_s24 = scalar_lea.hbm %s5096_s0, 96 }
  0x21   : > { %p3620_p1 = scmp.ne.s32.totalorder %s5096_s0, %s3619_s24  ;;  %p3626_p3 = scmp.lt.u32.totalorder %s3619_s24, %s5096_s0 }
  0x23   : > { %p3622_p4 = pnand %p5076_p2, %p3620_p1 }
  0x25   : > { %p3623_p6 = pneg %p3622_p4 }
  0x27   : > { %p3628_p7 = pnand %p3626_p3, %p3623_p6 }
  0x29   : > { %3631 = shalt.err (!%p3628_p7)
}
  0x2a   : > { %s3632_s30 = scalar_lea.vmem %s263_s17, 96  ;;  %p3640_p8 = scmp.lt.s32.totalorder %s263_s17, %s263_s17 }
  0x2b   : > { %p3633_p9 = scmp.ne.s32.totalorder %s263_s17, %s3632_s30  ;;  %p3641_p5 = scmp.lt.s32.totalorder %s3632_s30, %s3632_s30 }
  0x2d   : > { %p3635_p11 = pnand %p3633_p9, %p5076_p2  ;;  %p3642_p10 = por %p3641_p5, %p3640_p8 }
  0x2f   : > { %p3636_p12 = pneg %p3635_p11 }
  0x31   : > { %p3643_p0 = pnand %p3642_p10, %p3636_p12 }
  0x33   : > { %3646 = shalt.err (!%p3643_p0)
}
  0x34   : > { %3517 = dma.hbm_to_vmem [thread:$0]  (!%p4014_p13), %s5096_s0, 96, %s263_s17, [#allocation3]  }
  0x35   : > { %s3481_s24 = smul.u32 144, %s4026_s21  ;;  %s5097_s2 = sld [smem:[#allocation18_spill]] }
  0x36   : > { %s3482_s9 = smul.u32 2304, %s3879_s28  ;;  %s4060_s23 = scalar_lea.sflag [#allocation3], %s286_s19 }
  0x37   : > { %s290_s30 = scalar_lea.vmem [#allocation6], %s3481_s24  ;;  %s3483_s22 = smul.u32 1152, %s4026_s21 }
  0x38   : > { %s297_s8 = sshll.u32 %s290_s30, 4  ;;  %p5098_p8 = scmp.ne.s32.totalorder %s5095_s20, 0  ;;  %s4057_s8 = int_to_ptr.vmem [resolvable:$true] %s297_s8 }
  0x3a   : > { %p4066_p10 = pneg %p5098_p8 }
  0x3b   : > { %s4055_s16 = scalar_lea.hbm %s5097_s2, %s3482_s9  ;;  %s3652_s24 = scalar_lea.hbm %s5097_s2, 4608 }
  0x3c   : > { %s3647_s14 = scalar_lea.hbm %s4055_s16, 2304  ;;  %p3653_p4 = scmp.lt.u32.totalorder %s4055_s16, %s5097_s2 }
  0x3d   : > { %p3648_p5 = scmp.ne.s32.totalorder %s4055_s16, %s3647_s14  ;;  %p3654_p6 = scmp.lt.u32.totalorder %s3652_s24, %s3647_s14 }
  0x3e   : > { %s5099_s17 = scalar_select %p4066_p10, 1, 0 }
  0x3f   : > { %p3650_p0 = pnand %p4066_p10, %p3648_p5  ;;  %p3655_p3 = por %p3654_p6, %p3653_p4 }
  0x40   : > { %p3656_p7 = scmp.lt.u32.totalorder %s3647_s14, %s4055_s16 }
  0x41   : > { %p3651_p1 = pneg %p3650_p0 }
  0x42   : > { %p3657_p9 = por %p3656_p7, %p3655_p3 }
  0x44   : > { %p3658_p11 = pnand %p3657_p9, %p3651_p1 }
  0x46   : > { %3661 = shalt.err (!%p3658_p11)
}
  0x47   : > { %s3662_s19 = scalar_lea.vmem %s4057_s8, 2304  ;;  %s3886_s9 = smov [#allocation6]  }
  0x48   : > { %p3663_p12 = scmp.ne.s32.totalorder %s4057_s8, %s3662_s19  ;;  %s3667_s11 = sshll.u32 %s3886_s9, 4  ;;  %s3668_s11 = int_to_ptr.vmem [resolvable:$false] %s3667_s11 }
  0x49   : > { %s3669_s10 = scalar_lea.vmem %s3668_s11, 4608  ;;  %p3670_p2 = scmp.lt.s32.totalorder %s4057_s8, %s3668_s11 }
  0x4a   : > { %p3665_p5 = pnand %p3663_p12, %p4066_p10  ;;  %p3671_p13 = scmp.lt.s32.totalorder %s3669_s10, %s3662_s19 }
  0x4c   : > { %p3666_p0 = pneg %p3665_p5  ;;  %p3672_p4 = por %p3671_p13, %p3670_p2 }
  0x4e   : > { %p3673_p6 = pnand %p3672_p4, %p3666_p0 }
  0x50   : > { %3676 = shalt.err (!%p3673_p6)
}
  0x51   : > { %s3887_s14 = smov 768   ;;  %s3888_s24 = smov 48  }
  0x52   : > { %3524 = dma.hbm_to_vmem [thread:$0]  (!%p5098_p8), %s4055_s16, 2304, %s4057_s8, %s4060_s23, %s3887_s14, %s3887_s14, %s3888_s24  }
  0x53   : > { %s3484_s30 = smul.u32 18432, %s3879_s28  ;;  %s311_s19 = scalar_lea.vmem [#allocation7], %s3483_s22 }
  0x54   : > { %s318_s9 = sshll.u32 %s311_s19, 4  ;;  %s5100_s3 = sld [smem:[#allocation19_spill]]  ;;  %s4102_s9 = int_to_ptr.vmem [resolvable:$true] %s318_s9 }
  0x5a   : > { %s4100_s2 = scalar_lea.hbm %s5100_s3, %s3484_s30  ;;  %s3682_s22 = scalar_lea.hbm %s5100_s3, 36864 }
  0x5b   : > { %s3677_s26 = scalar_lea.hbm %s4100_s2, 18432  ;;  %p3683_p3 = scmp.lt.u32.totalorder %s4100_s2, %s5100_s3 }
  0x5c   : > { %p3678_p13 = scmp.ne.s32.totalorder %s4100_s2, %s3677_s26  ;;  %p3684_p7 = scmp.lt.u32.totalorder %s3682_s22, %s3677_s26 }
  0x5d   : > { %p3686_p11 = scmp.lt.u32.totalorder %s3677_s26, %s4100_s2 }
  0x5e   : > { %p3680_p2 = pnand %p3678_p13, %p4066_p10  ;;  %p3685_p9 = por %p3684_p7, %p3683_p3 }
  0x60   : > { %p3681_p1 = pneg %p3680_p2  ;;  %p3687_p12 = por %p3686_p11, %p3685_p9 }
  0x62   : > { %p3688_p5 = pnand %p3687_p12, %p3681_p1 }
  0x64   : > { %3691 = shalt.err (!%p3688_p5)
}
  0x65   : > { %s3692_s0 = scalar_lea.vmem %s4102_s9, 18432  ;;  %s3889_s30 = smov [#allocation7]  }
  0x66   : > { %p3693_p0 = scmp.ne.s32.totalorder %s4102_s9, %s3692_s0  ;;  %s3697_s10 = sshll.u32 %s3889_s30, 4  ;;  %s3698_s10 = int_to_ptr.vmem [resolvable:$false] %s3697_s10 }
  0x67   : > { %s3699_s11 = scalar_lea.vmem %s3698_s10, 36864  ;;  %p3700_p13 = scmp.lt.s32.totalorder %s4102_s9, %s3698_s10 }
  0x68   : > { %p3695_p4 = pnand %p3693_p0, %p4066_p10  ;;  %p3701_p2 = scmp.lt.s32.totalorder %s3699_s11, %s3692_s0 }
  0x6a   : > { %p3696_p6 = pneg %p3695_p4  ;;  %p3702_p3 = por %p3701_p2, %p3700_p13 }
  0x6c   : > { %p3703_p7 = pnand %p3702_p3, %p3696_p6 }
  0x6e   : > { %3706 = shalt.err (!%p3703_p7)
}
  0x6f   : > { %3527 = dma.hbm_to_vmem [thread:$0]  (!%p5098_p8), %s4100_s2, 18432, %s4102_s9, %s4060_s23, %s3887_s14, %s3887_s14, %s3888_s24  }
  0x70   : > { %s3486_s26 = smul.u32 12288, %s3879_s28  ;;  %s5102_s4 = sld [smem:[#allocation20_spill]] }
  0x71   : > { %s5101_s8 = smul.u32 768, %s4026_s21 }
  0x72   : > { %s3487_s10 = smul.u32 384, %s4026_s21 }
  0x73   : > { %s332_s16 = scalar_lea.vmem [#allocation8], %s5101_s8 }
  0x74   : > { %s339_s22 = sshll.u32 %s332_s16, 4  ;;  %s4137_s22 = int_to_ptr.vmem [resolvable:$true] %s339_s22 }
  0x76   : > { %s4135_s30 = scalar_lea.hbm %s5102_s4, %s3486_s26  ;;  %s3712_s24 = scalar_lea.hbm %s5102_s4, 24576 }
  0x77   : > { %s3707_s11 = scalar_lea.hbm %s4135_s30, 12288  ;;  %p3713_p12 = scmp.lt.u32.totalorder %s4135_s30, %s5102_s4 }
  0x78   : > { %p3708_p1 = scmp.ne.s32.totalorder %s4135_s30, %s3707_s11  ;;  %p3714_p5 = scmp.lt.u32.totalorder %s3712_s24, %s3707_s11 }
  0x79   : > { %p3716_p4 = scmp.lt.u32.totalorder %s3707_s11, %s4135_s30 }
  0x7a   : > { %p3710_p9 = pnand %p3708_p1, %p4066_p10  ;;  %p3715_p0 = por %p3714_p5, %p3713_p12 }
  0x7c   : > { %p3711_p11 = pneg %p3710_p9  ;;  %p3717_p6 = por %p3716_p4, %p3715_p0 }
  0x7e   : > { %p3718_p13 = pnand %p3717_p6, %p3711_p11 }
  0x80   : > { %3721 = shalt.err (!%p3718_p13)
}
  0x81   : > { %s3722_s26 = scalar_lea.vmem %s4137_s22, 12288  ;;  %s3890_s16 = smov [#allocation8]  }
  0x82   : > { %p3723_p2 = scmp.ne.s32.totalorder %s4137_s22, %s3722_s26  ;;  %s3727_s19 = sshll.u32 %s3890_s16, 4  ;;  %s3728_s19 = int_to_ptr.vmem [resolvable:$false] %s3727_s19 }
  0x83   : > { %s3729_s0 = scalar_lea.vmem %s3728_s19, 24576  ;;  %p3730_p1 = scmp.lt.s32.totalorder %s4137_s22, %s3728_s19 }
  0x84   : > { %p3725_p3 = pnand %p3723_p2, %p4066_p10  ;;  %p3731_p9 = scmp.lt.s32.totalorder %s3729_s0, %s3722_s26 }
  0x86   : > { %p3726_p7 = pneg %p3725_p3  ;;  %p3732_p12 = por %p3731_p9, %p3730_p1 }
  0x88   : > { %p3733_p5 = pnand %p3732_p12, %p3726_p7 }
  0x8a   : > { %3736 = shalt.err (!%p3733_p5)
}
  0x8b   : > { %s3891_s11 = smov 512   ;;  %s3892_s2 = smov 32  }
  0x8c   : > { %3530 = dma.hbm_to_vmem [thread:$0]  (!%p5098_p8), %s4135_s30, 12288, %s4137_s22, %s4060_s23, %s3891_s11, %s3891_s11, %s3892_s2  }
  0x8d   : > { %s3488_s14 = smul.u32 6144, %s3879_s28  ;;  %s353_s24 = scalar_lea.vmem [#allocation9], %s3487_s10 }
  0x8e   : > { %s360_s9 = sshll.u32 %s353_s24, 4  ;;  %s3742_s10 = scalar_lea.hbm %s5066_s5, 12288  ;;  %s4170_s9 = int_to_ptr.vmem [resolvable:$true] %s360_s9 }
  0x8f   : > { %s4168_s16 = scalar_lea.hbm %s5066_s5, %s3488_s14 }
  0x90   : > { %s3737_s19 = scalar_lea.hbm %s4168_s16, 6144  ;;  %p3743_p6 = scmp.lt.u32.totalorder %s4168_s16, %s5066_s5 }
  0x91   : > { %p3738_p11 = scmp.ne.s32.totalorder %s4168_s16, %s3737_s19  ;;  %p3744_p13 = scmp.lt.u32.totalorder %s3742_s10, %s3737_s19 }
  0x92   : > { %p3746_p3 = scmp.lt.u32.totalorder %s3737_s19, %s4168_s16 }
  0x93   : > { %p3740_p0 = pnand %p3738_p11, %p4066_p10  ;;  %p3745_p2 = por %p3744_p13, %p3743_p6 }
  0x95   : > { %p3741_p4 = pneg %p3740_p0  ;;  %p3747_p7 = por %p3746_p3, %p3745_p2 }
  0x97   : > { %p3748_p1 = pnand %p3747_p7, %p3741_p4 }
  0x99   : > { %3751 = shalt.err (!%p3748_p1)
}
  0x9a   : > { %s3752_s2 = scalar_lea.vmem %s4170_s9, 6144  ;;  %s3893_s14 = smov [#allocation9]  }
  0x9b   : > { %p3753_p9 = scmp.ne.s32.totalorder %s4170_s9, %s3752_s2  ;;  %s3757_s24 = sshll.u32 %s3893_s14, 4  ;;  %s3758_s24 = int_to_ptr.vmem [resolvable:$false] %s3757_s24 }
  0x9c   : > { %s3759_s8 = scalar_lea.vmem %s3758_s24, 12288  ;;  %p3760_p11 = scmp.lt.s32.totalorder %s4170_s9, %s3758_s24 }
  0x9d   : > { %p3755_p12 = pnand %p3753_p9, %p4066_p10  ;;  %p3761_p0 = scmp.lt.s32.totalorder %s3759_s8, %s3752_s2 }
  0x9f   : > { %p3756_p5 = pneg %p3755_p12  ;;  %p3762_p6 = por %p3761_p0, %p3760_p11 }
  0xa1   : > { %p3763_p13 = pnand %p3762_p6, %p3756_p5 }
  0xa3   : > { %3766 = shalt.err (!%p3763_p13)
}
  0xa4   : > { %s3894_s26 = smov 384   ;;  %s3895_s19 = smov 24  }
  0xa5   : > { %3533 = dma.hbm_to_vmem [thread:$0]  (!%p5098_p8), %s4168_s16, 6144, %s4170_s9, %s4060_s23, %s3894_s26, %s3894_s26, %s3895_s19  }
  0xa6   : > { %s3896_s22 = smov [#allocation4]   ;;  %s3489_s10 = smul.u32 192, %s4026_s21 }
  0xa7   : > { %s275_s30 = sshll.u32 %s3896_s22, 4  ;;  %s3490_s0 = smul.u32 3072, %s3879_s28  ;;  %s276_s30 = int_to_ptr.vmem [resolvable:$true] %s275_s30 }
  0xa8   : > { %s3767_s14 = scalar_lea.hbm %s5062_s1, 32  ;;  %p5103_p2 = scmp.ne.s32.totalorder %s5094_s18, 0 }
  0xa9   : > { %p3768_p4 = scmp.ne.s32.totalorder %s5062_s1, %s3767_s14  ;;  %p3774_p9 = scmp.lt.u32.totalorder %s3767_s14, %s5062_s1 }
  0xaa   : > { %p5104_p3 = pneg %p5103_p2 }
  0xac   : > { %p3770_p7 = pnand %p3768_p4, %p5104_p3 }
  0xae   : > { %p3771_p1 = pneg %p3770_p7 }
  0xb0   : > { %p3776_p12 = pnand %p3774_p9, %p3771_p1 }
  0xb2   : > { %3779 = shalt.err (!%p3776_p12)
}
  0xb3   : > { %s3780_s21 = scalar_lea.vmem %s276_s30, 32  ;;  %p5105_p11 = pmov %p5104_p3 }
  0xb4   : > { %p3781_p5 = scmp.ne.s32.totalorder %s276_s30, %s3780_s21  ;;  %p3788_p13 = scmp.lt.s32.totalorder %s276_s30, %s276_s30 }
  0xb5   : > { %p3789_p8 = scmp.lt.s32.totalorder %s3780_s21, %s3780_s21 }
  0xb6   : > { %p3783_p0 = pnand %p3781_p5, %p5105_p11 }
  0xb7   : > { %p3790_p10 = por %p3789_p8, %p3788_p13 }
  0xb8   : > { %p3784_p6 = pneg %p3783_p0 }
  0xba   : > { %p3791_p3 = pnand %p3790_p10, %p3784_p6 }
  0xbc   : > { %3794 = shalt.err (!%p3791_p3)
}
  0xbd   : > { %3520 = dma.hbm_to_vmem [thread:$0]  (!%p5103_p2), %s5062_s1, 32, %s276_s30, [#allocation5]  }
  0xbe   : > { %s4219_s26 = scalar_lea.hbm %s5067_s6, %s3490_s0  ;;  %s374_s19 = scalar_lea.vmem [#allocation10], %s3489_s10 }
  0xbf   : > { %s381_s22 = sshll.u32 %s374_s19, 4  ;;  %s3795_s11 = scalar_lea.hbm %s4219_s26, 3072  ;;  %s4221_s22 = int_to_ptr.vmem [resolvable:$true] %s381_s22 }
  0xc0   : > { %p3796_p8 = scmp.ne.s32.totalorder %s4219_s26, %s3795_s11  ;;  %p5106_p10 = scmp.ne.s32.totalorder %s5099_s17, 0 }
  0xc1   : > { %s3800_s2 = scalar_lea.hbm %s5067_s6, 6144  ;;  %p3801_p2 = scmp.lt.u32.totalorder %s4219_s26, %s5067_s6 }
  0xc2   : > { %p3798_p4 = pnand %p3796_p8, %p5106_p10  ;;  %p3802_p1 = scmp.lt.u32.totalorder %s3800_s2, %s3795_s11 }
  0xc3   : > { %p3804_p12 = scmp.lt.u32.totalorder %s3795_s11, %s4219_s26 }
  0xc4   : > { %p3799_p7 = pneg %p3798_p4  ;;  %p3803_p9 = por %p3802_p1, %p3801_p2 }
  0xc6   : > { %p3805_p5 = por %p3804_p12, %p3803_p9 }
  0xc8   : > { %p3806_p11 = pnand %p3805_p5, %p3799_p7 }
  0xca   : > { %3809 = shalt.err (!%p3806_p11)
}
  0xcb   : > { %s3810_s10 = scalar_lea.vmem %s4221_s22, 3072  ;;  %s3897_s24 = smov [#allocation10]  }
  0xcc   : > { %p3811_p0 = scmp.ne.s32.totalorder %s4221_s22, %s3810_s10  ;;  %s3815_s8 = sshll.u32 %s3897_s24, 4  ;;  %s3816_s8 = int_to_ptr.vmem [resolvable:$false] %s3815_s8 }
  0xcd   : > { %s3817_s21 = scalar_lea.vmem %s3816_s8, 6144  ;;  %p3818_p3 = scmp.lt.s32.totalorder %s4221_s22, %s3816_s8 }
  0xce   : > { %p3813_p6 = pnand %p3811_p0, %p5106_p10  ;;  %p3819_p8 = scmp.lt.s32.totalorder %s3817_s21, %s3810_s10 }
  0xd0   : > { %p3814_p13 = pneg %p3813_p6  ;;  %p3820_p4 = por %p3819_p8, %p3818_p3 }
  0xd2   : > { %p3821_p2 = pnand %p3820_p4, %p3814_p13 }
  0xd4   : > { %3824 = shalt.err (!%p3821_p2)
}
  0xd5   : > { %s3898_s9 = smov 256   ;;  %s3899_s16 = smov 16  }
  0xd6   : > { %p5107_p7 = scmp.ne.s32.totalorder %s5095_s20, 0  ;;  %p5108_p10 = scmp.ne.s32.totalorder %s5093_s15, 0 }
  0xd7   : > { %p5109_p1 = scmp.ne.s32.totalorder (!%p5108_p10), %s5090_s12, 0 }
  0xd8   : > { %3536 = dma.hbm_to_vmem [thread:$0]  (!%p5107_p7), %s4219_s26, 3072, %s4221_s22, %s4060_s23, %s3898_s9, %s3898_s9, %s3899_s16  }
  0xd9   : > { %393 = sbr.rel (%p5108_p10) target bundleno = 3181 (0xc6d), region = 48 }
  0xe0   : > { %3850 = dma.done.wait (%p5109_p1), [#allocation3], 96  }
  0xe1   : > { %3852 = vsyncadd (%p5109_p1), [#allocation3], 4294967200 }
  0xe2   : > { %3854 = dma.done.wait (%p5109_p1), [#allocation5], 32  }
  0xe3   : > { %3856 = vsyncadd (%p5109_p1), [#allocation5], 4294967264  ;;  %s5110_s17 = sadd.s32 4294967295, %s3883_s29   ;;  %s4258_s23 = sand.u32 1, %s3867_s25  }
  0xe4   : > { %s403_s20 = sand.u32 1, %s5110_s17   ;;  %s3491_s15 = smul.u32 144, %s4258_s23 }
  0xe5   : > { %s404_s3 = scalar_lea.sflag [#allocation3], %s403_s20  ;;  %p5111_p9 = scmp.ne.s32.totalorder %s5091_s13, 0 }
  0xe6   : > { %s4261_s4 = scalar_lea.vmem [#allocation6], %s3491_s15 }
  0xe7   : > { %3858 = dma.done.wait (%p5111_p9), %s404_s3, 42240  }
  0xe8   : > { %3860 = vsyncadd (%p5111_p9), %s404_s3, 4294925056  ;;  %s3492_s12 = smul.u32 1152, %s4258_s23  ;;  %v3900_v18 = vmov 1966171168   ;;  %v943_v20 = vlaneseq  ;;  %v4287_v36 = vld [vmem:[#allocation2] sm:$0x3f] }
  0xe9   : > { %v941_v19 = vunpack.c.l.s4 %v3900_v18  ;;  %vm1655_vm0 = vcmask 1041408   ;;  %s3493_s13 = smul.u32 768, %s4258_s23  ;;  %p496_p12 = scmp.lt.s32.totalorder %s3875_s27, 1  ;;  %vm3159_vm1 = vcmask 1024  }
  0xea   : > { %s4268_s26 = scalar_lea.vmem [#allocation7], %s3492_s12  ;;  %v4278_v26 = vshrl.u32 %v943_v20, 7  ;;  %s3494_s22 = smul.u32 384, %s4258_s23 }
  0xeb   : > { %v507_v0 = vld [vmem:[%s4268_s26 + $0x8] sm:$0xff]  ;;  %v506_v2 = vld [vmem:[%s4268_s26] sm:$0xff]  ;;  %v513_v10 = vld [vmem:[%s4268_s26 + $0x38] sm:$0xff]  ;;  %v942_v25 = vunpack.c.0.s8 %v941_v19  ;;  %s4646_s19 = scalar_lea.vmem [#allocation8], %s3493_s13  ;;  %s3495_s18 = smul.u32 192, %s4258_s23 }
  0xec   : > { %v555_v1 = vld [vmem:[%s4268_s26 + $0x188] sm:$0xff]  ;;  %v651_v3 = vunpack.c.l.s8.bf16 %v507_v0  ;;  %v657_v4 = vunpack.c.h.s8.bf16 %v507_v0  ;;  %v554_v7 = vld [vmem:[%s4268_s26 + $0x180] sm:$0xff]  ;;  %v650_v8 = vunpack.c.l.s8.bf16 %v506_v2  ;;  %v561_v11 = vld [vmem:[%s4268_s26 + $0x1b8] sm:$0xff]  ;;  %v656_v12 = vunpack.c.h.s8.bf16 %v506_v2  ;;  %s4846_s11 = scalar_lea.vmem [#allocation9], %s3494_s22  ;;  %s5122_s27 = smov (!%p496_p12, %s3875_s27), 1 }
  0xed   : > { %v747_v5 = vunpack.c.l.s8.bf16 %v555_v1  ;;  %v753_v6 = vunpack.c.h.s8.bf16 %v555_v1  ;;  %v746_v9 = vunpack.c.l.s8.bf16 %v554_v7  ;;  %v752_v13 = vunpack.c.h.s8.bf16 %v554_v7  ;;  %v512_v16 = vld [vmem:[%s4268_s26 + $0x30] sm:$0xff]  ;;  %v519_v27 = vld [vmem:[%s4268_s26 + $0x68] sm:$0xff]  ;;  %v518_v33 = vld [vmem:[%s4268_s26 + $0x60] sm:$0xff]  ;;  %s4971_s30 = scalar_lea.vmem [#allocation10], %s3495_s18  ;;  %s3361_s2 = sshll.u32 %s5122_s27, 1 }
  0xee   : > { %992 = vmatprep.subr.bf16.mxu1 %v651_v3  ;;  %v663_v14 = vunpack.c.l.s8.bf16 %v513_v10  ;;  %v759_v15 = vunpack.c.l.s8.bf16 %v561_v11  ;;  %v560_v17 = vld [vmem:[%s4268_s26 + $0x1b0] sm:$0xff]  ;;  %v662_v21 = vunpack.c.l.s8.bf16 %v512_v16  ;;  %v669_v23 = vunpack.c.h.s8.bf16 %v513_v10  ;;  %v567_v28 = vld [vmem:[%s4268_s26 + $0x1e8] sm:$0xff]  ;;  %v566_v34 = vld [vmem:[%s4268_s26 + $0x1e0] sm:$0xff]  ;;  %s502_s10 = scalar_lea.vmem %s5068_s7, %s3361_s2 }
  0xef   : > { %1033 = vmatprep.subr.bf16.mxu0 %v747_v5  ;;  %993 = vmatpush1.bf16.msra.mxu1 %v650_v8  ;;  %v758_v22 = vunpack.c.l.s8.bf16 %v560_v17  ;;  %v765_v24 = vunpack.c.h.s8.bf16 %v561_v11  ;;  %v668_v29 = vunpack.c.h.s8.bf16 %v512_v16  ;;  %v764_v30 = vunpack.c.h.s8.bf16 %v560_v17  ;;  %v525_v42 = vld [vmem:[%s4268_s26 + $0x98] sm:$0xff]  ;;  %v524_v49 = vld [vmem:[%s4268_s26 + $0x90] sm:$0xff]  ;;  %v531_v57 = vld [vmem:[%s4268_s26 + $0xc8] sm:$0xff] }
  0xf0   : > { %1034 = vmatpush1.bf16.msra.mxu0 %v746_v9  ;;  %994 = vmatprep.subr.bf16.mxu1 %v657_v4  ;;  %v675_v31 = vunpack.c.l.s8.bf16 %v519_v27  ;;  %v771_v32 = vunpack.c.l.s8.bf16 %v567_v28  ;;  %v4285_v35 = vsub.s32 %v942_v25, %v4278_v26  ;;  %v674_v37 = vunpack.c.l.s8.bf16 %v518_v33  ;;  %v573_v43 = vld [vmem:[%s4268_s26 + $0x218] sm:$0xff]  ;;  %v572_v50 = vld [vmem:[%s4268_s26 + $0x210] sm:$0xff]  ;;  %v579_v58 = vld [vmem:[%s4268_s26 + $0x248] sm:$0xff] }
  0xf1   : > { %1035 = vmatprep.subr.bf16.mxu0 %v753_v6  ;;  %v770_v38 = vunpack.c.l.s8.bf16 %v566_v34  ;;  %v681_v39 = vunpack.c.h.s8.bf16 %v519_v27  ;;  %v777_v40 = vunpack.c.h.s8.bf16 %v567_v28  ;;  %v680_v45 = vunpack.c.h.s8.bf16 %v518_v33  ;;  %v530_v63 = vld [vmem:[%s4268_s26 + $0xc0] sm:$0xff]  ;;  %v537_v5 = vld [vmem:[%s4268_s26 + $0xf8] sm:$0xff]  ;;  %v543_v20 = vld [vmem:[%s4268_s26 + $0x128] sm:$0xff] }
  0xf2   : > { %v4291_v41 = vrot.slane %v4287_v36, %v4285_v35  ;;  %v776_v46 = vunpack.c.h.s8.bf16 %v566_v34  ;;  %v687_v47 = vunpack.c.l.s8.bf16 %v525_v42  ;;  %v783_v48 = vunpack.c.l.s8.bf16 %v573_v43  ;;  %v578_v0 = vld [vmem:[%s4268_s26 + $0x240] sm:$0xff]  ;;  %v585_v6 = vld [vmem:[%s4268_s26 + $0x278] sm:$0xff] }
  0xf3   : > { %995 = vmatpush1.bf16.msra.mxu1 %v656_v12  ;;  %v686_v53 = vunpack.c.l.s8.bf16 %v524_v49  ;;  %v782_v54 = vunpack.c.l.s8.bf16 %v572_v50  ;;  %v693_v55 = vunpack.c.h.s8.bf16 %v525_v42  ;;  %v789_v56 = vunpack.c.h.s8.bf16 %v573_v43  ;;  %v542_v27 = vld [vmem:[%s4268_s26 + $0x120] sm:$0xff]  ;;  %v549_v33 = vld [vmem:[%s4268_s26 + $0x158] sm:$0xff]  ;;  %v596_v42 = vld [vmem:[%s4268_s26 + $0x2d0] sm:$0xff] }
  0xf4   : > { %1036 = vmatpush1.bf16.msra.mxu0 %v752_v13  ;;  %996 = vmatprep.subr.bf16.mxu1 %v663_v14  ;;  %v954_v44 = vcombine.high %v4291_v41, %v4291_v41  ;;  %v692_v59 = vunpack.c.h.s8.bf16 %v524_v49  ;;  %v788_v60 = vunpack.c.h.s8.bf16 %v572_v50  ;;  %v699_v61 = vunpack.c.l.s8.bf16 %v531_v57  ;;  %v536_v13 = vld [vmem:[%s4268_s26 + $0xf0] sm:$0xff]  ;;  %v590_v28 = vld [vmem:[%s4268_s26 + $0x2a0] sm:$0xff]  ;;  %v597_v34 = vld [vmem:[%s4268_s26 + $0x2d8] sm:$0xff] }
  0xf5   : > { %1037 = vmatprep.subr.bf16.mxu0 %v759_v15  ;;  %v795_v62 = vunpack.c.l.s8.bf16 %v579_v58  ;;  %v698_v1 = vunpack.c.l.s8.bf16 %v530_v63  ;;  %v794_v2 = vunpack.c.l.s8.bf16 %v578_v0  ;;  %v705_v3 = vunpack.c.h.s8.bf16 %v531_v57  ;;  %v584_v14 = vld [vmem:[%s4268_s26 + $0x270] sm:$0xff] }
  0xf6   : > { %v4300_v51 = vrot.slane %v954_v44, %v4285_v35  ;;  %v801_v4 = vunpack.c.h.s8.bf16 %v579_v58  ;;  %v939_v7 = vcombine.high %v4287_v36, %v4287_v36  ;;  %v704_v8 = vunpack.c.h.s8.bf16 %v530_v63  ;;  %v508_v57 = vld [vmem:[%s4268_s26 + $0x10] sm:$0xff]  ;;  %v609_v63 = vld [vmem:[%s4268_s26 + $0x338] sm:$0xff] }
  0xf7   : > { %997 = vmatpush1.bf16.msra.mxu1 %v662_v21  ;;  %v800_v9 = vunpack.c.h.s8.bf16 %v578_v0  ;;  %v711_v11 = vunpack.c.l.s8.bf16 %v537_v5  ;;  %v807_v12 = vunpack.c.l.s8.bf16 %v585_v6  ;;  %v710_v16 = vunpack.c.l.s8.bf16 %v536_v13  ;;  %v591_v21 = vld [vmem:[%s4268_s26 + $0x2a8] sm:$0xff] }
  0xf8   : > { %1038 = vmatpush1.bf16.msra.mxu0 %v758_v22  ;;  %998 = vmatprep.subr.bf16.mxu1 %v669_v23  ;;  %v4305_v52 = vcombine.high %v4300_v51, %v4300_v51  ;;  %v4317_v10 = vrot.slane %v939_v7, %v4285_v35  ;;  %v806_v17 = vunpack.c.l.s8.bf16 %v584_v14  ;;  %v717_v18 = vunpack.c.h.s8.bf16 %v537_v5  ;;  %v515_v0 = vld [vmem:[%s4268_s26 + $0x48] sm:$0xff]  ;;  %v514_v7 = vld [vmem:[%s4268_s26 + $0x40] sm:$0xff] }
  0xf9   : > { %1039 = vmatprep.subr.bf16.mxu0 %v765_v24  ;;  %1024 = vmatprep.mubr.bf16.mxu1 %v4300_v51  ;;  %v813_v19 = vunpack.c.h.s8.bf16 %v585_v6  ;;  %v716_v22 = vunpack.c.h.s8.bf16 %v536_v13  ;;  %v812_v23 = vunpack.c.h.s8.bf16 %v584_v14  ;;  %v723_v24 = vunpack.c.l.s8.bf16 %v543_v20  ;;  %v608_v6 = vld [vmem:[%s4268_s26 + $0x330] sm:$0xff] }
  0xfa   : > { %1065 = vmatprep.mubr.bf16.mxu0 %v4305_v52  ;;  %v4323_v15 = vrot.slane %v4317_v10, %v4285_v35  ;;  %v819_v25 = vunpack.c.l.s8.bf16 %v591_v21  ;;  %v728_v36 = vunpack.c.h.s8.bf16 %v542_v27  ;;  %v830_v44 = vunpack.c.l.s8.bf16 %v596_v42 }
  0xfb   : > { %999 = vmatpush1.bf16.msra.mxu1 %v668_v29  ;;  %v722_v29 = vunpack.c.l.s8.bf16 %v542_v27  ;;  %v4337_v49 = vrot.slane %v4291_v41, %v4285_v35  ;;  %v955_v58 = vcombine.high %v4317_v10, %v4317_v10  ;;  %v665_v5 = vunpack.c.l.s8.bf16 %v515_v0 }
  0xfc   : > { %1040 = vmatpush1.bf16.msra.mxu0 %v764_v30  ;;  %1000 = vmatprep.subr.bf16.mxu1 %v675_v31  ;;  %v818_v30 = vunpack.c.l.s8.bf16 %v590_v28  ;;  %v729_v31 = vunpack.c.h.s8.bf16 %v543_v20  ;;  %v671_v10 = vunpack.c.h.s8.bf16 %v515_v0  ;;  %v860_v13 = vunpack.c.h.s8.bf16 %v608_v6 }
  0xfd   : > { %1041 = vmatprep.subr.bf16.mxu0 %v771_v32  ;;  %v825_v32 = vunpack.c.h.s8.bf16 %v591_v21  ;;  %v670_v14 = vunpack.c.h.s8.bf16 %v514_v7 }
  0xff   : > { %1001 = vmatpush1.bf16.msra.mxu1 %v674_v37  ;;  %v824_v37 = vunpack.c.h.s8.bf16 %v590_v28 }
 0x100   : > { %1042 = vmatpush1.bf16.msra.mxu0 %v770_v38  ;;  %1002 = vmatprep.subr.bf16.mxu1 %v681_v39  ;;  %v735_v38 = vunpack.c.l.s8.bf16 %v549_v33  ;;  %v831_v39 = vunpack.c.l.s8.bf16 %v597_v34 }
 0x101   : > { %1043 = vmatprep.subr.bf16.mxu0 %v777_v40  ;;  %v548_v40 = vld [vmem:[%s4268_s26 + $0x150] sm:$0xff] }
 0x102   : > { %v734_v43 = vunpack.c.l.s8.bf16 %v548_v40  ;;  %v740_v50 = vunpack.c.h.s8.bf16 %v548_v40  ;;  %v627_v40 = vld [vmem:[%s4268_s26 + $0x3c8] sm:$0xff] }
 0x103   : > { %1003 = vmatpush1.bf16.msra.mxu1 %v680_v45  ;;  %v741_v45 = vunpack.c.h.s8.bf16 %v549_v33  ;;  %v526_v33 = vld [vmem:[%s4268_s26 + $0xa0] sm:$0xff] }
 0x104   : > { %1044 = vmatpush1.bf16.msra.mxu0 %v776_v46  ;;  %1004 = vmatprep.subr.bf16.mxu1 %v687_v47  ;;  %v837_v46 = vunpack.c.h.s8.bf16 %v597_v34  ;;  %v603_v47 = vld [vmem:[%s4268_s26 + $0x308] sm:$0xff]  ;;  %v3901_v34 = vmov 0  }
 0x105   : > { %1045 = vmatprep.subr.bf16.mxu0 %v783_v48  ;;  %v509_v48 = vld [vmem:[%s4268_s26 + $0x18] sm:$0xff]  ;;  %3605 = vset.pattern.permute.xlu0 %v3901_v34 }
 0x107   : > { %1005 = vmatpush1.bf16.msra.mxu1 %v686_v53  ;;  %v836_v53 = vunpack.c.h.s8.bf16 %v596_v42  ;;  %v533_v42 = vld [vmem:[%s4268_s26 + $0xd8] sm:$0xff] }
 0x108   : > { %1046 = vmatpush1.bf16.msra.mxu0 %v782_v54  ;;  %1006 = vmatprep.subr.bf16.mxu1 %v693_v55  ;;  %v843_v54 = vunpack.c.l.s8.bf16 %v603_v47  ;;  %v653_v55 = vunpack.c.l.s8.bf16 %v509_v48 }
 0x109   : > { %1047 = vmatprep.subr.bf16.mxu0 %v789_v56  ;;  %v602_v56 = vld [vmem:[%s4268_s26 + $0x300] sm:$0xff] }
 0x10a   : > { %v842_v41 = vunpack.c.l.s8.bf16 %v602_v56 }
 0x10b   : > { %1007 = vmatpush1.bf16.msra.mxu1 %v692_v59  ;;  %v4345_v59 = vcombine.high %v4337_v49, %v4337_v49 }
 0x10c   : > { %1048 = vmatpush1.bf16.msra.mxu0 %v788_v60  ;;  %1008 = vmatprep.subr.bf16.mxu1 %v699_v61  ;;  %v652_v60 = vunpack.c.l.s8.bf16 %v508_v57  ;;  %v849_v61 = vunpack.c.h.s8.bf16 %v603_v47  ;;  %v891_v47 = vunpack.c.l.s8.bf16 %v627_v40 }
 0x10d   : > { %1049 = vmatprep.subr.bf16.mxu0 %v795_v62  ;;  %v659_v62 = vunpack.c.h.s8.bf16 %v509_v48  ;;  %v701_v48 = vunpack.c.l.s8.bf16 %v533_v42 }
 0x10f   : > { %1009 = vmatpush1.bf16.msra.mxu1 %v698_v1  ;;  %v4350_v1 = vrot.slane %v955_v58, %v4285_v35  ;;  %v854_v35 = vunpack.c.l.s8.bf16 %v608_v6  ;;  %v707_v58 = vunpack.c.h.s8.bf16 %v533_v42  ;;  %v556_v42 = vld [vmem:[%s4268_s26 + $0x190] sm:$0xff] }
 0x110   : > { %1050 = vmatpush1.bf16.msra.mxu0 %v794_v2  ;;  %1010 = vmatprep.subr.bf16.mxu1 %v705_v3  ;;  %v848_v2 = vunpack.c.h.s8.bf16 %v602_v56  ;;  %v658_v3 = vunpack.c.h.s8.bf16 %v508_v57  ;;  %v897_v57 = vunpack.c.h.s8.bf16 %v627_v40 }
 0x111   : > { %1051 = vmatprep.subr.bf16.mxu0 %v801_v4  ;;  %v855_v4 = vunpack.c.l.s8.bf16 %v609_v63 }
 0x113   : > { %1011 = vmatpush1.bf16.msra.mxu1 %v704_v8  ;;  %v664_v8 = vunpack.c.l.s8.bf16 %v514_v7 }
 0x114   : > { %1052 = vmatpush1.bf16.msra.mxu0 %v800_v9  ;;  %1012 = vmatprep.subr.bf16.mxu1 %v711_v11  ;;  %v861_v9 = vunpack.c.h.s8.bf16 %v609_v63  ;;  %v615_v11 = vld [vmem:[%s4268_s26 + $0x368] sm:$0xff] }
 0x115   : > { %1053 = vmatprep.subr.bf16.mxu0 %v807_v12  ;;  %v521_v12 = vld [vmem:[%s4268_s26 + $0x78] sm:$0xff] }
 0x117   : > { %1013 = vmatpush1.bf16.msra.mxu1 %v710_v16  ;;  %v867_v16 = vunpack.c.l.s8.bf16 %v615_v11 }
 0x118   : > { %1054 = vmatpush1.bf16.msra.mxu0 %v806_v17  ;;  %1014 = vmatprep.subr.bf16.mxu1 %v717_v18  ;;  %v677_v17 = vunpack.c.l.s8.bf16 %v521_v12  ;;  %v614_v18 = vld [vmem:[%s4268_s26 + $0x360] sm:$0xff] }
 0x119   : > { %1055 = vmatprep.subr.bf16.mxu0 %v813_v19  ;;  %v520_v19 = vld [vmem:[%s4268_s26 + $0x70] sm:$0xff]  ;;  %v866_v20 = vunpack.c.l.s8.bf16 %v614_v18  ;;  %v872_v27 = vunpack.c.h.s8.bf16 %v614_v18 }
 0x11a   : > { %v676_v21 = vunpack.c.l.s8.bf16 %v520_v19  ;;  %v682_v28 = vunpack.c.h.s8.bf16 %v520_v19 }
 0x11b   : > { %1015 = vmatpush1.bf16.msra.mxu1 %v716_v22  ;;  %v873_v22 = vunpack.c.h.s8.bf16 %v615_v11 }
 0x11c   : > { %1056 = vmatpush1.bf16.msra.mxu0 %v812_v23  ;;  %1016 = vmatprep.subr.bf16.mxu1 %v723_v24  ;;  %v683_v23 = vunpack.c.h.s8.bf16 %v521_v12  ;;  %v621_v24 = vld [vmem:[%s4268_s26 + $0x398] sm:$0xff] }
 0x11d   : > { %1057 = vmatprep.subr.bf16.mxu0 %v819_v25  ;;  %v527_v25 = vld [vmem:[%s4268_s26 + $0xa8] sm:$0xff] }
 0x11f   : > { %1017 = vmatpush1.bf16.msra.mxu1 %v722_v29  ;;  %v505_v29 = vld [vmem:[#allocation4] sm:$0x3] }
 0x120   : > { %1058 = vmatpush1.bf16.msra.mxu0 %v818_v30  ;;  %1018 = vmatprep.subr.bf16.mxu1 %v729_v31  ;;  %v879_v30 = vunpack.c.l.s8.bf16 %v621_v24  ;;  %v689_v31 = vunpack.c.l.s8.bf16 %v527_v25 }
 0x121   : > { %1059 = vmatprep.subr.bf16.mxu0 %v825_v32  ;;  %v620_v32 = vld [vmem:[%s4268_s26 + $0x390] sm:$0xff]  ;;  %1408 = vperm.xlu0 %3605, %v505_v29  }
 0x123   : > { %1019 = vmatpush1.bf16.msra.mxu1 %v728_v36  ;;  %v878_v36 = vunpack.c.l.s8.bf16 %v620_v32 }
 0x124   : > { %1060 = vmatpush1.bf16.msra.mxu0 %v824_v37  ;;  %1020 = vmatprep.subr.bf16.mxu1 %v735_v38  ;;  %v688_v37 = vunpack.c.l.s8.bf16 %v526_v33  ;;  %v885_v38 = vunpack.c.h.s8.bf16 %v621_v24 }
 0x125   : > { %1061 = vmatprep.subr.bf16.mxu0 %v831_v39  ;;  %v695_v39 = vunpack.c.h.s8.bf16 %v527_v25 }
 0x127   : > { %1021 = vmatpush1.bf16.msra.mxu1 %v734_v43  ;;  %v3902_v43 = vmov 2  }
 0x128   : > { %1062 = vmatpush1.bf16.msra.mxu0 %v830_v44  ;;  %1022 = vmatprep.subr.bf16.mxu1 %v741_v45  ;;  %v3903_v44 = vmov 1   ;;  %v884_v45 = vunpack.c.h.s8.bf16 %v620_v32 }
 0x129   : > { %1063 = vmatprep.subr.bf16.mxu0 %v837_v46  ;;  %3607 = vset.pattern.permute.xlu1 %v3902_v43  ;;  %v694_v46 = vunpack.c.h.s8.bf16 %v526_v33  ;;  %v557_v33 = vld [vmem:[%s4268_s26 + $0x198] sm:$0xff]  ;;  %v510_v43 = vld [vmem:[%s4268_s26 + $0x20] sm:$0xff] }
 0x12a   : > { %1510 = vperm.xlu1 %3607, %v505_v29   ;;  %3606 = vset.pattern.permute.xlu0 %v3903_v44  ;;  %v748_v44 = vunpack.c.l.s8.bf16 %v556_v42 }
 0x12b   : > { %1023 = vmatpush1.bf16.msra.mxu1 %v740_v50  ;;  %v626_v50 = vld [vmem:[%s4268_s26 + $0x3c0] sm:$0xff]  ;;  %1459 = vperm.xlu0 %3606, %v505_v29  }
 0x12c   : > { %1064 = vmatpush1.bf16.msra.mxu0 %v836_v53  ;;  %1115 = vmatprep.subr.bf16.mxu1 %v653_v55  ;;  %v532_v53 = vld [vmem:[%s4268_s26 + $0xd0] sm:$0xff]  ;;  %v890_v55 = vunpack.c.l.s8.bf16 %v626_v50 }
 0x12d   : > { %1074 = vmatprep.subr.bf16.mxu0 %v843_v54  ;;  %v3904_v54 = vmov 3   ;;  %v700_v56 = vunpack.c.l.s8.bf16 %v532_v53 }
 0x12e   : > { %1025 = vmatmul.mubr.bf16.vlgmr.msra.gmra.mrb[0].mxu1 %v4337_v49  ;;  %3608 = vset.pattern.permute.xlu1 %v3904_v54 }
 0x12f   : > { %1066 = vmatmul.mubr.bf16.vlgmr.msra.gmra.mrb[0].mxu0 %v4345_v59  ;;  %1116 = vmatpush1.bf16.msra.mxu1 %v652_v60  ;;  %v539_v60 = vld [vmem:[%s4268_s26 + $0x108] sm:$0xff] }
 0x130   : > { %1075 = vmatpush1.bf16.msra.mxu0 %v842_v41  ;;  %1117 = vmatprep.subr.bf16.mxu1 %v659_v62  ;;  %v633_v41 = vld [vmem:[%s4268_s26 + $0x3f8] sm:$0xff]  ;;  %v706_v62 = vunpack.c.h.s8.bf16 %v532_v53  ;;  %v713_v0 = vunpack.c.l.s8.bf16 %v539_v60  ;;  %v719_v7 = vunpack.c.h.s8.bf16 %v539_v60  ;;  %v754_v53 = vunpack.c.h.s8.bf16 %v556_v42 }
 0x131   : > { %1076 = vmatprep.subr.bf16.mxu0 %v849_v61  ;;  %1106 = vmatprep.mubr.bf16.mxu0 %v4350_v1  ;;  %v896_v61 = vunpack.c.h.s8.bf16 %v626_v50  ;;  %v903_v63 = vunpack.c.l.s8.bf16 %v633_v41  ;;  %v909_v6 = vunpack.c.h.s8.bf16 %v633_v41  ;;  %v517_v50 = vld [vmem:[%s4268_s26 + $0x58] sm:$0xff] }
 0x132   : > { %1147 = vmatprep.mubr.bf16.mxu1 %v4300_v51  ;;  %1561 = vperm.xlu1 %3608, %v505_v29  }
 0x133   : > { %1118 = vmatpush1.bf16.msra.mxu1 %v658_v3  ;;  %3609 = vset.pattern.permute.xlu0 %v3904_v54  ;;  %v538_v3 = vld [vmem:[%s4268_s26 + $0x100] sm:$0xff]  ;;  %v660_v54 = vunpack.c.h.s8.bf16 %v510_v43 }
 0x134   : > { %1077 = vmatpush1.bf16.msra.mxu0 %v848_v2  ;;  %1119 = vmatprep.subr.bf16.mxu1 %v665_v5  ;;  %v632_v2 = vld [vmem:[%s4268_s26 + $0x3f0] sm:$0xff]  ;;  %v712_v5 = vunpack.c.l.s8.bf16 %v538_v3 }
 0x135   : > { %1078 = vmatprep.subr.bf16.mxu0 %v855_v4  ;;  %v902_v4 = vunpack.c.l.s8.bf16 %v632_v2 }
 0x137   : > { %1120 = vmatpush1.bf16.msra.mxu1 %v664_v8  ;;  %v545_v8 = vld [vmem:[%s4268_s26 + $0x138] sm:$0xff] }
 0x138   : > { %1079 = vmatpush1.bf16.msra.mxu0 %v854_v35  ;;  %1121 = vmatprep.subr.bf16.mxu1 %v671_v10  ;;  %v639_v35 = vld [vmem:[%s4268_s26 + $0x428] sm:$0xff]  ;;  %v718_v10 = vunpack.c.h.s8.bf16 %v538_v3  ;;  %v725_v12 = vunpack.c.l.s8.bf16 %v545_v8  ;;  %v731_v19 = vunpack.c.h.s8.bf16 %v545_v8 }
 0x139   : > { %1080 = vmatprep.subr.bf16.mxu0 %v861_v9  ;;  %v908_v9 = vunpack.c.h.s8.bf16 %v632_v2  ;;  %v915_v11 = vunpack.c.l.s8.bf16 %v639_v35  ;;  %v921_v18 = vunpack.c.h.s8.bf16 %v639_v35 }
 0x13b   : > { %1122 = vmatpush1.bf16.msra.mxu1 %v670_v14  ;;  %v544_v14 = vld [vmem:[%s4268_s26 + $0x130] sm:$0xff] }
 0x13c   : > { %1081 = vmatpush1.bf16.msra.mxu0 %v860_v13  ;;  %1123 = vmatprep.subr.bf16.mxu1 %v677_v17  ;;  %v638_v13 = vld [vmem:[%s4268_s26 + $0x420] sm:$0xff]  ;;  %v724_v17 = vunpack.c.l.s8.bf16 %v544_v14 }
 0x13d   : > { %1082 = vmatprep.subr.bf16.mxu0 %v867_v16  ;;  %v914_v16 = vunpack.c.l.s8.bf16 %v638_v13 }
 0x13f   : > { %1124 = vmatpush1.bf16.msra.mxu1 %v676_v21  ;;  %v551_v21 = vld [vmem:[%s4268_s26 + $0x168] sm:$0xff] }
 0x140   : > { %1083 = vmatpush1.bf16.msra.mxu0 %v866_v20  ;;  %1125 = vmatprep.subr.bf16.mxu1 %v683_v23  ;;  %v645_v20 = vld [vmem:[%s4268_s26 + $0x458] sm:$0xff]  ;;  %v730_v23 = vunpack.c.h.s8.bf16 %v544_v14  ;;  %v737_v25 = vunpack.c.l.s8.bf16 %v551_v21  ;;  %v743_v32 = vunpack.c.h.s8.bf16 %v551_v21 }
 0x141   : > { %1084 = vmatprep.subr.bf16.mxu0 %v873_v22  ;;  %v920_v22 = vunpack.c.h.s8.bf16 %v638_v13  ;;  %v927_v24 = vunpack.c.l.s8.bf16 %v645_v20 }
 0x143   : > { %1126 = vmatpush1.bf16.msra.mxu1 %v682_v28  ;;  %v550_v28 = vld [vmem:[%s4268_s26 + $0x160] sm:$0xff] }
 0x144   : > { %1085 = vmatpush1.bf16.msra.mxu0 %v872_v27  ;;  %1127 = vmatprep.subr.bf16.mxu1 %v689_v31  ;;  %v644_v27 = vld [vmem:[%s4268_s26 + $0x450] sm:$0xff]  ;;  %v933_v31 = vunpack.c.h.s8.bf16 %v645_v20 }
 0x145   : > { %1086 = vmatprep.subr.bf16.mxu0 %v879_v30  ;;  %v926_v29 = vunpack.c.l.s8.bf16 %v644_v27  ;;  %v736_v30 = vunpack.c.l.s8.bf16 %v550_v28 }
 0x147   : > { %1128 = vmatpush1.bf16.msra.mxu1 %v688_v37  ;;  %v932_v37 = vunpack.c.h.s8.bf16 %v644_v27 }
 0x148   : > { %1087 = vmatpush1.bf16.msra.mxu0 %v878_v36  ;;  %1129 = vmatprep.subr.bf16.mxu1 %v695_v39  ;;  %v511_v36 = vld [vmem:[%s4268_s26 + $0x28] sm:$0xff]  ;;  %v749_v39 = vunpack.c.l.s8.bf16 %v557_v33 }
 0x149   : > { %1088 = vmatprep.subr.bf16.mxu0 %v885_v38  ;;  %v742_v38 = vunpack.c.h.s8.bf16 %v550_v28  ;;  %v655_v40 = vunpack.c.l.s8.bf16 %v511_v36 }
 0x14b   : > { %1130 = vmatpush1.bf16.msra.mxu1 %v694_v46  ;;  %v755_v46 = vunpack.c.h.s8.bf16 %v557_v33 }
 0x14c   : > { %1089 = vmatpush1.bf16.msra.mxu0 %v884_v45  ;;  %1131 = vmatprep.subr.bf16.mxu1 %v701_v48  ;;  %v654_v45 = vunpack.c.l.s8.bf16 %v510_v43  ;;  %v563_v48 = vld [vmem:[%s4268_s26 + $0x1c8] sm:$0xff] }
 0x14d   : > { %1090 = vmatprep.subr.bf16.mxu0 %v891_v47  ;;  %v661_v47 = vunpack.c.h.s8.bf16 %v511_v36 }
 0x14f   : > { %1132 = vmatpush1.bf16.msra.mxu1 %v700_v56  ;;  %v667_v56 = vunpack.c.l.s8.bf16 %v517_v50 }
 0x150   : > { %1091 = vmatpush1.bf16.msra.mxu0 %v890_v55  ;;  %1133 = vmatprep.subr.bf16.mxu1 %v707_v58  ;;  %v761_v55 = vunpack.c.l.s8.bf16 %v563_v48  ;;  %v516_v58 = vld [vmem:[%s4268_s26 + $0x50] sm:$0xff] }
 0x151   : > { %1092 = vmatprep.subr.bf16.mxu0 %v897_v57  ;;  %v562_v57 = vld [vmem:[%s4268_s26 + $0x1c0] sm:$0xff]  ;;  %v666_v60 = vunpack.c.l.s8.bf16 %v516_v58  ;;  %v672_v3 = vunpack.c.h.s8.bf16 %v516_v58 }
 0x152   : > { %v760_v41 = vunpack.c.l.s8.bf16 %v562_v57  ;;  %v766_v2 = vunpack.c.h.s8.bf16 %v562_v57 }
 0x153   : > { %1134 = vmatpush1.bf16.msra.mxu1 %v706_v62  ;;  %v673_v62 = vunpack.c.h.s8.bf16 %v517_v50 }
 0x154   : > { %1093 = vmatpush1.bf16.msra.mxu0 %v896_v61  ;;  %1135 = vmatprep.subr.bf16.mxu1 %v713_v0  ;;  %v767_v61 = vunpack.c.h.s8.bf16 %v563_v48  ;;  %v523_v0 = vld [vmem:[%s4268_s26 + $0x88] sm:$0xff] }
 0x155   : > { %1094 = vmatprep.subr.bf16.mxu0 %v903_v63  ;;  %v569_v63 = vld [vmem:[%s4268_s26 + $0x1f8] sm:$0xff] }
 0x156   : > { %v779_v8 = vunpack.c.h.s8.bf16 %v569_v63 }
 0x157   : > { %1136 = vmatpush1.bf16.msra.mxu1 %v712_v5  ;;  %v568_v5 = vld [vmem:[%s4268_s26 + $0x1f0] sm:$0xff] }
 0x158   : > { %1095 = vmatpush1.bf16.msra.mxu0 %v902_v4  ;;  %1137 = vmatprep.subr.bf16.mxu1 %v719_v7  ;;  %v679_v4 = vunpack.c.l.s8.bf16 %v523_v0  ;;  %v772_v7 = vunpack.c.l.s8.bf16 %v568_v5 }
 0x159   : > { %1096 = vmatprep.subr.bf16.mxu0 %v909_v6  ;;  %v522_v6 = vld [vmem:[%s4268_s26 + $0x80] sm:$0xff] }
 0x15a   : > { %v678_v35 = vunpack.c.l.s8.bf16 %v522_v6  ;;  %v684_v13 = vunpack.c.h.s8.bf16 %v522_v6 }
 0x15b   : > { %1138 = vmatpush1.bf16.msra.mxu1 %v718_v10  ;;  %v575_v10 = vld [vmem:[%s4268_s26 + $0x228] sm:$0xff] }
 0x15c   : > { %1097 = vmatpush1.bf16.msra.mxu0 %v908_v9  ;;  %1139 = vmatprep.subr.bf16.mxu1 %v725_v12  ;;  %v685_v9 = vunpack.c.h.s8.bf16 %v523_v0  ;;  %v778_v12 = vunpack.c.h.s8.bf16 %v568_v5  ;;  %v785_v14 = vunpack.c.l.s8.bf16 %v575_v10  ;;  %v791_v21 = vunpack.c.h.s8.bf16 %v575_v10 }
 0x15d   : > { %1098 = vmatprep.subr.bf16.mxu0 %v915_v11  ;;  %v529_v11 = vld [vmem:[%s4268_s26 + $0xb8] sm:$0xff] }
 0x15f   : > { %1140 = vmatpush1.bf16.msra.mxu1 %v724_v17  ;;  %v574_v17 = vld [vmem:[%s4268_s26 + $0x220] sm:$0xff] }
 0x160   : > { %1099 = vmatpush1.bf16.msra.mxu0 %v914_v16  ;;  %1141 = vmatprep.subr.bf16.mxu1 %v731_v19  ;;  %v691_v16 = vunpack.c.l.s8.bf16 %v529_v11  ;;  %v784_v19 = vunpack.c.l.s8.bf16 %v574_v17 }
 0x161   : > { %1100 = vmatprep.subr.bf16.mxu0 %v921_v18  ;;  %v528_v18 = vld [vmem:[%s4268_s26 + $0xb0] sm:$0xff] }
 0x162   : > { %v690_v20 = vunpack.c.l.s8.bf16 %v528_v18  ;;  %v696_v27 = vunpack.c.h.s8.bf16 %v528_v18 }
 0x163   : > { %1142 = vmatpush1.bf16.msra.mxu1 %v730_v23  ;;  %v581_v23 = vld [vmem:[%s4268_s26 + $0x258] sm:$0xff] }
 0x164   : > { %1101 = vmatpush1.bf16.msra.mxu0 %v920_v22  ;;  %1143 = vmatprep.subr.bf16.mxu1 %v737_v25  ;;  %v697_v22 = vunpack.c.h.s8.bf16 %v529_v11  ;;  %v790_v25 = vunpack.c.h.s8.bf16 %v574_v17  ;;  %v797_v28 = vunpack.c.l.s8.bf16 %v581_v23  ;;  %v803_v36 = vunpack.c.h.s8.bf16 %v581_v23 }
 0x165   : > { %1102 = vmatprep.subr.bf16.mxu0 %v927_v24  ;;  %v535_v24 = vld [vmem:[%s4268_s26 + $0xe8] sm:$0xff] }
 0x167   : > { %1144 = vmatpush1.bf16.msra.mxu1 %v736_v30  ;;  %v580_v30 = vld [vmem:[%s4268_s26 + $0x250] sm:$0xff] }
 0x168   : > { %1103 = vmatpush1.bf16.msra.mxu0 %v926_v29  ;;  %1145 = vmatprep.subr.bf16.mxu1 %v743_v32  ;;  %v703_v29 = vunpack.c.l.s8.bf16 %v535_v24  ;;  %v796_v32 = vunpack.c.l.s8.bf16 %v580_v30 }
 0x169   : > { %1104 = vmatprep.subr.bf16.mxu0 %v933_v31  ;;  %v534_v31 = vld [vmem:[%s4268_s26 + $0xe0] sm:$0xff] }
 0x16a   : > { %v702_v33 = vunpack.c.l.s8.bf16 %v534_v31  ;;  %v708_v42 = vunpack.c.h.s8.bf16 %v534_v31 }
 0x16b   : > { %1146 = vmatpush1.bf16.msra.mxu1 %v742_v38  ;;  %v587_v38 = vld [vmem:[%s4268_s26 + $0x288] sm:$0xff] }
 0x16c   : > { %1105 = vmatpush1.bf16.msra.mxu0 %v932_v37  ;;  %1156 = vmatprep.subr.bf16.mxu1 %v749_v39  ;;  %v709_v37 = vunpack.c.h.s8.bf16 %v535_v24  ;;  %v541_v39 = vld [vmem:[%s4268_s26 + $0x118] sm:$0xff]  ;;  %v809_v43 = vunpack.c.l.s8.bf16 %v587_v38  ;;  %v815_v50 = vunpack.c.h.s8.bf16 %v587_v38 }
 0x16d   : > { %1238 = vmatprep.subr.bf16.mxu0 %v655_v40  ;;  %v802_v40 = vunpack.c.h.s8.bf16 %v580_v30 }
 0x16e   : > { %1148 = vmatmul.mubr.bf16.vlgmr.msra.gmra.mrb[4].mxu1 %v4337_v49 }
 0x16f   : > { %1107 = vmatmul.mubr.bf16.vlgmr.msra.gmra.mrb[0].mxu0 %v4323_v15  ;;  %1157 = vmatpush1.bf16.msra.mxu1 %v748_v44  ;;  %v715_v44 = vunpack.c.l.s8.bf16 %v541_v39 }
 0x170   : > { %1239 = vmatpush1.bf16.msra.mxu0 %v654_v45  ;;  %1158 = vmatprep.subr.bf16.mxu1 %v755_v46  ;;  %v586_v45 = vld [vmem:[%s4268_s26 + $0x280] sm:$0xff]  ;;  %v540_v46 = vld [vmem:[%s4268_s26 + $0x110] sm:$0xff] }
 0x171   : > { %1240 = vmatprep.subr.bf16.mxu0 %v661_v47  ;;  %1188 = vmatprep.mubr.bf16.mxu1 %v4305_v52  ;;  %v808_v47 = vunpack.c.l.s8.bf16 %v586_v45  ;;  %v714_v48 = vunpack.c.l.s8.bf16 %v540_v46  ;;  %v720_v57 = vunpack.c.h.s8.bf16 %v540_v46  ;;  %v616_v46 = vld [vmem:[%s4268_s26 + $0x370] sm:$0xff] }
 0x172   : > { %1270 = vmatprep.mubr.bf16.mxu0 %v4300_v51  ;;  %v773_v51 = vunpack.c.l.s8.bf16 %v569_v63 }
 0x173   : > { %1159 = vmatpush1.bf16.msra.mxu1 %v754_v53  ;;  %v721_v53 = vunpack.c.h.s8.bf16 %v541_v39 }
 0x174   : > { %1241 = vmatpush1.bf16.msra.mxu0 %v660_v54  ;;  %1160 = vmatprep.subr.bf16.mxu1 %v761_v55  ;;  %v593_v54 = vld [vmem:[%s4268_s26 + $0x2b8] sm:$0xff]  ;;  %v547_v55 = vld [vmem:[%s4268_s26 + $0x148] sm:$0xff] }
 0x175   : > { %1242 = vmatprep.subr.bf16.mxu0 %v667_v56  ;;  %v814_v56 = vunpack.c.h.s8.bf16 %v586_v45  ;;  %v821_v58 = vunpack.c.l.s8.bf16 %v593_v54  ;;  %v827_v0 = vunpack.c.h.s8.bf16 %v593_v54 }
 0x177   : > { %1161 = vmatpush1.bf16.msra.mxu1 %v760_v41  ;;  %v727_v41 = vunpack.c.l.s8.bf16 %v547_v55 }
 0x178   : > { %1243 = vmatpush1.bf16.msra.mxu0 %v666_v60  ;;  %1162 = vmatprep.subr.bf16.mxu1 %v767_v61  ;;  %v592_v60 = vld [vmem:[%s4268_s26 + $0x2b0] sm:$0xff]  ;;  %v546_v61 = vld [vmem:[%s4268_s26 + $0x140] sm:$0xff] }
 0x179   : > { %1244 = vmatprep.subr.bf16.mxu0 %v673_v62  ;;  %v820_v62 = vunpack.c.l.s8.bf16 %v592_v60  ;;  %v726_v63 = vunpack.c.l.s8.bf16 %v546_v61  ;;  %v732_v5 = vunpack.c.h.s8.bf16 %v546_v61  ;;  %v622_v61 = vld [vmem:[%s4268_s26 + $0x3a0] sm:$0xff] }
 0x17b   : > { %1163 = vmatpush1.bf16.msra.mxu1 %v766_v2  ;;  %v733_v2 = vunpack.c.h.s8.bf16 %v547_v55  ;;  %v623_v55 = vld [vmem:[%s4268_s26 + $0x3a8] sm:$0xff] }
 0x17c   : > { %1245 = vmatpush1.bf16.msra.mxu0 %v672_v3  ;;  %1164 = vmatprep.subr.bf16.mxu1 %v773_v51  ;;  %v599_v3 = vld [vmem:[%s4268_s26 + $0x2e8] sm:$0xff]  ;;  %v553_v51 = vld [vmem:[%s4268_s26 + $0x178] sm:$0xff] }
 0x17d   : > { %1246 = vmatprep.subr.bf16.mxu0 %v679_v4  ;;  %v826_v4 = vunpack.c.h.s8.bf16 %v592_v60  ;;  %v833_v6 = vunpack.c.l.s8.bf16 %v599_v3  ;;  %v839_v11 = vunpack.c.h.s8.bf16 %v599_v3 }
 0x17f   : > { %1165 = vmatpush1.bf16.msra.mxu1 %v772_v7  ;;  %v739_v7 = vunpack.c.l.s8.bf16 %v553_v51 }
 0x180   : > { %1247 = vmatpush1.bf16.msra.mxu0 %v678_v35  ;;  %1166 = vmatprep.subr.bf16.mxu1 %v779_v8  ;;  %v598_v35 = vld [vmem:[%s4268_s26 + $0x2e0] sm:$0xff]  ;;  %v552_v8 = vld [vmem:[%s4268_s26 + $0x170] sm:$0xff] }
 0x181   : > { %1248 = vmatprep.subr.bf16.mxu0 %v685_v9  ;;  %v832_v9 = vunpack.c.l.s8.bf16 %v598_v35  ;;  %v738_v10 = vunpack.c.l.s8.bf16 %v552_v8  ;;  %v744_v17 = vunpack.c.h.s8.bf16 %v552_v8  ;;  %v628_v8 = vld [vmem:[%s4268_s26 + $0x3d0] sm:$0xff] }
 0x183   : > { %1167 = vmatpush1.bf16.msra.mxu1 %v778_v12  ;;  %v745_v12 = vunpack.c.h.s8.bf16 %v553_v51  ;;  %v629_v51 = vld [vmem:[%s4268_s26 + $0x3d8] sm:$0xff] }
 0x184   : > { %1249 = vmatpush1.bf16.msra.mxu0 %v684_v13  ;;  %1168 = vmatprep.subr.bf16.mxu1 %v785_v14  ;;  %v605_v13 = vld [vmem:[%s4268_s26 + $0x318] sm:$0xff]  ;;  %v559_v14 = vld [vmem:[%s4268_s26 + $0x1a8] sm:$0xff] }
 0x185   : > { %1250 = vmatprep.subr.bf16.mxu0 %v691_v16  ;;  %v838_v16 = vunpack.c.h.s8.bf16 %v598_v35  ;;  %v845_v18 = vunpack.c.l.s8.bf16 %v605_v13  ;;  %v851_v24 = vunpack.c.h.s8.bf16 %v605_v13 }
 0x187   : > { %1169 = vmatpush1.bf16.msra.mxu1 %v784_v19  ;;  %v751_v19 = vunpack.c.l.s8.bf16 %v559_v14 }
 0x188   : > { %1251 = vmatpush1.bf16.msra.mxu0 %v690_v20  ;;  %1170 = vmatprep.subr.bf16.mxu1 %v791_v21  ;;  %v604_v20 = vld [vmem:[%s4268_s26 + $0x310] sm:$0xff]  ;;  %v558_v21 = vld [vmem:[%s4268_s26 + $0x1a0] sm:$0xff] }
 0x189   : > { %1252 = vmatprep.subr.bf16.mxu0 %v697_v22  ;;  %v844_v22 = vunpack.c.l.s8.bf16 %v604_v20  ;;  %v750_v23 = vunpack.c.l.s8.bf16 %v558_v21  ;;  %v756_v30 = vunpack.c.h.s8.bf16 %v558_v21  ;;  %v634_v21 = vld [vmem:[%s4268_s26 + $0x400] sm:$0xff] }
 0x18b   : > { %1171 = vmatpush1.bf16.msra.mxu1 %v790_v25  ;;  %v757_v25 = vunpack.c.h.s8.bf16 %v559_v14  ;;  %v635_v14 = vld [vmem:[%s4268_s26 + $0x408] sm:$0xff] }
 0x18c   : > { %1253 = vmatpush1.bf16.msra.mxu0 %v696_v27  ;;  %1172 = vmatprep.subr.bf16.mxu1 %v797_v28  ;;  %v611_v27 = vld [vmem:[%s4268_s26 + $0x348] sm:$0xff]  ;;  %v565_v28 = vld [vmem:[%s4268_s26 + $0x1d8] sm:$0xff] }
 0x18d   : > { %1254 = vmatprep.subr.bf16.mxu0 %v703_v29  ;;  %v850_v29 = vunpack.c.h.s8.bf16 %v604_v20  ;;  %v857_v31 = vunpack.c.l.s8.bf16 %v611_v27  ;;  %v863_v38 = vunpack.c.h.s8.bf16 %v611_v27  ;;  %v769_v39 = vunpack.c.h.s8.bf16 %v565_v28 }
 0x18f   : > { %1173 = vmatpush1.bf16.msra.mxu1 %v796_v32  ;;  %v763_v32 = vunpack.c.l.s8.bf16 %v565_v28  ;;  %v641_v28 = vld [vmem:[%s4268_s26 + $0x438] sm:$0xff] }
 0x190   : > { %1255 = vmatpush1.bf16.msra.mxu0 %v702_v33  ;;  %1174 = vmatprep.subr.bf16.mxu1 %v803_v36  ;;  %v610_v33 = vld [vmem:[%s4268_s26 + $0x340] sm:$0xff]  ;;  %v564_v36 = vld [vmem:[%s4268_s26 + $0x1d0] sm:$0xff] }
 0x191   : > { %1256 = vmatprep.subr.bf16.mxu0 %v709_v37  ;;  %v856_v37 = vunpack.c.l.s8.bf16 %v610_v33 }
 0x193   : > { %1175 = vmatpush1.bf16.msra.mxu1 %v802_v40  ;;  %v617_v40 = vld [vmem:[%s4268_s26 + $0x378] sm:$0xff] }
 0x194   : > { %1257 = vmatpush1.bf16.msra.mxu0 %v708_v42  ;;  %1176 = vmatprep.subr.bf16.mxu1 %v809_v43  ;;  %v571_v42 = vld [vmem:[%s4268_s26 + $0x208] sm:$0xff]  ;;  %v862_v43 = vunpack.c.h.s8.bf16 %v610_v33 }
 0x195   : > { %1258 = vmatprep.subr.bf16.mxu0 %v715_v44  ;;  %v768_v44 = vunpack.c.h.s8.bf16 %v564_v36  ;;  %v775_v45 = vunpack.c.l.s8.bf16 %v571_v42  ;;  %v781_v54 = vunpack.c.h.s8.bf16 %v571_v42  ;;  %v647_v42 = vld [vmem:[%s4268_s26 + $0x468] sm:$0xff] }
 0x197   : > { %1177 = vmatpush1.bf16.msra.mxu1 %v808_v47  ;;  %v570_v47 = vld [vmem:[%s4268_s26 + $0x200] sm:$0xff] }
 0x198   : > { %1259 = vmatpush1.bf16.msra.mxu0 %v714_v48  ;;  %1178 = vmatprep.subr.bf16.mxu1 %v815_v50  ;;  %v868_v48 = vunpack.c.l.s8.bf16 %v616_v46  ;;  %v774_v50 = vunpack.c.l.s8.bf16 %v570_v47 }
 0x199   : > { %1260 = vmatprep.subr.bf16.mxu0 %v721_v53  ;;  %v875_v53 = vunpack.c.h.s8.bf16 %v617_v40 }
 0x19b   : > { %1179 = vmatpush1.bf16.msra.mxu1 %v814_v56  ;;  %v577_v56 = vld [vmem:[%s4268_s26 + $0x238] sm:$0xff] }
 0x19c   : > { %1261 = vmatpush1.bf16.msra.mxu0 %v720_v57  ;;  %1180 = vmatprep.subr.bf16.mxu1 %v821_v58  ;;  %v874_v57 = vunpack.c.h.s8.bf16 %v616_v46  ;;  %v780_v58 = vunpack.c.h.s8.bf16 %v570_v47  ;;  %v787_v60 = vunpack.c.l.s8.bf16 %v577_v56  ;;  %v793_v3 = vunpack.c.h.s8.bf16 %v577_v56  ;;  %v646_v47 = vld [vmem:[%s4268_s26 + $0x460] sm:$0xff]  ;;  %v607_v56 = vld [vmem:[%s4268_s26 + $0x328] sm:$0xff] }
 0x19d   : > { %1262 = vmatprep.subr.bf16.mxu0 %v727_v41  ;;  %v881_v41 = vunpack.c.l.s8.bf16 %v623_v55 }
 0x19f   : > { %1181 = vmatpush1.bf16.msra.mxu1 %v820_v62  ;;  %v576_v62 = vld [vmem:[%s4268_s26 + $0x230] sm:$0xff] }
 0x1a0   : > { %1263 = vmatpush1.bf16.msra.mxu0 %v726_v63  ;;  %1182 = vmatprep.subr.bf16.mxu1 %v827_v0  ;;  %v880_v63 = vunpack.c.l.s8.bf16 %v622_v61  ;;  %v786_v0 = vunpack.c.l.s8.bf16 %v576_v62 }
 0x1a1   : > { %1264 = vmatprep.subr.bf16.mxu0 %v733_v2  ;;  %v887_v2 = vunpack.c.h.s8.bf16 %v623_v55 }
 0x1a3   : > { %1183 = vmatpush1.bf16.msra.mxu1 %v826_v4  ;;  %v583_v4 = vld [vmem:[%s4268_s26 + $0x268] sm:$0xff] }
 0x1a4   : > { %1265 = vmatpush1.bf16.msra.mxu0 %v732_v5  ;;  %1184 = vmatprep.subr.bf16.mxu1 %v833_v6  ;;  %v886_v5 = vunpack.c.h.s8.bf16 %v622_v61  ;;  %v792_v6 = vunpack.c.h.s8.bf16 %v576_v62  ;;  %v799_v35 = vunpack.c.l.s8.bf16 %v583_v4  ;;  %v805_v13 = vunpack.c.h.s8.bf16 %v583_v4 }
 0x1a5   : > { %1266 = vmatprep.subr.bf16.mxu0 %v739_v7  ;;  %v893_v7 = vunpack.c.l.s8.bf16 %v629_v51  ;;  %v853_v62 = vunpack.c.h.s8.bf16 %v607_v56 }
 0x1a7   : > { %1185 = vmatpush1.bf16.msra.mxu1 %v832_v9  ;;  %v582_v9 = vld [vmem:[%s4268_s26 + $0x260] sm:$0xff] }
 0x1a8   : > { %1267 = vmatpush1.bf16.msra.mxu0 %v738_v10  ;;  %1186 = vmatprep.subr.bf16.mxu1 %v839_v11  ;;  %v892_v10 = vunpack.c.l.s8.bf16 %v628_v8  ;;  %v798_v11 = vunpack.c.l.s8.bf16 %v582_v9 }
 0x1a9   : > { %1268 = vmatprep.subr.bf16.mxu0 %v745_v12  ;;  %v899_v12 = vunpack.c.h.s8.bf16 %v629_v51 }
 0x1ab   : > { %1187 = vmatpush1.bf16.msra.mxu1 %v838_v16  ;;  %v589_v16 = vld [vmem:[%s4268_s26 + $0x298] sm:$0xff] }
 0x1ac   : > { %1269 = vmatpush1.bf16.msra.mxu0 %v744_v17  ;;  %1197 = vmatprep.subr.bf16.mxu1 %v845_v18  ;;  %v898_v17 = vunpack.c.h.s8.bf16 %v628_v8  ;;  %v804_v18 = vunpack.c.h.s8.bf16 %v582_v9  ;;  %v811_v20 = vunpack.c.l.s8.bf16 %v589_v16  ;;  %v817_v27 = vunpack.c.h.s8.bf16 %v589_v16  ;;  %v625_v8 = vld [vmem:[%s4268_s26 + $0x3b8] sm:$0xff] }
 0x1ad   : > { %1279 = vmatprep.subr.bf16.mxu0 %v751_v19  ;;  %v905_v19 = vunpack.c.l.s8.bf16 %v635_v14 }
 0x1ae   : > { %1189 = vmatmul.mubr.bf16.vlgmr.msra.gmra.mrb[4].mxu1 %v4345_v59 }
 0x1af   : > { %1271 = vmatmul.mubr.bf16.vlgmr.msra.gmra.mrb[4].mxu0 %v4337_v49  ;;  %1198 = vmatpush1.bf16.msra.mxu1 %v844_v22  ;;  %v762_v49 = vunpack.c.l.s8.bf16 %v564_v36  ;;  %v588_v22 = vld [vmem:[%s4268_s26 + $0x290] sm:$0xff] }
 0x1b0   : > { %1280 = vmatpush1.bf16.msra.mxu0 %v750_v23  ;;  %1199 = vmatprep.subr.bf16.mxu1 %v851_v24  ;;  %v904_v23 = vunpack.c.l.s8.bf16 %v634_v21  ;;  %v810_v24 = vunpack.c.l.s8.bf16 %v588_v22  ;;  %v640_v36 = vld [vmem:[%s4268_s26 + $0x430] sm:$0xff] }
 0x1b1   : > { %1281 = vmatprep.subr.bf16.mxu0 %v757_v25  ;;  %1229 = vmatprep.mubr.bf16.mxu1 %v4350_v1  ;;  %v911_v25 = vunpack.c.h.s8.bf16 %v635_v14 }
 0x1b2   : > { %1311 = vmatprep.mubr.bf16.mxu0 %v4305_v52  ;;  %v869_v52 = vunpack.c.l.s8.bf16 %v617_v40 }
 0x1b3   : > { %1200 = vmatpush1.bf16.msra.mxu1 %v850_v29  ;;  %v595_v29 = vld [vmem:[%s4268_s26 + $0x2c8] sm:$0xff] }
 0x1b4   : > { %1282 = vmatpush1.bf16.msra.mxu0 %v756_v30  ;;  %1201 = vmatprep.subr.bf16.mxu1 %v857_v31  ;;  %v910_v30 = vunpack.c.h.s8.bf16 %v634_v21  ;;  %v816_v31 = vunpack.c.h.s8.bf16 %v588_v22  ;;  %v823_v33 = vunpack.c.l.s8.bf16 %v595_v29  ;;  %v829_v40 = vunpack.c.h.s8.bf16 %v595_v29  ;;  %v630_v22 = vld [vmem:[%s4268_s26 + $0x3e0] sm:$0xff]  ;;  %v636_v29 = vld [vmem:[%s4268_s26 + $0x410] sm:$0xff] }
 0x1b5   : > { %1283 = vmatprep.subr.bf16.mxu0 %v763_v32  ;;  %v917_v32 = vunpack.c.l.s8.bf16 %v641_v28 }
 0x1b7   : > { %1202 = vmatpush1.bf16.msra.mxu1 %v856_v37  ;;  %v594_v37 = vld [vmem:[%s4268_s26 + $0x2c0] sm:$0xff] }
 0x1b8   : > { %1284 = vmatpush1.bf16.msra.mxu0 %v762_v49  ;;  %1203 = vmatprep.subr.bf16.mxu1 %v863_v38  ;;  %v916_v49 = vunpack.c.l.s8.bf16 %v640_v36  ;;  %v822_v38 = vunpack.c.l.s8.bf16 %v594_v37 }
 0x1b9   : > { %1285 = vmatprep.subr.bf16.mxu0 %v769_v39  ;;  %v923_v39 = vunpack.c.h.s8.bf16 %v641_v28 }
 0x1bb   : > { %1204 = vmatpush1.bf16.msra.mxu1 %v862_v43  ;;  %v601_v43 = vld [vmem:[%s4268_s26 + $0x2f8] sm:$0xff] }
 0x1bc   : > { %1286 = vmatpush1.bf16.msra.mxu0 %v768_v44  ;;  %1205 = vmatprep.subr.bf16.mxu1 %v869_v52  ;;  %v922_v44 = vunpack.c.h.s8.bf16 %v640_v36  ;;  %v828_v52 = vunpack.c.h.s8.bf16 %v594_v37  ;;  %v835_v46 = vunpack.c.l.s8.bf16 %v601_v43  ;;  %v841_v55 = vunpack.c.h.s8.bf16 %v601_v43  ;;  %v642_v37 = vld [vmem:[%s4268_s26 + $0x440] sm:$0xff]  ;;  %v648_v43 = vld [vmem:[%s4268_s26 + $0x470] sm:$0xff] }
 0x1bd   : > { %1287 = vmatprep.subr.bf16.mxu0 %v775_v45  ;;  %v929_v45 = vunpack.c.l.s8.bf16 %v647_v42 }
 0x1bf   : > { %1206 = vmatpush1.bf16.msra.mxu1 %v868_v48  ;;  %v600_v48 = vld [vmem:[%s4268_s26 + $0x2f0] sm:$0xff] }
 0x1c0   : > { %1288 = vmatpush1.bf16.msra.mxu0 %v774_v50  ;;  %1207 = vmatprep.subr.bf16.mxu1 %v875_v53  ;;  %v928_v50 = vunpack.c.l.s8.bf16 %v646_v47  ;;  %v834_v53 = vunpack.c.l.s8.bf16 %v600_v48 }
 0x1c1   : > { %1289 = vmatprep.subr.bf16.mxu0 %v781_v54  ;;  %v935_v54 = vunpack.c.h.s8.bf16 %v647_v42 }
 0x1c3   : > { %1208 = vmatpush1.bf16.msra.mxu1 %v874_v57  ;;  %v934_v57 = vunpack.c.h.s8.bf16 %v646_v47 }
 0x1c4   : > { %1290 = vmatpush1.bf16.msra.mxu0 %v780_v58  ;;  %1209 = vmatprep.subr.bf16.mxu1 %v881_v41  ;;  %v840_v58 = vunpack.c.h.s8.bf16 %v600_v48  ;;  %v847_v41 = vunpack.c.l.s8.bf16 %v607_v56 }
 0x1c5   : > { %1291 = vmatprep.subr.bf16.mxu0 %v787_v60  ;;  %v606_v60 = vld [vmem:[%s4268_s26 + $0x320] sm:$0xff] }
 0x1c6   : > { %v846_v61 = vunpack.c.l.s8.bf16 %v606_v60 }
 0x1c7   : > { %1210 = vmatpush1.bf16.msra.mxu1 %v880_v63  ;;  %v613_v63 = vld [vmem:[%s4268_s26 + $0x358] sm:$0xff] }
 0x1c8   : > { %1292 = vmatpush1.bf16.msra.mxu0 %v786_v0  ;;  %1211 = vmatprep.subr.bf16.mxu1 %v887_v2  ;;  %v852_v0 = vunpack.c.h.s8.bf16 %v606_v60  ;;  %v859_v2 = vunpack.c.l.s8.bf16 %v613_v63  ;;  %v865_v4 = vunpack.c.h.s8.bf16 %v613_v63  ;;  %v3363_v60 = vld [vmem:[%s4261_s4 + $0x3] ss:$8 sm:$0x30]  ;;  %v4483_v63 = vsub.s32 1, %v4278_v26 }
 0x1c9   : > { %1293 = vmatprep.subr.bf16.mxu0 %v793_v3  ;;  %v612_v3 = vld [vmem:[%s4268_s26 + $0x350] sm:$0xff] }
 0x1ca   : > { %v858_v51 = vunpack.c.l.s8.bf16 %v612_v3 }
 0x1cb   : > { %1212 = vmatpush1.bf16.msra.mxu1 %v886_v5  ;;  %v619_v5 = vld [vmem:[%s4268_s26 + $0x388] sm:$0xff] }
 0x1cc   : > { %1294 = vmatpush1.bf16.msra.mxu0 %v792_v6  ;;  %1213 = vmatprep.subr.bf16.mxu1 %v893_v7  ;;  %v864_v6 = vunpack.c.h.s8.bf16 %v612_v3  ;;  %v871_v7 = vunpack.c.l.s8.bf16 %v619_v5  ;;  %v3366_v3 = vld [vmem:[%s4261_s4 + $0x63] ss:$8 sm:$0xf] }
 0x1cd   : > { %1295 = vmatprep.subr.bf16.mxu0 %v799_v35 }
 0x1cf   : > { %1214 = vmatpush1.bf16.msra.mxu1 %v892_v10  ;;  %v883_v10 = vunpack.c.l.s8.bf16 %v625_v8 }
 0x1d0   : > { %1296 = vmatpush1.bf16.msra.mxu0 %v798_v11  ;;  %1215 = vmatprep.subr.bf16.mxu1 %v899_v12  ;;  %v624_v11 = vld [vmem:[%s4268_s26 + $0x3b0] sm:$0xff] }
 0x1d1   : > { %1297 = vmatprep.subr.bf16.mxu0 %v805_v13  ;;  %v882_v14 = vunpack.c.l.s8.bf16 %v624_v11 }
 0x1d3   : > { %1216 = vmatpush1.bf16.msra.mxu1 %v898_v17  ;;  %v889_v17 = vunpack.c.h.s8.bf16 %v625_v8  ;;  %v3368_v8 = vld [vmem:[%s4261_s4 + $0x64] ss:$8 sm:$0xf] }
 0x1d4   : > { %1298 = vmatpush1.bf16.msra.mxu0 %v804_v18  ;;  %1217 = vmatprep.subr.bf16.mxu1 %v905_v19  ;;  %v631_v19 = vld [vmem:[%s4268_s26 + $0x3e8] sm:$0xff] }
 0x1d5   : > { %1299 = vmatprep.subr.bf16.mxu0 %v811_v20  ;;  %v888_v20 = vunpack.c.h.s8.bf16 %v624_v11  ;;  %v895_v21 = vunpack.c.l.s8.bf16 %v631_v19 }
 0x1d7   : > { %1218 = vmatpush1.bf16.msra.mxu1 %v904_v23  ;;  %v894_v23 = vunpack.c.l.s8.bf16 %v630_v22 }
 0x1d8   : > { %1300 = vmatpush1.bf16.msra.mxu0 %v810_v24  ;;  %1219 = vmatprep.subr.bf16.mxu1 %v911_v25  ;;  %v901_v24 = vunpack.c.h.s8.bf16 %v631_v19  ;;  %v637_v25 = vld [vmem:[%s4268_s26 + $0x418] sm:$0xff] }
 0x1d9   : > { %1301 = vmatprep.subr.bf16.mxu0 %v817_v27  ;;  %v900_v27 = vunpack.c.h.s8.bf16 %v630_v22  ;;  %v907_v28 = vunpack.c.l.s8.bf16 %v637_v25  ;;  %v3370_v22 = vld [vmem:[%s4261_s4 + $0x65] ss:$8 sm:$0xf] }
 0x1db   : > { %1220 = vmatpush1.bf16.msra.mxu1 %v910_v30  ;;  %v906_v30 = vunpack.c.l.s8.bf16 %v636_v29 }
 0x1dc   : > { %1302 = vmatpush1.bf16.msra.mxu0 %v816_v31  ;;  %1221 = vmatprep.subr.bf16.mxu1 %v917_v32  ;;  %v913_v31 = vunpack.c.h.s8.bf16 %v637_v25  ;;  %v643_v32 = vld [vmem:[%s4268_s26 + $0x448] sm:$0xff]  ;;  %v4529_v25 = vpop.permute.xlu1 %1510 }
 0x1dd   : > { %1303 = vmatprep.subr.bf16.mxu0 %v823_v33  ;;  %v912_v33 = vunpack.c.h.s8.bf16 %v636_v29  ;;  %v919_v36 = vunpack.c.l.s8.bf16 %v643_v32 }
 0x1df   : > { %1222 = vmatpush1.bf16.msra.mxu1 %v916_v49  ;;  %v918_v49 = vunpack.c.l.s8.bf16 %v642_v37 }
 0x1e0   : > { %1304 = vmatpush1.bf16.msra.mxu0 %v822_v38  ;;  %1223 = vmatprep.subr.bf16.mxu1 %v923_v39  ;;  %v925_v38 = vunpack.c.h.s8.bf16 %v643_v32  ;;  %v649_v39 = vld [vmem:[%s4268_s26 + $0x478] sm:$0xff] }
 0x1e1   : > { %1305 = vmatprep.subr.bf16.mxu0 %v829_v40  ;;  %v924_v40 = vunpack.c.h.s8.bf16 %v642_v37  ;;  %v931_v42 = vunpack.c.l.s8.bf16 %v649_v39 }
 0x1e3   : > { %1224 = vmatpush1.bf16.msra.mxu1 %v922_v44  ;;  %v930_v44 = vunpack.c.l.s8.bf16 %v648_v43 }
 0x1e4   : > { %1306 = vmatpush1.bf16.msra.mxu0 %v828_v52  ;;  %1225 = vmatprep.subr.bf16.mxu1 %v929_v45  ;;  %v937_v52 = vunpack.c.h.s8.bf16 %v649_v39  ;;  %v936_v45 = vunpack.c.h.s8.bf16 %v648_v43 }
 0x1e5   : > { %1307 = vmatprep.subr.bf16.mxu0 %v835_v46 }
 0x1e7   : > { %1226 = vmatpush1.bf16.msra.mxu1 %v928_v50 }
 0x1e8   : > { %1308 = vmatpush1.bf16.msra.mxu0 %v834_v53  ;;  %1227 = vmatprep.subr.bf16.mxu1 %v935_v54 }
 0x1e9   : > { %1309 = vmatprep.subr.bf16.mxu0 %v841_v55 }
 0x1eb   : > { %1228 = vmatpush1.bf16.msra.mxu1 %v934_v57 }
 0x1ec   : > { %1310 = vmatpush1.bf16.msra.mxu0 %v840_v58 }
 0x1ed   : > { %1320 = vmatprep.subr.bf16.mxu0 %v847_v41  ;;  %v3362_v41 = vld [vmem:[%s4261_s4 + $0x3] ss:$8 sm:$0xf] }
 0x1ee   : > { %1230 = vmatmul.mubr.bf16.vlgmr.msra.gmra.mrb[4].mxu1 %v4323_v15 }
 0x1ef   : > { %1312 = vmatmul.mubr.bf16.vlgmr.msra.gmra.mrb[4].mxu0 %v4345_v59  ;;  %v618_v59 = vld [vmem:[%s4268_s26 + $0x380] sm:$0xff] }
 0x1f0   : > { %1321 = vmatpush1.bf16.msra.mxu0 %v846_v61  ;;  %1352 = vmatprep.mubr.bf16.mxu0 %v4350_v1  ;;  %v870_v35 = vunpack.c.l.s8.bf16 %v618_v59  ;;  %v877_v1 = vunpack.c.h.s8.bf16 %v619_v5  ;;  %v876_v9 = vunpack.c.h.s8.bf16 %v618_v59  ;;  %v3364_v61 = vld [vmem:[%s4261_s4 + $0x62] ss:$8 sm:$0xf]  ;;  %v4494_v5 = vpop.permute.xlu0 %1408 }
 0x1f1   : > { %1322 = vmatprep.subr.bf16.mxu0 %v853_v62  ;;  %v3365_v62 = vld [vmem:[%s4261_s4 + $0x62] ss:$8 sm:$0x30] }
 0x1f4   : > { %1323 = vmatpush1.bf16.msra.mxu0 %v852_v0  ;;  %v4485_v0 = vor.u32 %v3363_v60, %v3362_v41 }
 0x1f5   : > { %1324 = vmatprep.subr.bf16.mxu0 %v859_v2  ;;  %v4487_v2 = vor.u32 %v3365_v62, %v3364_v61 }
 0x1f8   : > { %1325 = vmatpush1.bf16.msra.mxu0 %v858_v51  ;;  %v3367_v51 = vld [vmem:[%s4261_s4 + $0x63] ss:$8 sm:$0x30] }
 0x1f9   : > { %1326 = vmatprep.subr.bf16.mxu0 %v865_v4  ;;  %v4492_v4 = vsub.s32 2, %v4278_v26  ;;  %v4500_v59 = vor.u32 %v3367_v51, %v3366_v3 }
 0x1fb   : > { %v1377_v11 = vrot.slane %v4485_v0, %v4492_v4  ;;  %v1474_v29 = vrot.slane %v4500_v59, %v4492_v4 }
 0x1fc   : > { %1327 = vmatpush1.bf16.msra.mxu0 %v864_v6 }
 0x1fd   : > { %1328 = vmatprep.subr.bf16.mxu0 %v871_v7 }
 0x200   : > { %1329 = vmatpush1.bf16.msra.mxu0 %v870_v35  ;;  %v1373_v35 = vrot.slane %v4485_v0, %v4483_v63 }
 0x201   : > { %1330 = vmatprep.subr.bf16.mxu0 %v877_v1  ;;  %v1026_v12 = vpop.f32.mrb[0].mxu1  ;;  %v1419_v1 = vrot.slane %v4487_v2, %v4483_v63 }
 0x202   : > { %v1028_v13 = vpop.f32.mrb[1].mxu1 }
 0x203   : > { %v1030_v16 = vpop.f32.mrb[2].mxu1  ;;  %v1443_v19 = vmul.f32 %v1419_v1, %v4494_v5 }
 0x204   : > { %1331 = vmatpush1.bf16.msra.mxu0 %v876_v9  ;;  %v1031_v18 = vpop.f32.mrb[3].mxu1  ;;  %v3369_v9 = vld [vmem:[%s4261_s4 + $0x64] ss:$8 sm:$0x30] }
 0x205   : > { %1332 = vmatprep.subr.bf16.mxu0 %v883_v10  ;;  %v4509_v10 = vsub.s32 3, %v4278_v26  ;;  %v4516_v16 = vor.u32 %v3369_v9, %v3368_v8  ;;  %v4573_v8 = vsub.s32 4, %v4278_v26 }
 0x208   : > { %1333 = vmatpush1.bf16.msra.mxu0 %v882_v14 }
 0x209   : > { %1334 = vmatprep.subr.bf16.mxu0 %v889_v17 }
 0x20c   : > { %1335 = vmatpush1.bf16.msra.mxu0 %v888_v20  ;;  %v1470_v20 = vrot.slane %v4500_v59, %v4483_v63 }
 0x20d   : > { %1336 = vmatprep.subr.bf16.mxu0 %v895_v21  ;;  %v4523_v21 = vpop.permute.xlu0 %1459 }
 0x20e   : > { %v1495_v43 = vmul.f32 %v1474_v29, %v4523_v21 }
 0x210   : > { %1337 = vmatpush1.bf16.msra.mxu0 %v894_v23  ;;  %v3371_v23 = vld [vmem:[%s4261_s4 + $0x65] ss:$8 sm:$0x30] }
 0x211   : > { %1338 = vmatprep.subr.bf16.mxu0 %v901_v24  ;;  %v1427_v24 = vrot.slane %v4487_v2, %v4509_v10 }
 0x213   : > { %v1445_v39 = vmul.f32 %v1427_v24, %v4494_v5 }
 0x214   : > { %1339 = vmatpush1.bf16.msra.mxu0 %v900_v27 }
 0x215   : > { %1340 = vmatprep.subr.bf16.mxu0 %v907_v28 }
 0x218   : > { %1341 = vmatpush1.bf16.msra.mxu0 %v906_v30  ;;  %v1381_v30 = vrot.slane %v4485_v0, %v4509_v10 }
 0x219   : > { %1342 = vmatprep.subr.bf16.mxu0 %v913_v31 }
 0x21c   : > { %1343 = vmatpush1.bf16.msra.mxu0 %v912_v33 }
 0x21d   : > { %1344 = vmatprep.subr.bf16.mxu0 %v919_v36  ;;  %v4539_v36 = vor.u32 %v3371_v23, %v3370_v22  ;;  %v1431_v23 = vrot.slane %v4487_v2, %v4573_v8 }
 0x21f   : > { %v1576_v61 = vrot.slane %v4539_v36, %v4492_v4  ;;  %v1580_v1 = vrot.slane %v4539_v36, %v4509_v10 }
 0x220   : > { %1345 = vmatpush1.bf16.msra.mxu0 %v918_v49  ;;  %v1521_v49 = vrot.slane %v4516_v16, %v4483_v63 }
 0x221   : > { %1346 = vmatprep.subr.bf16.mxu0 %v925_v38  ;;  %v1494_v38 = vmul.f32 %v1470_v20, %v4523_v21 }
 0x224   : > { %1347 = vmatpush1.bf16.msra.mxu0 %v924_v40  ;;  %v1478_v40 = vrot.slane %v4500_v59, %v4509_v10 }
 0x225   : > { %1348 = vmatprep.subr.bf16.mxu0 %v931_v42 }
 0x228   : > { %1349 = vmatpush1.bf16.msra.mxu0 %v930_v44  ;;  %v1525_v44 = vrot.slane %v4516_v16, %v4492_v4 }
 0x229   : > { %1350 = vmatprep.subr.bf16.mxu0 %v937_v52 }
 0x22a   : > { %v1546_v60 = vmul.f32 %v1525_v44, %v4529_v25 }
 0x22c   : > { %1351 = vmatpush1.bf16.msra.mxu0 %v936_v45 }
 0x22f   : > { %1353 = vmatmul.mubr.bf16.vlgmr.msra.gmra.mrb[4].mxu0 %v4323_v15  ;;  %v4480_v15 = vsub.s32 0, %v4278_v26 }
 0x231   : > { %v1369_v6 = vrot.slane %v4485_v0, %v4480_v15  ;;  %v1415_v7 = vrot.slane %v4487_v2, %v4480_v15  ;;  %v1466_v17 = vrot.slane %v4500_v59, %v4480_v15  ;;  %v1517_v32 = vrot.slane %v4516_v16, %v4480_v15 }
 0x233   : > { %v1442_v14 = vmul.f32 %v1415_v7, %v4494_v5  ;;  %v1493_v33 = vmul.f32 %v1466_v17, %v4523_v21  ;;  %v1544_v45 = vmul.f32 %v1517_v32, %v4529_v25  ;;  %v4578_v17 = vsub.s32 5, %v4278_v26 }
 0x234   : > { %v1482_v32 = vrot.slane %v4500_v59, %v4573_v8 }
 0x235   : > { %v1389_v29 = vrot.slane %v4485_v0, %v4578_v17 }
 0x242   : > { %v1108_v46 = vpop.f32.mrb[0].mxu0 }
 0x243   : > { %v3435_v47 = vadd.f32 %v1108_v46, %v1026_v12  ;;  %v1110_v48 = vpop.f32.mrb[1].mxu0  ;;  %v1423_v12 = vrot.slane %v4487_v2, %v4492_v4 }
 0x244   : > { %v3436_v50 = vadd.f32 %v1110_v48, %v1028_v13  ;;  %v1112_v53 = vpop.f32.mrb[2].mxu0  ;;  %v1545_v48 = vmul.f32 %v1521_v49, %v4529_v25  ;;  %v1446_v49 = vmul.f32 %v1431_v23, %v4494_v5  ;;  %v1788_v23 = vld [vmem:[%s4646_s19 + $0x18] sm:$0xff] }
 0x245   : > { %v1113_v54 = vpop.f32.mrb[3].mxu0  ;;  %v1396_v13 = vmul.f32 %v3435_v47, %v1369_v6  ;;  %v1444_v28 = vmul.f32 %v1423_v12, %v4494_v5  ;;  %v1568_v47 = vrot.slane %v4539_v36, %v4480_v15  ;;  %v1572_v53 = vrot.slane %v4539_v36, %v4483_v63 }
 0x246   : > { %v1397_v18 = vmul.f32 %v3436_v50, %v1373_v35  ;;  %v4556_v54 = vpop.permute.xlu1 %1561 }
 0x247   : > { %v1448_v31 = vadd.f32 %v1442_v14, %v1396_v13  ;;  %v1595_v51 = vmul.f32 %v1568_v47, %v4556_v54  ;;  %v1596_v35 = vmul.f32 %v1572_v53, %v4556_v54  ;;  %v1598_v22 = vmul.f32 %v1580_v1, %v4556_v54 }
 0x248   : > { %v1449_v37 = vadd.f32 %v1443_v19, %v1397_v18  ;;  %v1584_v53 = vrot.slane %v4539_v36, %v4573_v8 }
 0x249   : > { %v1499_v46 = vadd.f32 %v1493_v33, %v1448_v31 }
 0x24a   : > { %v1500_v50 = vadd.f32 %v1494_v38, %v1449_v37  ;;  %v1486_v38 = vrot.slane %v4500_v59, %v4578_v17 }
 0x24b   : > { %v1550_v3 = vadd.f32 %v1544_v45, %v1499_v46  ;;  %v1537_v45 = vrot.slane %v4516_v16, %v4578_v17 }
 0x24c   : > { %v1551_v7 = vadd.f32 %v1545_v48, %v1500_v50  ;;  %v1497_v48 = vmul.f32 %v1482_v32, %v4523_v21 }
 0x24d   : > { %v1601_v14 = vadd.f32 %v1595_v51, %v1550_v3 }
 0x24e   : > { %v1602_v19 = vadd.f32 %v1596_v35, %v1551_v7  ;;  %v1599_v7 = vmul.f32 %v1584_v53, %v4556_v54 }
 0x2c1   : > { %v1231_v55 = vpop.f32.mrb[4].mxu1 }
 0x2c2   : > { %v1233_v56 = vpop.f32.mrb[5].mxu1  ;;  %v1398_v27 = vmul.f32 %v1377_v11, %v1231_v55  ;;  %v1607_v55 = vld [vmem:[%s4261_s4] ss:$8 sm:$0xf]  ;;  %v1597_v11 = vmul.f32 %v1576_v61, %v4556_v54 }
 0x2c3   : > { %v1235_v57 = vpop.f32.mrb[6].mxu1  ;;  %v1399_v52 = vmul.f32 %v1381_v30, %v1233_v56  ;;  %v1529_v56 = vrot.slane %v4516_v16, %v4509_v10  ;;  %v1435_v30 = vrot.slane %v4487_v2, %v4578_v17  ;;  %v1533_v2 = vrot.slane %v4516_v16, %v4573_v8 }
 0x2c4   : > { %v1236_v58 = vpop.f32.mrb[7].mxu1  ;;  %v1450_v42 = vadd.f32 %v1444_v28, %v1398_v27  ;;  %v1608_v57 = vld [vmem:[%s4261_s4] ss:$8 sm:$0x30]  ;;  %v1385_v28 = vrot.slane %v4485_v0, %v4573_v8  ;;  %v1588_v16 = vrot.slane %v4539_v36, %v4578_v17 }
 0x2c5   : > { %v1496_v58 = vmul.f32 %v1478_v40, %v4523_v21  ;;  %v1451_v62 = vadd.f32 %v1445_v39, %v1399_v52  ;;  %v4567_v6 = vor.u32 %v1608_v57, %v1607_v55  ;;  %v1547_v13 = vmul.f32 %v1529_v56, %v4529_v25 }
 0x2c6   : > { %v1501_v41 = vadd.f32 %v1495_v43, %v1450_v42  ;;  %v1447_v52 = vmul.f32 %v1435_v30, %v4494_v5  ;;  %v1498_v5 = vmul.f32 %v1486_v38, %v4523_v21  ;;  %v1548_v56 = vmul.f32 %v1533_v2, %v4529_v25  ;;  %v1792_v38 = vld [vmem:[%s4646_s19 + $0x38] sm:$0xff] }
 0x2c7   : > { %v1502_v12 = vadd.f32 %v1496_v58, %v1451_v62  ;;  %v1614_v18 = vrot.slane %v4567_v6, %v4480_v15  ;;  %v1618_v20 = vrot.slane %v4567_v6, %v4483_v63  ;;  %v1622_v26 = vrot.slane %v4567_v6, %v4492_v4 }
 0x2c8   : > { %v1552_v9 = vadd.f32 %v1546_v60, %v1501_v41  ;;  %v1626_v0 = vrot.slane %v4567_v6, %v4509_v10  ;;  %v1549_v62 = vmul.f32 %v1537_v45, %v4529_v25  ;;  %v1630_v21 = vrot.slane %v4567_v6, %v4573_v8 }
 0x2c9   : > { %v1553_v27 = vadd.f32 %v1547_v13, %v1502_v12  ;;  %v4595_v31 = vadd.f32 %v1614_v18, %v1601_v14  ;;  %v4599_v33 = vadd.f32 %v1618_v20, %v1602_v19  ;;  %v1600_v35 = vmul.f32 %v1588_v16, %v4556_v54  ;;  %v1795_v16 = vld [vmem:[%s4646_s19 + $0x50] sm:$0xff] }
 0x2ca   : > { %v1603_v24 = vadd.f32 %v1597_v11, %v1552_v9  ;;  %v1634_v1 = vrot.slane %v4567_v6, %v4578_v17  ;;  %v1786_v6 = vld [vmem:[%s4646_s19 + $0x8] sm:$0xff]  ;;  %v1892_v2 = vunpack.c.l.s8.bf16 %v1792_v38 }
 0x2cb   : > { %v1604_v39 = vadd.f32 %v1598_v22, %v1553_v27  ;;  %v1656_v59 = vsel %vm1655_vm0, %v4595_v31, 0.0  ;;  %v1657_v55 = vsel %vm1655_vm0, %v4599_v33, 0.0  ;;  %v1882_v27 = vunpack.c.l.s8.bf16 %v1786_v6 }
 0x2cc   : > { %v4608_v43 = vadd.f32 %v1622_v26, %v1603_v24  ;;  %v1658_v3 = vadd.f32 %v1657_v55, %v1656_v59  ;;  %v1785_v24 = vld [vmem:[%s4646_s19] sm:$0xff]  ;;  %v1886_v30 = vunpack.c.h.s8.bf16 %v1786_v6  ;;  %v1896_v59 = vunpack.c.h.s8.bf16 %v1792_v38 }
 0x2cd   : > { %v4624_v41 = vadd.f32 %v1626_v0, %v1604_v39  ;;  %v1881_v26 = vunpack.c.l.s8.bf16 %v1785_v24  ;;  %2079 = vmatprep.subr.bf16.mxu1 %v1882_v27  ;;  %v1885_v0 = vunpack.c.h.s8.bf16 %v1785_v24  ;;  %v1803_v24 = vld [vmem:[%s4646_s19 + $0x90] sm:$0xff] }
 0x2ce   : > { %v1659_v60 = vsel %vm1655_vm0, %v4608_v43, 0.0 }
 0x2cf   : > { %v1660_v9 = vadd.f32 %v1659_v60, %v1658_v3  ;;  %v1661_v12 = vsel %vm1655_vm0, %v4624_v41, 0.0  ;;  %2080 = vmatpush1.bf16.msra.mxu1 %v1881_v26  ;;  %v1800_v3 = vld [vmem:[%s4646_s19 + $0x78] sm:$0xff] }
 0x2d0   : > { %2081 = vmatprep.subr.bf16.mxu1 %v1886_v30 }
 0x2d1   : > { %v1662_v18 = vadd.f32 %v1661_v12, %v1660_v9 }
 0x2d3   : > { %2082 = vmatpush1.bf16.msra.mxu1 %v1885_v0 }
 0x302   : > { %v1354_v37 = vpop.f32.mrb[4].mxu0 }
 0x303   : > { %v1400_v40 = vmul.f32 %v1385_v28, %v1354_v37  ;;  %v1356_v42 = vpop.f32.mrb[5].mxu0  ;;  %v1884_v28 = vunpack.c.l.s8.bf16 %v1788_v23  ;;  %v1888_v37 = vunpack.c.h.s8.bf16 %v1788_v23  ;;  %v1801_v23 = vld [vmem:[%s4646_s19 + $0x80] sm:$0xff] }
 0x304   : > { %v1401_v44 = vmul.f32 %v1389_v29, %v1356_v42  ;;  %v1358_v46 = vpop.f32.mrb[6].mxu0  ;;  %v1787_v29 = vld [vmem:[%s4646_s19 + $0x10] sm:$0xff]  ;;  %v1789_v42 = vld [vmem:[%s4646_s19 + $0x20] sm:$0xff]  ;;  %v1913_v27 = vunpack.c.l.s8.bf16 %v1801_v23  ;;  %v1917_v30 = vunpack.c.h.s8.bf16 %v1801_v23 }
 0x305   : > { %v1452_v47 = vadd.f32 %v1446_v49, %v1400_v40  ;;  %v1359_v50 = vpop.f32.mrb[7].mxu0  ;;  %v1883_v32 = vunpack.c.l.s8.bf16 %v1787_v29  ;;  %v1790_v49 = vld [vmem:[%s4646_s19 + $0x28] sm:$0xff]  ;;  %2202 = vmatprep.subr.bf16.mxu0 %v1884_v28  ;;  %v1887_v39 = vunpack.c.h.s8.bf16 %v1787_v29  ;;  %v1915_v28 = vunpack.c.l.s8.bf16 %v1803_v24 }
 0x306   : > { %v1453_v57 = vadd.f32 %v1447_v52, %v1401_v44  ;;  %v1890_v40 = vunpack.c.l.s8.bf16 %v1790_v49  ;;  %v1791_v44 = vld [vmem:[%s4646_s19 + $0x30] sm:$0xff]  ;;  %v1889_v52 = vunpack.c.l.s8.bf16 %v1789_v42  ;;  %v1894_v46 = vunpack.c.h.s8.bf16 %v1790_v49 }
 0x307   : > { %v1503_v58 = vadd.f32 %v1497_v48, %v1452_v47  ;;  %2203 = vmatpush1.bf16.msra.mxu0 %v1883_v32  ;;  %v1891_v45 = vunpack.c.l.s8.bf16 %v1791_v44  ;;  %v1794_v47 = vld [vmem:[%s4646_s19 + $0x48] sm:$0xff]  ;;  %v1796_v48 = vld [vmem:[%s4646_s19 + $0x58] sm:$0xff]  ;;  %v1893_v50 = vunpack.c.h.s8.bf16 %v1789_v42  ;;  %v1895_v53 = vunpack.c.h.s8.bf16 %v1791_v44 }
 0x308   : > { %v1504_v61 = vadd.f32 %v1498_v5, %v1453_v57  ;;  %2204 = vmatprep.subr.bf16.mxu0 %v1888_v37  ;;  %2083 = vmatprep.subr.bf16.mxu1 %v1890_v40  ;;  %v1898_v55 = vunpack.c.l.s8.bf16 %v1794_v47  ;;  %v1900_v57 = vunpack.c.l.s8.bf16 %v1796_v48  ;;  %v1793_v5 = vld [vmem:[%s4646_s19 + $0x40] sm:$0xff]  ;;  %v1902_v60 = vunpack.c.h.s8.bf16 %v1794_v47 }
 0x309   : > { %v1554_v51 = vadd.f32 %v1548_v56, %v1503_v58  ;;  %2084 = vmatpush1.bf16.msra.mxu1 %v1889_v52  ;;  %v1897_v58 = vunpack.c.l.s8.bf16 %v1793_v5  ;;  %v1899_v56 = vunpack.c.l.s8.bf16 %v1795_v16  ;;  %v1919_v32 = vunpack.c.h.s8.bf16 %v1803_v24 }
 0x30a   : > { %v1555_v36 = vadd.f32 %v1549_v62, %v1504_v61  ;;  %2085 = vmatprep.subr.bf16.mxu1 %v1894_v46  ;;  %v1904_v61 = vunpack.c.h.s8.bf16 %v1796_v48  ;;  %v1798_v62 = vld [vmem:[%s4646_s19 + $0x68] sm:$0xff] }
 0x30b   : > { %v1605_v11 = vadd.f32 %v1599_v7, %v1554_v51  ;;  %2205 = vmatpush1.bf16.msra.mxu0 %v1887_v39  ;;  %v1901_v51 = vunpack.c.h.s8.bf16 %v1793_v5  ;;  %v1903_v7 = vunpack.c.h.s8.bf16 %v1795_v16  ;;  %v1910_v12 = vunpack.c.h.s8.bf16 %v1798_v62  ;;  %v1806_v5 = vld [vmem:[%s4646_s19 + $0xa8] sm:$0xff]  ;;  %v1808_v16 = vld [vmem:[%s4646_s19 + $0xb8] sm:$0xff] }
 0x30c   : > { %v1606_v25 = vadd.f32 %v1600_v35, %v1555_v36  ;;  %2206 = vmatprep.subr.bf16.mxu0 %v1892_v2  ;;  %v1908_v36 = vunpack.c.l.s8.bf16 %v1800_v3  ;;  %v1797_v35 = vld [vmem:[%s4646_s19 + $0x60] sm:$0xff] }
 0x30d   : > { %v4637_v13 = vadd.f32 %v1630_v21, %v1605_v11  ;;  %2086 = vmatpush1.bf16.msra.mxu1 %v1893_v50  ;;  %v1906_v21 = vunpack.c.l.s8.bf16 %v1798_v62  ;;  %v1905_v9 = vunpack.c.l.s8.bf16 %v1797_v35 }
 0x30e   : > { %v4639_v14 = vadd.f32 %v1634_v1, %v1606_v25  ;;  %2087 = vmatprep.subr.bf16.mxu1 %v1898_v55  ;;  %v1799_v1 = vld [vmem:[%s4646_s19 + $0x70] sm:$0xff]  ;;  %v1912_v25 = vunpack.c.h.s8.bf16 %v1800_v3 }
 0x30f   : > { %v1663_v19 = vsel %vm1655_vm0, %v4637_v13, 0.0  ;;  %2207 = vmatpush1.bf16.msra.mxu0 %v1891_v45  ;;  %v1907_v11 = vunpack.c.l.s8.bf16 %v1799_v1 }
 0x310   : > { %v1664_v20 = vadd.f32 %v1663_v19, %v1662_v18  ;;  %v1665_v54 = vsel %vm1655_vm0, %v4639_v14, 0.0  ;;  %2208 = vmatprep.subr.bf16.mxu0 %v1896_v59  ;;  %v1802_v18 = vld [vmem:[%s4646_s19 + $0x88] sm:$0xff]  ;;  %v1804_v19 = vld [vmem:[%s4646_s19 + $0x98] sm:$0xff] }
 0x311   : > { %2088 = vmatpush1.bf16.msra.mxu1 %v1897_v58  ;;  %v1916_v6 = vunpack.c.l.s8.bf16 %v1804_v19  ;;  %v1918_v26 = vunpack.c.h.s8.bf16 %v1802_v18  ;;  %v1920_v29 = vunpack.c.h.s8.bf16 %v1804_v19  ;;  %v1922_v58 = vunpack.c.l.s8.bf16 %v1806_v5 }
 0x312   : > { %v1666_v22 = vadd.f32 %v1665_v54, %v1664_v20  ;;  %2089 = vmatprep.subr.bf16.mxu1 %v1902_v60  ;;  %v1909_v20 = vunpack.c.h.s8.bf16 %v1797_v35  ;;  %v1911_v54 = vunpack.c.h.s8.bf16 %v1799_v1  ;;  %v1805_v60 = vld [vmem:[%s4646_s19 + $0xa0] sm:$0xff]  ;;  %v1810_v35 = vld [vmem:[%s4646_s19 + $0xc8] sm:$0xff]  ;;  %v1812_v1 = vld [vmem:[%s4646_s19 + $0xd8] sm:$0xff] }
 0x313   : > { %2209 = vmatpush1.bf16.msra.mxu0 %v1895_v53  ;;  %v1921_v62 = vunpack.c.l.s8.bf16 %v1805_v60 }
 0x314   : > { %1667 = vadd.xlane.f32.xlu1 %v1666_v22  ;;  %2210 = vmatprep.subr.bf16.mxu0 %v1900_v57  ;;  %v1914_v22 = vunpack.c.l.s8.bf16 %v1802_v18 }
 0x315   : > { %2090 = vmatpush1.bf16.msra.mxu1 %v1901_v51  ;;  %v1926_v51 = vunpack.c.h.s8.bf16 %v1806_v5 }
 0x316   : > { %2091 = vmatprep.subr.bf16.mxu1 %v1906_v21  ;;  %v1925_v21 = vunpack.c.h.s8.bf16 %v1805_v60 }
 0x317   : > { %2211 = vmatpush1.bf16.msra.mxu0 %v1899_v56  ;;  %v1924_v56 = vunpack.c.l.s8.bf16 %v1808_v16 }
 0x318   : > { %2212 = vmatprep.subr.bf16.mxu0 %v1904_v61  ;;  %v1807_v61 = vld [vmem:[%s4646_s19 + $0xb0] sm:$0xff] }
 0x319   : > { %2092 = vmatpush1.bf16.msra.mxu1 %v1905_v9  ;;  %v1923_v3 = vunpack.c.l.s8.bf16 %v1807_v61  ;;  %v1809_v9 = vld [vmem:[%s4646_s19 + $0xc0] sm:$0xff] }
 0x31a   : > { %2093 = vmatprep.subr.bf16.mxu1 %v1910_v12  ;;  %v1932_v12 = vunpack.c.l.s8.bf16 %v1812_v1  ;;  %v1929_v18 = vunpack.c.l.s8.bf16 %v1809_v9  ;;  %v1933_v23 = vunpack.c.h.s8.bf16 %v1809_v9 }
 0x31b   : > { %2213 = vmatpush1.bf16.msra.mxu0 %v1903_v7  ;;  %v1928_v7 = vunpack.c.h.s8.bf16 %v1808_v16 }
 0x31c   : > { %2214 = vmatprep.subr.bf16.mxu0 %v1908_v36  ;;  %v1927_v36 = vunpack.c.h.s8.bf16 %v1807_v61 }
 0x31d   : > { %2094 = vmatpush1.bf16.msra.mxu1 %v1909_v20  ;;  %v1934_v20 = vunpack.c.h.s8.bf16 %v1810_v35 }
 0x31e   : > { %2095 = vmatprep.subr.bf16.mxu1 %v1914_v22  ;;  %v1814_v22 = vld [vmem:[%s4646_s19 + $0xe8] sm:$0xff] }
 0x31f   : > { %2215 = vmatpush1.bf16.msra.mxu0 %v1907_v11  ;;  %v1930_v11 = vunpack.c.l.s8.bf16 %v1810_v35 }
 0x320   : > { %2216 = vmatprep.subr.bf16.mxu0 %v1912_v25  ;;  %v1811_v25 = vld [vmem:[%s4646_s19 + $0xd0] sm:$0xff] }
 0x321   : > { %2096 = vmatpush1.bf16.msra.mxu1 %v1913_v27  ;;  %v1931_v19 = vunpack.c.l.s8.bf16 %v1811_v25  ;;  %v1935_v24 = vunpack.c.h.s8.bf16 %v1811_v25  ;;  %v1938_v27 = vunpack.c.l.s8.bf16 %v1814_v22 }
 0x322   : > { %2097 = vmatprep.subr.bf16.mxu1 %v1918_v26  ;;  %v1813_v26 = vld [vmem:[%s4646_s19 + $0xe0] sm:$0xff] }
 0x323   : > { %2217 = vmatpush1.bf16.msra.mxu0 %v1911_v54  ;;  %v1936_v54 = vunpack.c.h.s8.bf16 %v1812_v1 }
 0x324   : > { %2218 = vmatprep.subr.bf16.mxu0 %v1916_v6  ;;  %v1816_v6 = vld [vmem:[%s4646_s19 + $0xf8] sm:$0xff] }
 0x325   : > { %2098 = vmatpush1.bf16.msra.mxu1 %v1917_v30  ;;  %v1937_v30 = vunpack.c.l.s8.bf16 %v1813_v26 }
 0x326   : > { %2099 = vmatprep.subr.bf16.mxu1 %v1922_v58 }
 0x327   : > { %2219 = vmatpush1.bf16.msra.mxu0 %v1915_v28  ;;  %v1940_v28 = vunpack.c.l.s8.bf16 %v1816_v6 }
 0x328   : > { %2220 = vmatprep.subr.bf16.mxu0 %v1920_v29  ;;  %v1815_v29 = vld [vmem:[%s4646_s19 + $0xf0] sm:$0xff] }
 0x329   : > { %2100 = vmatpush1.bf16.msra.mxu1 %v1921_v62 }
 0x32a   : > { %2101 = vmatprep.subr.bf16.mxu1 %v1926_v51 }
 0x32b   : > { %2221 = vmatpush1.bf16.msra.mxu0 %v1919_v32  ;;  %v1939_v32 = vunpack.c.l.s8.bf16 %v1815_v29 }
 0x32c   : > { %2222 = vmatprep.subr.bf16.mxu0 %v1924_v56 }
 0x32d   : > { %2102 = vmatpush1.bf16.msra.mxu1 %v1925_v21 }
 0x32e   : > { %2103 = vmatprep.subr.bf16.mxu1 %v1930_v11 }
 0x32f   : > { %2223 = vmatpush1.bf16.msra.mxu0 %v1923_v3 }
 0x330   : > { %2224 = vmatprep.subr.bf16.mxu0 %v1928_v7 }
 0x331   : > { %2104 = vmatpush1.bf16.msra.mxu1 %v1929_v18 }
 0x332   : > { %2105 = vmatprep.subr.bf16.mxu1 %v1934_v20 }
 0x333   : > { %2225 = vmatpush1.bf16.msra.mxu0 %v1927_v36 }
 0x334   : > { %2226 = vmatprep.subr.bf16.mxu0 %v1932_v12 }
 0x335   : > { %2106 = vmatpush1.bf16.msra.mxu1 %v1933_v23 }
 0x336   : > { %2107 = vmatprep.subr.bf16.mxu1 %v1938_v27 }
 0x337   : > { %2227 = vmatpush1.bf16.msra.mxu0 %v1931_v19 }
 0x338   : > { %2228 = vmatprep.subr.bf16.mxu0 %v1936_v54 }
 0x339   : > { %2108 = vmatpush1.bf16.msra.mxu1 %v1937_v30 }
 0x33b   : > { %2229 = vmatpush1.bf16.msra.mxu0 %v1935_v24 }
 0x33c   : > { %2230 = vmatprep.subr.bf16.mxu0 %v1940_v28 }
 0x33f   : > { %2231 = vmatpush1.bf16.msra.mxu0 %v1939_v32 }
 0x3a1   : > { %v1668_v37 = vpop.xlane.xlu1 %1667 }
 0x3a2   : > { %v1670_v49 = vmul.f32 0.0013020834, %v1668_v37  ;;  %v1942_v37 = vunpack.c.h.s8.bf16 %v1814_v22  ;;  %v1817_v22 = vld [vmem:[%s4646_s19 + $0x100] sm:$0xff] }
 0x3a4   : > { %v4669_v38 = vsub.f32 %v4595_v31, %v1670_v49  ;;  %v4672_v0 = vsub.f32 %v4599_v33, %v1670_v49  ;;  %v4675_v39 = vsub.f32 %v4608_v43, %v1670_v49  ;;  %v4678_v40 = vsub.f32 %v4624_v41, %v1670_v49  ;;  %2109 = vmatprep.subr.bf16.mxu1 %v1942_v37 }
 0x3a5   : > { %v4681_v2 = vsub.f32 %v4637_v13, %v1670_v49  ;;  %v4690_v33 = vsub.f32 %v4639_v14, %v1670_v49  ;;  %v1944_v49 = vunpack.c.h.s8.bf16 %v1816_v6 }
 0x3a6   : > { %v1677_v42 = vmul.f32 %v4669_v38, %v4669_v38  ;;  %v1678_v44 = vmul.f32 %v4672_v0, %v4672_v0  ;;  %v1679_v31 = vmul.f32 %v4675_v39, %v4675_v39  ;;  %v1680_v43 = vmul.f32 %v4678_v40, %v4678_v40 }
 0x3a7   : > { %v1681_v45 = vmul.f32 %v4681_v2, %v4681_v2  ;;  %v1682_v14 = vmul.f32 %v4690_v33, %v4690_v33  ;;  %2232 = vmatprep.subr.bf16.mxu0 %v1944_v49  ;;  %v1822_v49 = vld [vmem:[%s4646_s19 + $0x128] sm:$0xff] }
 0x3a8   : > { %v1683_v41 = vsel %vm1655_vm0, %v1677_v42, 0.0  ;;  %v1684_v13 = vsel %vm1655_vm0, %v1678_v44, 0.0  ;;  %v1686_v46 = vsel %vm1655_vm0, %v1679_v31, 0.0  ;;  %v1688_v47 = vsel %vm1655_vm0, %v1680_v43, 0.0  ;;  %v4717_v31 = vld [vmem:[%s4646_s19 + $0x108] sm:$0xff]  ;;  %v4720_v43 = vld [vmem:[%s4646_s19 + $0x118] sm:$0xff] }
 0x3a9   : > { %v1685_v52 = vadd.f32 %v1684_v13, %v1683_v41  ;;  %v1690_v50 = vsel %vm1655_vm0, %v1681_v45, 0.0  ;;  %v1692_v55 = vsel %vm1655_vm0, %v1682_v14, 0.0  ;;  %v1941_v42 = vunpack.c.h.s8.bf16 %v1813_v26  ;;  %v3373_v14 = vld [vmem:[%s4261_s4 + $0x1] ss:$8 sm:$0x30] }
 0x3aa   : > { %v1943_v44 = vunpack.c.h.s8.bf16 %v1815_v29  ;;  %v1946_v41 = vunpack.c.l.s8.bf16 %v4717_v31  ;;  %v1948_v13 = vunpack.c.l.s8.bf16 %v4720_v43  ;;  %v1945_v26 = vunpack.c.l.s8.bf16 %v1817_v22 }
 0x3ab   : > { %v1687_v59 = vadd.f32 %v1686_v46, %v1685_v52  ;;  %2110 = vmatpush1.bf16.msra.mxu1 %v1941_v42  ;;  %v1950_v32 = vunpack.c.h.s8.bf16 %v4717_v31  ;;  %v1952_v37 = vunpack.c.h.s8.bf16 %v4720_v43  ;;  %v1823_v31 = vld [vmem:[%s4646_s19 + $0x130] sm:$0xff] }
 0x3ac   : > { %2233 = vmatpush1.bf16.msra.mxu0 %v1943_v44  ;;  %2120 = vmatprep.subr.bf16.mxu1 %v1946_v41  ;;  %v1949_v44 = vunpack.c.h.s8.bf16 %v1817_v22  ;;  %v1833_v22 = vld [vmem:[%s4646_s19 + $0x180] sm:$0xff] }
 0x3ad   : > { %v1689_v48 = vadd.f32 %v1688_v47, %v1687_v59  ;;  %2243 = vmatprep.subr.bf16.mxu0 %v1948_v13  ;;  %v3372_v59 = vld [vmem:[%s4261_s4 + $0x1] ss:$8 sm:$0xf]  ;;  %v3374_v47 = vld [vmem:[%s4261_s4 + $0x2] ss:$8 sm:$0xf]  ;;  %v1954_v13 = vunpack.c.l.s8.bf16 %v1822_v49 }
 0x3af   : > { %v1691_v53 = vadd.f32 %v1690_v50, %v1689_v48  ;;  %v3375_v48 = vld [vmem:[%s4261_s4 + $0x2] ss:$8 sm:$0x30]  ;;  %v1650_v50 = vor.u32 %v3373_v14, %v3372_v59  ;;  %v1958_v59 = vunpack.c.h.s8.bf16 %v1822_v49 }
 0x3b0   : > { %v1839_v49 = vld [vmem:[%s4646_s19 + $0x1b0] sm:$0xff] }
 0x3b1   : > { %v1693_v57 = vadd.f32 %v1692_v55, %v1691_v53  ;;  %v1654_v53 = vor.u32 %v3375_v48, %v3374_v47  ;;  %v1713_v55 = vrot.slane %v1650_v50, %v4483_v63  ;;  %v1709_v5 = vrot.slane %v1650_v50, %v4480_v15  ;;  %v1826_v47 = vld [vmem:[%s4646_s19 + $0x148] sm:$0xff]  ;;  %v1828_v48 = vld [vmem:[%s4646_s19 + $0x158] sm:$0xff] }
 0x3b2   : > { %v1721_v16 = vrot.slane %v1650_v50, %v4509_v10  ;;  %v1717_v58 = vrot.slane %v1650_v50, %v4492_v4  ;;  %v1729_v3 = vrot.slane %v1650_v50, %v4578_v17 }
 0x3b3   : > { %1694 = vadd.xlane.f32.xlu0 %v1693_v57  ;;  %v1750_v57 = vrot.slane %v1654_v53, %v4483_v63  ;;  %v1746_v60 = vrot.slane %v1654_v53, %v4480_v15  ;;  %v1758_v61 = vrot.slane %v1654_v53, %v4509_v10  ;;  %v1754_v62 = vrot.slane %v1654_v53, %v4492_v4 }
 0x3b4   : > { %v1766_v1 = vrot.slane %v1654_v53, %v4578_v17  ;;  %v1762_v17 = vrot.slane %v1654_v53, %v4573_v8  ;;  %v1959_v53 = vunpack.c.h.s8.bf16 %v1823_v31 }
 0x440   : > { %v1695_v52 = vpop.xlane.xlu0 %1694 }
 0x441   : > { %v1696_v45 = vmul.f32 0.0013020834, %v1695_v52 }
 0x443   : > { %v1697_v46 = vadd.f32 1e-05, %v1696_v45  ;;  %v1821_v45 = vld [vmem:[%s4646_s19 + $0x120] sm:$0xff] }
 0x444   : > { %v1953_v43 = vunpack.c.l.s8.bf16 %v1821_v45 }
 0x445   : > { %3611 = vrsqrt.f32 %v1697_v46  ;;  %v1955_v46 = vunpack.c.l.s8.bf16 %v1823_v31  ;;  %v1991_v31 = vunpack.c.h.s8.bf16 %v1839_v49 }
 0x44f   : > { %v3612_v56 = vpop.eup %3611 }
 0x450   : > { %v1700_v51 = vmul.f32 %v3612_v56, %v4672_v0  ;;  %v1699_v7 = vmul.f32 %v3612_v56, %v4669_v38  ;;  %v1702_v21 = vmul.f32 %v3612_v56, %v4678_v40  ;;  %v1701_v36 = vmul.f32 %v3612_v56, %v4675_v39  ;;  %v1819_v39 = vld [vmem:[%s4646_s19 + $0x110] sm:$0xff] }
 0x451   : > { %v1704_v35 = vmul.f32 %v3612_v56, %v4690_v33  ;;  %v1703_v19 = vmul.f32 %v3612_v56, %v4681_v2  ;;  %v1725_v0 = vrot.slane %v1650_v50, %v4573_v8  ;;  %v1947_v29 = vunpack.c.l.s8.bf16 %v1819_v39  ;;  %v1824_v8 = vld [vmem:[%s4646_s19 + $0x138] sm:$0xff] }
 0x452   : > { %v1737_v9 = vmul.f32 %v1713_v55, %v1700_v51  ;;  %v1736_v11 = vmul.f32 %v1709_v5, %v1699_v7  ;;  %v1739_v12 = vmul.f32 %v1721_v16, %v1702_v21  ;;  %v1738_v25 = vmul.f32 %v1717_v58, %v1701_v36  ;;  %v1825_v5 = vld [vmem:[%s4646_s19 + $0x140] sm:$0xff]  ;;  %v1827_v16 = vld [vmem:[%s4646_s19 + $0x150] sm:$0xff] }
 0x453   : > { %v1741_v18 = vmul.f32 %v1729_v3, %v1704_v35  ;;  %v1740_v27 = vmul.f32 %v1725_v0, %v1703_v19  ;;  %v1951_v41 = vunpack.c.h.s8.bf16 %v1819_v39  ;;  %v1956_v52 = vunpack.c.l.s8.bf16 %v1824_v8  ;;  %v1832_v3 = vld [vmem:[%s4646_s19 + $0x178] sm:$0xff]  ;;  %v1829_v35 = vld [vmem:[%s4646_s19 + $0x160] sm:$0xff]  ;;  %v1835_v39 = vld [vmem:[%s4646_s19 + $0x190] sm:$0xff] }
 0x454   : > { %v1774_v38 = vadd.f32 %v1750_v57, %v1737_v9  ;;  %v1773_v20 = vadd.f32 %v1746_v60, %v1736_v11  ;;  %v1776_v54 = vadd.f32 %v1758_v61, %v1739_v12  ;;  %v4745_v40 = vadd.f32 %v1754_v62, %v1738_v25  ;;  %v1830_v62 = vld [vmem:[%s4646_s19 + $0x168] sm:$0xff]  ;;  %v1836_v19 = vld [vmem:[%s4646_s19 + $0x198] sm:$0xff] }
 0x455   : > { %v4749_v33 = vadd.f32 %v1766_v1, %v1741_v18  ;;  %v4752_v30 = vadd.f32 %v1762_v17, %v1740_v27  ;;  %v1960_v14 = vunpack.c.h.s8.bf16 %v1824_v8  ;;  %v1957_v50 = vunpack.c.h.s8.bf16 %v1821_v45  ;;  %v1831_v1 = vld [vmem:[%s4646_s19 + $0x170] sm:$0xff]  ;;  %v1834_v18 = vld [vmem:[%s4646_s19 + $0x188] sm:$0xff] }
 0x456   : > { %v1780_v6 = vmax.f32 %v1774_v38, 0.0  ;;  %v1779_v23 = vmax.f32 %v1773_v20, 0.0  ;;  %v1782_v24 = vmax.f32 %v1776_v54, 0.0  ;;  %v1962_v55 = vunpack.c.l.s8.bf16 %v1826_v47  ;;  %v1838_v27 = vld [vmem:[%s4646_s19 + $0x1a8] sm:$0xff] }
 0x457   : > { %v1964_v57 = vunpack.c.l.s8.bf16 %v1828_v48  ;;  %v1961_v58 = vunpack.c.l.s8.bf16 %v1825_v5  ;;  %v1963_v56 = vunpack.c.l.s8.bf16 %v1827_v16  ;;  %v1966_v60 = vunpack.c.h.s8.bf16 %v1826_v47 }
 0x458   : > { %v2074_v2 = vpack.c.bf16 %v1780_v6, %v1780_v6  ;;  %v2073_v28 = vpack.c.bf16 %v1779_v23, %v1779_v23  ;;  %v2076_v42 = vpack.c.bf16 %v1782_v24, %v1782_v24  ;;  %v1968_v61 = vunpack.c.h.s8.bf16 %v1828_v48 }
 0x459   : > { %v1965_v51 = vunpack.c.h.s8.bf16 %v1825_v5  ;;  %v1967_v7 = vunpack.c.h.s8.bf16 %v1827_v16  ;;  %v1970_v21 = vunpack.c.l.s8.bf16 %v1830_v62  ;;  %v1972_v36 = vunpack.c.l.s8.bf16 %v1832_v3 }
 0x45a   : > { %2111 = vmatprep.mubr.bf16.mxu1 %v2074_v2  ;;  %2234 = vmatprep.mubr.bf16.mxu0 %v2074_v2  ;;  %v1969_v9 = vunpack.c.l.s8.bf16 %v1829_v35  ;;  %v1971_v11 = vunpack.c.l.s8.bf16 %v1831_v1  ;;  %v1974_v12 = vunpack.c.h.s8.bf16 %v1830_v62  ;;  %v1976_v25 = vunpack.c.h.s8.bf16 %v1832_v3  ;;  %v1840_v2 = vld [vmem:[%s4646_s19 + $0x1b8] sm:$0xff] }
 0x45b   : > { %2112 = vmatmul.mubr.bf16.vlgmr.msra.gmra.mrb[8].mxu1 %v2073_v28  ;;  %2235 = vmatmul.mubr.bf16.vlgmr.msra.gmra.mrb[8].mxu0 %v2073_v28  ;;  %v1973_v0 = vunpack.c.h.s8.bf16 %v1829_v35  ;;  %v1975_v38 = vunpack.c.h.s8.bf16 %v1831_v1  ;;  %v1978_v20 = vunpack.c.l.s8.bf16 %v1834_v18  ;;  %v1980_v54 = vunpack.c.l.s8.bf16 %v1836_v19 }
 0x45c   : > { %2121 = vmatpush1.bf16.msra.mxu1 %v1945_v26  ;;  %2244 = vmatpush1.bf16.msra.mxu0 %v1947_v29  ;;  %v1977_v17 = vunpack.c.l.s8.bf16 %v1833_v22  ;;  %v1979_v6 = vunpack.c.l.s8.bf16 %v1835_v39  ;;  %v1982_v23 = vunpack.c.h.s8.bf16 %v1834_v18  ;;  %v1984_v24 = vunpack.c.h.s8.bf16 %v1836_v19  ;;  %v1851_v19 = vld [vmem:[%s4646_s19 + $0x210] sm:$0xff] }
 0x45d   : > { %2152 = vmatprep.mubr.bf16.mxu1 %v2076_v42  ;;  %2275 = vmatprep.mubr.bf16.mxu0 %v2076_v42  ;;  %v1981_v28 = vunpack.c.h.s8.bf16 %v1833_v22  ;;  %v1983_v26 = vunpack.c.h.s8.bf16 %v1835_v39  ;;  %v1986_v29 = vunpack.c.l.s8.bf16 %v1838_v27  ;;  %v1987_v42 = vunpack.c.l.s8.bf16 %v1839_v49  ;;  %v1860_v49 = vld [vmem:[%s4646_s19 + $0x258] sm:$0xff] }
 0x45e   : > { %2122 = vmatprep.subr.bf16.mxu1 %v1950_v32  ;;  %2245 = vmatprep.subr.bf16.mxu0 %v1952_v37  ;;  %v1988_v32 = vunpack.c.l.s8.bf16 %v1840_v2  ;;  %v1837_v37 = vld [vmem:[%s4646_s19 + $0x1a0] sm:$0xff]  ;;  %v1784_v18 = vmax.f32 %v4749_v33, 0.0 }
 0x45f   : > { %v1985_v8 = vunpack.c.l.s8.bf16 %v1837_v37  ;;  %v1989_v45 = vunpack.c.h.s8.bf16 %v1837_v37  ;;  %v1858_v37 = vld [vmem:[%s4646_s19 + $0x248] sm:$0xff] }
 0x460   : > { %2123 = vmatpush1.bf16.msra.mxu1 %v1949_v44  ;;  %2246 = vmatpush1.bf16.msra.mxu0 %v1951_v41  ;;  %v1990_v44 = vunpack.c.h.s8.bf16 %v1838_v27  ;;  %v1992_v41 = vunpack.c.h.s8.bf16 %v1840_v2  ;;  %v1855_v2 = vld [vmem:[%s4646_s19 + $0x230] sm:$0xff] }
 0x461   : > { %2124 = vmatprep.subr.bf16.mxu1 %v1954_v13  ;;  %2247 = vmatprep.subr.bf16.mxu0 %v1956_v52  ;;  %v1842_v13 = vld [vmem:[%s4646_s19 + $0x1c8] sm:$0xff]  ;;  %v1844_v52 = vld [vmem:[%s4646_s19 + $0x1d8] sm:$0xff] }
 0x464   : > { %2125 = vmatpush1.bf16.msra.mxu1 %v1953_v43  ;;  %2248 = vmatpush1.bf16.msra.mxu0 %v1955_v46  ;;  %v1994_v43 = vunpack.c.l.s8.bf16 %v1842_v13  ;;  %v1996_v46 = vunpack.c.l.s8.bf16 %v1844_v52 }
 0x465   : > { %2126 = vmatprep.subr.bf16.mxu1 %v1958_v59  ;;  %2249 = vmatprep.subr.bf16.mxu0 %v1960_v14  ;;  %v1841_v59 = vld [vmem:[%s4646_s19 + $0x1c0] sm:$0xff]  ;;  %v1843_v14 = vld [vmem:[%s4646_s19 + $0x1d0] sm:$0xff] }
 0x466   : > { %v1993_v47 = vunpack.c.l.s8.bf16 %v1841_v59  ;;  %v1995_v48 = vunpack.c.l.s8.bf16 %v1843_v14  ;;  %v1997_v5 = vunpack.c.h.s8.bf16 %v1841_v59  ;;  %v1999_v16 = vunpack.c.h.s8.bf16 %v1843_v14  ;;  %v1862_v59 = vld [vmem:[%s4646_s19 + $0x268] sm:$0xff]  ;;  %v1864_v14 = vld [vmem:[%s4646_s19 + $0x278] sm:$0xff] }
 0x468   : > { %2127 = vmatpush1.bf16.msra.mxu1 %v1957_v50  ;;  %2250 = vmatpush1.bf16.msra.mxu0 %v1959_v53  ;;  %v1998_v50 = vunpack.c.h.s8.bf16 %v1842_v13  ;;  %v2000_v53 = vunpack.c.h.s8.bf16 %v1844_v52  ;;  %v2028_v13 = vunpack.c.l.s8.bf16 %v1860_v49  ;;  %v1859_v52 = vld [vmem:[%s4646_s19 + $0x250] sm:$0xff] }
 0x469   : > { %2128 = vmatprep.subr.bf16.mxu1 %v1962_v55  ;;  %2251 = vmatprep.subr.bf16.mxu0 %v1964_v57  ;;  %v1846_v55 = vld [vmem:[%s4646_s19 + $0x1e8] sm:$0xff]  ;;  %v1848_v57 = vld [vmem:[%s4646_s19 + $0x1f8] sm:$0xff] }
 0x46c   : > { %2129 = vmatpush1.bf16.msra.mxu1 %v1961_v58  ;;  %2252 = vmatpush1.bf16.msra.mxu0 %v1963_v56  ;;  %v2002_v58 = vunpack.c.l.s8.bf16 %v1846_v55  ;;  %v2004_v56 = vunpack.c.l.s8.bf16 %v1848_v57 }
 0x46d   : > { %2130 = vmatprep.subr.bf16.mxu1 %v1966_v60  ;;  %2253 = vmatprep.subr.bf16.mxu0 %v1968_v61  ;;  %v1845_v60 = vld [vmem:[%s4646_s19 + $0x1e0] sm:$0xff]  ;;  %v1847_v61 = vld [vmem:[%s4646_s19 + $0x1f0] sm:$0xff] }
 0x46e   : > { %v2001_v62 = vunpack.c.l.s8.bf16 %v1845_v60  ;;  %v2003_v3 = vunpack.c.l.s8.bf16 %v1847_v61  ;;  %v2005_v35 = vunpack.c.h.s8.bf16 %v1845_v60  ;;  %v2007_v1 = vunpack.c.h.s8.bf16 %v1847_v61  ;;  %v1866_v60 = vld [vmem:[%s4646_s19 + $0x288] sm:$0xff]  ;;  %v1868_v61 = vld [vmem:[%s4646_s19 + $0x298] sm:$0xff] }
 0x470   : > { %2131 = vmatpush1.bf16.msra.mxu1 %v1965_v51  ;;  %2254 = vmatpush1.bf16.msra.mxu0 %v1967_v7  ;;  %v2006_v51 = vunpack.c.h.s8.bf16 %v1846_v55  ;;  %v2008_v7 = vunpack.c.h.s8.bf16 %v1848_v57  ;;  %v2036_v55 = vunpack.c.l.s8.bf16 %v1864_v14  ;;  %v1863_v57 = vld [vmem:[%s4646_s19 + $0x270] sm:$0xff] }
 0x471   : > { %2132 = vmatprep.subr.bf16.mxu1 %v1970_v21  ;;  %2255 = vmatprep.subr.bf16.mxu0 %v1972_v36  ;;  %v1850_v21 = vld [vmem:[%s4646_s19 + $0x208] sm:$0xff]  ;;  %v1852_v36 = vld [vmem:[%s4646_s19 + $0x218] sm:$0xff] }
 0x472   : > { %v2014_v22 = vunpack.c.h.s8.bf16 %v1850_v21  ;;  %v2016_v39 = vunpack.c.h.s8.bf16 %v1852_v36 }
 0x474   : > { %2133 = vmatpush1.bf16.msra.mxu1 %v1969_v9  ;;  %2256 = vmatpush1.bf16.msra.mxu0 %v1971_v11  ;;  %v1781_v9 = vmax.f32 %v4745_v40, 0.0  ;;  %v2010_v11 = vunpack.c.l.s8.bf16 %v1850_v21  ;;  %v1854_v40 = vld [vmem:[%s4646_s19 + $0x228] sm:$0xff]  ;;  %v2044_v21 = vunpack.c.l.s8.bf16 %v1868_v61 }
 0x475   : > { %2134 = vmatprep.subr.bf16.mxu1 %v1974_v12  ;;  %2257 = vmatprep.subr.bf16.mxu0 %v1976_v25  ;;  %v2012_v12 = vunpack.c.l.s8.bf16 %v1852_v36  ;;  %v1849_v25 = vld [vmem:[%s4646_s19 + $0x200] sm:$0xff]  ;;  %v1867_v36 = vld [vmem:[%s4646_s19 + $0x290] sm:$0xff] }
 0x476   : > { %v2013_v33 = vunpack.c.h.s8.bf16 %v1849_v25 }
 0x478   : > { %2135 = vmatpush1.bf16.msra.mxu1 %v1973_v0  ;;  %2258 = vmatpush1.bf16.msra.mxu0 %v1975_v38  ;;  %v2009_v0 = vunpack.c.l.s8.bf16 %v1849_v25  ;;  %v2075_v38 = vpack.c.bf16 %v1781_v9, %v1781_v9  ;;  %v2046_v9 = vunpack.c.h.s8.bf16 %v1866_v60  ;;  %v1872_v25 = vld [vmem:[%s4646_s19 + $0x2b8] sm:$0xff] }
 0x479   : > { %2136 = vmatprep.subr.bf16.mxu1 %v1978_v20  ;;  %2259 = vmatprep.subr.bf16.mxu0 %v1980_v54  ;;  %v2011_v20 = vunpack.c.l.s8.bf16 %v1851_v19  ;;  %v2078_v54 = vpack.c.bf16 %v1784_v18, %v1784_v18 }
 0x47c   : > { %2137 = vmatpush1.bf16.msra.mxu1 %v1977_v17  ;;  %2260 = vmatpush1.bf16.msra.mxu0 %v1979_v6  ;;  %v1856_v17 = vld [vmem:[%s4646_s19 + $0x238] sm:$0xff]  ;;  %v2015_v6 = vunpack.c.h.s8.bf16 %v1851_v19  ;;  %v2047_v19 = vunpack.c.h.s8.bf16 %v1867_v36 }
 0x47d   : > { %2138 = vmatprep.subr.bf16.mxu1 %v1982_v23  ;;  %2261 = vmatprep.subr.bf16.mxu0 %v1984_v24  ;;  %v2018_v23 = vunpack.c.l.s8.bf16 %v1854_v40  ;;  %v1853_v24 = vld [vmem:[%s4646_s19 + $0x220] sm:$0xff]  ;;  %v2020_v27 = vunpack.c.l.s8.bf16 %v1856_v17 }
 0x480   : > { %2139 = vmatpush1.bf16.msra.mxu1 %v1981_v28  ;;  %2262 = vmatpush1.bf16.msra.mxu0 %v1983_v26  ;;  %v2017_v28 = vunpack.c.l.s8.bf16 %v1853_v24  ;;  %v2019_v26 = vunpack.c.l.s8.bf16 %v1855_v2 }
 0x481   : > { %2140 = vmatprep.subr.bf16.mxu1 %v1986_v29  ;;  %2263 = vmatprep.subr.bf16.mxu0 %v1988_v32  ;;  %v2022_v29 = vunpack.c.h.s8.bf16 %v1854_v40  ;;  %v2024_v32 = vunpack.c.h.s8.bf16 %v1856_v17  ;;  %v2056_v17 = vunpack.c.h.s8.bf16 %v1872_v25 }
 0x484   : > { %2141 = vmatpush1.bf16.msra.mxu1 %v1985_v8  ;;  %2264 = vmatpush1.bf16.msra.mxu0 %v1987_v42  ;;  %v2021_v8 = vunpack.c.h.s8.bf16 %v1853_v24  ;;  %v2023_v42 = vunpack.c.h.s8.bf16 %v1855_v2  ;;  %v1873_v2 = vld [vmem:[%s4646_s19 + $0x2c0] sm:$0xff] }
 0x485   : > { %2142 = vmatprep.subr.bf16.mxu1 %v1990_v44  ;;  %2265 = vmatprep.subr.bf16.mxu0 %v1992_v41  ;;  %v2026_v44 = vunpack.c.l.s8.bf16 %v1858_v37  ;;  %v1857_v41 = vld [vmem:[%s4646_s19 + $0x240] sm:$0xff] }
 0x488   : > { %2143 = vmatpush1.bf16.msra.mxu1 %v1989_v45  ;;  %2266 = vmatpush1.bf16.msra.mxu0 %v1991_v31  ;;  %v2025_v45 = vunpack.c.l.s8.bf16 %v1857_v41  ;;  %v2027_v31 = vunpack.c.l.s8.bf16 %v1859_v52 }
 0x489   : > { %2144 = vmatprep.subr.bf16.mxu1 %v1994_v43  ;;  %2267 = vmatprep.subr.bf16.mxu0 %v1996_v46  ;;  %v2030_v43 = vunpack.c.h.s8.bf16 %v1858_v37  ;;  %v2032_v46 = vunpack.c.h.s8.bf16 %v1860_v49 }
 0x48c   : > { %2145 = vmatpush1.bf16.msra.mxu1 %v1993_v47  ;;  %2268 = vmatpush1.bf16.msra.mxu0 %v1995_v48  ;;  %v2029_v47 = vunpack.c.h.s8.bf16 %v1857_v41  ;;  %v2031_v48 = vunpack.c.h.s8.bf16 %v1859_v52  ;;  %v1877_v52 = vld [vmem:[%s4646_s19 + $0x2e0] sm:$0xff] }
 0x48d   : > { %2146 = vmatprep.subr.bf16.mxu1 %v1998_v50  ;;  %2269 = vmatprep.subr.bf16.mxu0 %v2000_v53  ;;  %v2034_v50 = vunpack.c.l.s8.bf16 %v1862_v59  ;;  %v1861_v53 = vld [vmem:[%s4646_s19 + $0x260] sm:$0xff] }
 0x490   : > { %2147 = vmatpush1.bf16.msra.mxu1 %v1997_v5  ;;  %2270 = vmatpush1.bf16.msra.mxu0 %v1999_v16  ;;  %v2033_v5 = vunpack.c.l.s8.bf16 %v1861_v53  ;;  %v2035_v16 = vunpack.c.l.s8.bf16 %v1863_v57 }
 0x491   : > { %2148 = vmatprep.subr.bf16.mxu1 %v2002_v58  ;;  %2271 = vmatprep.subr.bf16.mxu0 %v2004_v56  ;;  %v2038_v58 = vunpack.c.h.s8.bf16 %v1862_v59  ;;  %v2040_v56 = vunpack.c.h.s8.bf16 %v1864_v14 }
 0x494   : > { %2149 = vmatpush1.bf16.msra.mxu1 %v2001_v62  ;;  %2272 = vmatpush1.bf16.msra.mxu0 %v2003_v3  ;;  %v2037_v62 = vunpack.c.h.s8.bf16 %v1861_v53  ;;  %v2039_v3 = vunpack.c.h.s8.bf16 %v1863_v57  ;;  %v3377_v57 = vld [vmem:[%s4261_s4 + $0x4] ss:$8 sm:$0xf] }
 0x495   : > { %2150 = vmatprep.subr.bf16.mxu1 %v2006_v51  ;;  %2273 = vmatprep.subr.bf16.mxu0 %v2008_v7  ;;  %v2042_v51 = vunpack.c.l.s8.bf16 %v1866_v60  ;;  %v1865_v7 = vld [vmem:[%s4646_s19 + $0x280] sm:$0xff] }
 0x496   : > { %v2045_v18 = vunpack.c.h.s8.bf16 %v1865_v7 }
 0x498   : > { %2151 = vmatpush1.bf16.msra.mxu1 %v2005_v35  ;;  %2274 = vmatpush1.bf16.msra.mxu0 %v2007_v1  ;;  %v2041_v35 = vunpack.c.l.s8.bf16 %v1865_v7  ;;  %v2043_v1 = vunpack.c.l.s8.bf16 %v1867_v36 }
 0x499   : > { %2161 = vmatprep.subr.bf16.mxu1 %v2010_v11  ;;  %2284 = vmatprep.subr.bf16.mxu0 %v2012_v12  ;;  %v2048_v11 = vunpack.c.h.s8.bf16 %v1868_v61  ;;  %v1870_v12 = vld [vmem:[%s4646_s19 + $0x2a8] sm:$0xff] }
 0x49a   : > { %v2054_v40 = vunpack.c.h.s8.bf16 %v1870_v12 }
 0x49b   : > { %2153 = vmatmul.mubr.bf16.vlgmr.msra.gmra.mrb[8].mxu1 %v2075_v38  ;;  %2276 = vmatmul.mubr.bf16.vlgmr.msra.gmra.mrb[8].mxu0 %v2075_v38  ;;  %v1869_v38 = vld [vmem:[%s4646_s19 + $0x2a0] sm:$0xff] }
 0x49c   : > { %2162 = vmatpush1.bf16.msra.mxu1 %v2009_v0  ;;  %2193 = vmatprep.mubr.bf16.mxu1 %v2078_v54  ;;  %v2050_v0 = vunpack.c.l.s8.bf16 %v1870_v12 }
 0x49d   : > { %2285 = vmatpush1.bf16.msra.mxu0 %v2011_v20  ;;  %2316 = vmatprep.mubr.bf16.mxu0 %v2078_v54  ;;  %v2052_v20 = vunpack.c.l.s8.bf16 %v1872_v25  ;;  %v1871_v54 = vld [vmem:[%s4646_s19 + $0x2b0] sm:$0xff] }
 0x49e   : > { %2163 = vmatprep.subr.bf16.mxu1 %v2014_v22  ;;  %2286 = vmatprep.subr.bf16.mxu0 %v2016_v39  ;;  %v2049_v22 = vunpack.c.l.s8.bf16 %v1869_v38  ;;  %v2051_v39 = vunpack.c.l.s8.bf16 %v1871_v54  ;;  %v2055_v24 = vunpack.c.h.s8.bf16 %v1871_v54 }
 0x4a0   : > { %2164 = vmatpush1.bf16.msra.mxu1 %v2013_v33  ;;  %v1874_v33 = vld [vmem:[%s4646_s19 + $0x2c8] sm:$0xff] }
 0x4a1   : > { %2287 = vmatpush1.bf16.msra.mxu0 %v2015_v6  ;;  %2165 = vmatprep.subr.bf16.mxu1 %v2018_v23  ;;  %v1876_v6 = vld [vmem:[%s4646_s19 + $0x2d8] sm:$0xff]  ;;  %v2053_v23 = vunpack.c.h.s8.bf16 %v1869_v38  ;;  %v2062_v37 = vunpack.c.h.s8.bf16 %v1874_v33 }
 0x4a2   : > { %2288 = vmatprep.subr.bf16.mxu0 %v2020_v27  ;;  %v2058_v27 = vunpack.c.l.s8.bf16 %v1874_v33  ;;  %v2064_v49 = vunpack.c.h.s8.bf16 %v1876_v6 }
 0x4a4   : > { %2166 = vmatpush1.bf16.msra.mxu1 %v2017_v28  ;;  %v2060_v28 = vunpack.c.l.s8.bf16 %v1876_v6 }
 0x4a5   : > { %2289 = vmatpush1.bf16.msra.mxu0 %v2019_v26  ;;  %2167 = vmatprep.subr.bf16.mxu1 %v2022_v29  ;;  %v1875_v26 = vld [vmem:[%s4646_s19 + $0x2d0] sm:$0xff]  ;;  %v2057_v29 = vunpack.c.l.s8.bf16 %v1873_v2 }
 0x4a6   : > { %2290 = vmatprep.subr.bf16.mxu0 %v2024_v32  ;;  %v2059_v32 = vunpack.c.l.s8.bf16 %v1875_v26  ;;  %v2063_v41 = vunpack.c.h.s8.bf16 %v1875_v26  ;;  %v2476_v26 = vld [vmem:[%s4846_s11 + $0x20] sm:$0xff] }
 0x4a8   : > { %2168 = vmatpush1.bf16.msra.mxu1 %v2021_v8  ;;  %v1878_v8 = vld [vmem:[%s4646_s19 + $0x2e8] sm:$0xff] }
 0x4a9   : > { %2291 = vmatpush1.bf16.msra.mxu0 %v2023_v42  ;;  %2169 = vmatprep.subr.bf16.mxu1 %v2026_v44  ;;  %v1880_v42 = vld [vmem:[%s4646_s19 + $0x2f8] sm:$0xff]  ;;  %v2061_v44 = vunpack.c.h.s8.bf16 %v1873_v2  ;;  %v2070_v59 = vunpack.c.h.s8.bf16 %v1878_v8 }
 0x4aa   : > { %2292 = vmatprep.subr.bf16.mxu0 %v2028_v13  ;;  %v2066_v13 = vunpack.c.l.s8.bf16 %v1878_v8  ;;  %v2072_v14 = vunpack.c.h.s8.bf16 %v1880_v42  ;;  %v2530_v8 = vunpack.c.h.s8.bf16 %v2476_v26 }
 0x4ac   : > { %2170 = vmatpush1.bf16.msra.mxu1 %v2025_v45  ;;  %v2068_v45 = vunpack.c.l.s8.bf16 %v1880_v42  ;;  %v2479_v42 = vld [vmem:[%s4846_s11 + $0x38] sm:$0xff] }
 0x4ad   : > { %2293 = vmatpush1.bf16.msra.mxu0 %v2027_v31  ;;  %2171 = vmatprep.subr.bf16.mxu1 %v2030_v43  ;;  %v1879_v31 = vld [vmem:[%s4646_s19 + $0x2f0] sm:$0xff]  ;;  %v2065_v43 = vunpack.c.l.s8.bf16 %v1877_v52 }
 0x4ae   : > { %2294 = vmatprep.subr.bf16.mxu0 %v2032_v46  ;;  %v2067_v46 = vunpack.c.l.s8.bf16 %v1879_v31 }
 0x4b0   : > { %2172 = vmatpush1.bf16.msra.mxu1 %v2029_v47  ;;  %v2069_v47 = vunpack.c.h.s8.bf16 %v1877_v52 }
 0x4b1   : > { %2295 = vmatpush1.bf16.msra.mxu0 %v2031_v48  ;;  %2173 = vmatprep.subr.bf16.mxu1 %v2034_v50  ;;  %v2071_v48 = vunpack.c.h.s8.bf16 %v1879_v31  ;;  %v1783_v50 = vmax.f32 %v4752_v30, 0.0  ;;  %v2366_v30 = vrot.slane %v3377_v57, %v4492_v4  ;;  %v2482_v31 = vld [vmem:[%s4846_s11 + $0x50] sm:$0xff] }
 0x4b2   : > { %2296 = vmatprep.subr.bf16.mxu0 %v2036_v55  ;;  %v3376_v55 = vld [vmem:[%s4261_s4 + $0x7] ss:$8 sm:$0xf] }
 0x4b3   : > { %v2077_v53 = vpack.c.bf16 %v1783_v50, %v1783_v50  ;;  %v2343_v60 = vrot.slane %v3376_v55, %v4509_v10 }
 0x4b4   : > { %2174 = vmatpush1.bf16.msra.mxu1 %v2033_v5  ;;  %v2331_v5 = vrot.slane %v3376_v55, %v4480_v15 }
 0x4b5   : > { %2297 = vmatpush1.bf16.msra.mxu0 %v2035_v16  ;;  %2175 = vmatprep.subr.bf16.mxu1 %v2038_v58  ;;  %v2339_v16 = vrot.slane %v3376_v55, %v4492_v4  ;;  %v2335_v58 = vrot.slane %v3376_v55, %v4483_v63  ;;  %v2484_v55 = vld [vmem:[%s4846_s11 + $0x60] sm:$0xff] }
 0x4b6   : > { %2298 = vmatprep.subr.bf16.mxu0 %v2040_v56  ;;  %v2358_v56 = vrot.slane %v3377_v57, %v4480_v15 }
 0x4b8   : > { %2176 = vmatpush1.bf16.msra.mxu1 %v2037_v62  ;;  %v2362_v62 = vrot.slane %v3377_v57, %v4483_v63 }
 0x4b9   : > { %2299 = vmatpush1.bf16.msra.mxu0 %v2039_v3  ;;  %2177 = vmatprep.subr.bf16.mxu1 %v2042_v51 }
 0x4ba   : > { %2300 = vmatprep.subr.bf16.mxu0 %v2044_v21 }
 0x4bc   : > { %2178 = vmatpush1.bf16.msra.mxu1 %v2041_v35 }
 0x4bd   : > { %2301 = vmatpush1.bf16.msra.mxu0 %v2043_v1  ;;  %2179 = vmatprep.subr.bf16.mxu1 %v2046_v9  ;;  %v2370_v1 = vrot.slane %v3377_v57, %v4509_v10  ;;  %v2544_v57 = vunpack.c.l.s8.bf16 %v2484_v55 }
 0x4be   : > { %2302 = vmatprep.subr.bf16.mxu0 %v2048_v11 }
 0x4c0   : > { %2180 = vmatpush1.bf16.msra.mxu1 %v2045_v18 }
 0x4c1   : > { %2303 = vmatpush1.bf16.msra.mxu0 %v2047_v19  ;;  %2181 = vmatprep.subr.bf16.mxu1 %v2050_v0 }
 0x4c2   : > { %2304 = vmatprep.subr.bf16.mxu0 %v2052_v20 }
 0x4c4   : > { %2182 = vmatpush1.bf16.msra.mxu1 %v2049_v22 }
 0x4c5   : > { %2305 = vmatpush1.bf16.msra.mxu0 %v2051_v39  ;;  %2183 = vmatprep.subr.bf16.mxu1 %v2054_v40 }
 0x4c6   : > { %2306 = vmatprep.subr.bf16.mxu0 %v2056_v17 }
 0x4c8   : > { %2184 = vmatpush1.bf16.msra.mxu1 %v2053_v23  ;;  %v2473_v23 = vld [vmem:[%s4846_s11 + $0x8] sm:$0xff] }
 0x4c9   : > { %2307 = vmatpush1.bf16.msra.mxu0 %v2055_v24  ;;  %2185 = vmatprep.subr.bf16.mxu1 %v2058_v27  ;;  %v2472_v24 = vld [vmem:[%s4846_s11] sm:$0xff]  ;;  %v2521_v27 = vunpack.c.l.s8.bf16 %v2473_v23 }
 0x4ca   : > { %2308 = vmatprep.subr.bf16.mxu0 %v2060_v28  ;;  %v2520_v2 = vunpack.c.l.s8.bf16 %v2472_v24  ;;  %v2524_v28 = vunpack.c.h.s8.bf16 %v2473_v23 }
 0x4cc   : > { %2186 = vmatpush1.bf16.msra.mxu1 %v2057_v29  ;;  %v2523_v29 = vunpack.c.h.s8.bf16 %v2472_v24 }
 0x4cd   : > { %2309 = vmatpush1.bf16.msra.mxu0 %v2059_v32  ;;  %2187 = vmatprep.subr.bf16.mxu1 %v2062_v37  ;;  %v2527_v32 = vunpack.c.l.s8.bf16 %v2476_v26  ;;  %v2475_v37 = vld [vmem:[%s4846_s11 + $0x18] sm:$0xff] }
 0x4ce   : > { %2310 = vmatprep.subr.bf16.mxu0 %v2064_v49  ;;  %v2526_v49 = vunpack.c.l.s8.bf16 %v2475_v37 }
 0x4d0   : > { %2188 = vmatpush1.bf16.msra.mxu1 %v2061_v44  ;;  %v2529_v44 = vunpack.c.h.s8.bf16 %v2475_v37 }
 0x4d1   : > { %2311 = vmatpush1.bf16.msra.mxu0 %v2063_v41  ;;  %2189 = vmatprep.subr.bf16.mxu1 %v2066_v13  ;;  %v2533_v41 = vunpack.c.l.s8.bf16 %v2479_v42  ;;  %v2478_v13 = vld [vmem:[%s4846_s11 + $0x30] sm:$0xff] }
 0x4d2   : > { %2312 = vmatprep.subr.bf16.mxu0 %v2068_v45  ;;  %v2532_v52 = vunpack.c.l.s8.bf16 %v2478_v13  ;;  %v2536_v45 = vunpack.c.h.s8.bf16 %v2479_v42  ;;  %v3378_v42 = vld [vmem:[%s4261_s4 + $0x5] ss:$8 sm:$0xf] }
 0x4d4   : > { %2190 = vmatpush1.bf16.msra.mxu1 %v2065_v43  ;;  %v2535_v43 = vunpack.c.h.s8.bf16 %v2478_v13  ;;  %v2422_v13 = vrot.slane %v3378_v42, %v4480_v15 }
 0x4d5   : > { %2313 = vmatpush1.bf16.msra.mxu0 %v2067_v46  ;;  %2191 = vmatprep.subr.bf16.mxu1 %v2070_v59  ;;  %v2539_v46 = vunpack.c.l.s8.bf16 %v2482_v31  ;;  %v2481_v59 = vld [vmem:[%s4846_s11 + $0x48] sm:$0xff] }
 0x4d6   : > { %2314 = vmatprep.subr.bf16.mxu0 %v2072_v14  ;;  %v2538_v14 = vunpack.c.l.s8.bf16 %v2481_v59  ;;  %v2541_v50 = vunpack.c.h.s8.bf16 %v2481_v59 }
 0x4d8   : > { %2192 = vmatpush1.bf16.msra.mxu1 %v2069_v47  ;;  %v2542_v47 = vunpack.c.h.s8.bf16 %v2482_v31 }
 0x4d9   : > { %2315 = vmatpush1.bf16.msra.mxu0 %v2071_v48  ;;  %2620 = vmatprep.subr.bf16.mxu1 %v2521_v27  ;;  %v2485_v48 = vld [vmem:[%s4846_s11 + $0x68] sm:$0xff] }
 0x4da   : > { %v2493_v27 = vld [vmem:[%s4846_s11 + $0xa8] sm:$0xff] }
 0x4db   : > { %2194 = vmatmul.mubr.bf16.vlgmr.msra.gmra.mrb[8].mxu1 %v2077_v53  ;;  %v2565_v26 = vunpack.c.h.s8.bf16 %v2493_v27 }
 0x4dc   : > { %2317 = vmatmul.mubr.bf16.vlgmr.msra.gmra.mrb[8].mxu0 %v2077_v53  ;;  %2621 = vmatpush1.bf16.msra.mxu1 %v2520_v2  ;;  %v2545_v53 = vunpack.c.l.s8.bf16 %v2485_v48  ;;  %v2562_v2 = vunpack.c.l.s8.bf16 %v2493_v27 }
 0x4dd   : > { %2622 = vmatprep.subr.bf16.mxu1 %v2524_v28 }
 0x4e0   : > { %2623 = vmatpush1.bf16.msra.mxu1 %v2523_v29  ;;  %v2497_v29 = vld [vmem:[%s4846_s11 + $0xc8] sm:$0xff] }
 0x4e1   : > { %2624 = vmatprep.subr.bf16.mxu1 %v2527_v32  ;;  %v2569_v32 = vunpack.c.l.s8.bf16 %v2497_v29 }
 0x4e4   : > { %2625 = vmatpush1.bf16.msra.mxu1 %v2526_v49 }
 0x4e5   : > { %2626 = vmatprep.subr.bf16.mxu1 %v2530_v8 }
 0x4e8   : > { %2627 = vmatpush1.bf16.msra.mxu1 %v2529_v44  ;;  %v3379_v44 = vld [vmem:[%s4261_s4 + $0x6] ss:$8 sm:$0xf] }
 0x4e9   : > { %2628 = vmatprep.subr.bf16.mxu1 %v2533_v41  ;;  %v2426_v41 = vrot.slane %v3378_v42, %v4483_v63  ;;  %v2459_v59 = vrot.slane %v3379_v44, %v4509_v10 }
 0x4ec   : > { %2629 = vmatpush1.bf16.msra.mxu1 %v2532_v52  ;;  %v2434_v52 = vrot.slane %v3378_v42, %v4509_v10  ;;  %v2496_v10 = vld [vmem:[%s4846_s11 + $0xc0] sm:$0xff] }
 0x4ed   : > { %2630 = vmatprep.subr.bf16.mxu1 %v2536_v45  ;;  %v2430_v45 = vrot.slane %v3378_v42, %v4492_v4 }
 0x4f0   : > { %2631 = vmatpush1.bf16.msra.mxu1 %v2535_v43  ;;  %v2451_v43 = vrot.slane %v3379_v44, %v4483_v63 }
 0x4f1   : > { %2632 = vmatprep.subr.bf16.mxu1 %v2539_v46  ;;  %v2447_v46 = vrot.slane %v3379_v44, %v4480_v15 }
 0x4f4   : > { %2633 = vmatpush1.bf16.msra.mxu1 %v2538_v14  ;;  %v2455_v14 = vrot.slane %v3379_v44, %v4492_v4 }
 0x4f5   : > { %2634 = vmatprep.subr.bf16.mxu1 %v2542_v47 }
 0x4f8   : > { %2635 = vmatpush1.bf16.msra.mxu1 %v2541_v50 }
 0x4f9   : > { %2636 = vmatprep.subr.bf16.mxu1 %v2545_v53 }
 0x4fc   : > { %2637 = vmatpush1.bf16.msra.mxu1 %v2544_v57 }
 0x5ae   : > { %v2195_v61 = vpop.f32.mrb[8].mxu1 }
 0x5af   : > { %v2348_v3 = vmul.f32 %v2331_v5, %v2195_v61  ;;  %v2318_v51 = vpop.f32.mrb[8].mxu0  ;;  %v2197_v7 = vpop.f32.mrb[9].mxu1  ;;  %v2548_v5 = vunpack.c.h.s8.bf16 %v2485_v48 }
 0x5b0   : > { %v2350_v21 = vmul.f32 %v2339_v16, %v2318_v51  ;;  %v2349_v36 = vmul.f32 %v2335_v58, %v2197_v7  ;;  %v2320_v35 = vpop.f32.mrb[9].mxu0  ;;  %v2199_v9 = vpop.f32.mrb[10].mxu1  ;;  %v2547_v16 = vunpack.c.h.s8.bf16 %v2484_v55 }
 0x5b1   : > { %v4829_v11 = vadd.f32 %v2358_v56, %v2348_v3  ;;  %v2351_v12 = vmul.f32 %v2343_v60, %v2320_v35  ;;  %v2322_v25 = vpop.f32.mrb[10].mxu0  ;;  %v2200_v18 = vpop.f32.mrb[11].mxu1  ;;  %2638 = vmatprep.subr.bf16.mxu1 %v2548_v5 }
 0x5b2   : > { %v4831_v19 = vadd.f32 %v2366_v30, %v2350_v21  ;;  %v4833_v0 = vadd.f32 %v2362_v62, %v2349_v36  ;;  %v2323_v38 = vpop.f32.mrb[11].mxu0  ;;  %2639 = vmatpush1.bf16.msra.mxu1 %v2547_v16  ;;  %v2488_v18 = vld [vmem:[%s4846_s11 + $0x80] sm:$0xff] }
 0x5b3   : > { %v2383_v20 = vsel %vm1655_vm0, %v4829_v11, 0.0  ;;  %v4839_v22 = vadd.f32 %v2370_v1, %v2351_v12 }
 0x5b4   : > { %v2384_v54 = vsel %vm1655_vm0, %v4833_v0, 0.0  ;;  %v2386_v40 = vsel %vm1655_vm0, %v4831_v19, 0.0 }
 0x5b5   : > { %v2385_v39 = vadd.f32 %v2384_v54, %v2383_v20  ;;  %v2388_v33 = vsel %vm1655_vm0, %v4839_v22, 0.0  ;;  %v2554_v20 = vunpack.c.h.s8.bf16 %v2488_v18  ;;  %v2491_v54 = vld [vmem:[%s4846_s11 + $0x98] sm:$0xff] }
 0x5b7   : > { %v2387_v17 = vadd.f32 %v2386_v40, %v2385_v39  ;;  %v2557_v39 = vunpack.c.l.s8.bf16 %v2491_v54  ;;  %v2490_v40 = vld [vmem:[%s4846_s11 + $0x90] sm:$0xff] }
 0x5b8   : > { %v2559_v23 = vunpack.c.h.s8.bf16 %v2490_v40 }
 0x5b9   : > { %v2389_v6 = vadd.f32 %v2388_v33, %v2387_v17  ;;  %v2556_v17 = vunpack.c.l.s8.bf16 %v2490_v40  ;;  %v2560_v33 = vunpack.c.h.s8.bf16 %v2491_v54 }
 0x5bb   : > { %2390 = vadd.xlane.f32.xlu0 %v2389_v6  ;;  %v2494_v6 = vld [vmem:[%s4846_s11 + $0xb0] sm:$0xff] }
 0x5bc   : > { %v2563_v24 = vunpack.c.l.s8.bf16 %v2494_v6  ;;  %v2566_v28 = vunpack.c.h.s8.bf16 %v2494_v6 }
 0x648   : > { %v2391_v58 = vpop.xlane.xlu0 %2390 }
 0x649   : > { %v2393_v56 = vmul.f32 0.001953125, %v2391_v58 }
 0x64b   : > { %v4859_v60 = vsub.f32 %v4829_v11, %v2393_v56  ;;  %v4862_v61 = vsub.f32 %v4833_v0, %v2393_v56  ;;  %v4865_v30 = vsub.f32 %v4831_v19, %v2393_v56  ;;  %v4868_v62 = vsub.f32 %v4839_v22, %v2393_v56  ;;  %v2487_v0 = vld [vmem:[%s4846_s11 + $0x78] sm:$0xff] }
 0x64c   : > { %v2551_v19 = vunpack.c.l.s8.bf16 %v2488_v18  ;;  %v2550_v38 = vunpack.c.l.s8.bf16 %v2487_v0  ;;  %v2553_v22 = vunpack.c.h.s8.bf16 %v2487_v0 }
 0x64d   : > { %v2398_v3 = vmul.f32 %v4859_v60, %v4859_v60  ;;  %v2399_v51 = vmul.f32 %v4862_v61, %v4862_v61  ;;  %v2400_v7 = vmul.f32 %v4865_v30, %v4865_v30  ;;  %v2401_v21 = vmul.f32 %v4868_v62, %v4868_v62 }
 0x64e   : > { %2640 = vmatprep.subr.bf16.mxu1 %v2551_v19  ;;  %v2503_v19 = vld [vmem:[%s4846_s11 + $0xf8] sm:$0xff] }
 0x64f   : > { %v2402_v36 = vsel %vm1655_vm0, %v2398_v3, 0.0  ;;  %v2403_v35 = vsel %vm1655_vm0, %v2399_v51, 0.0  ;;  %v2405_v9 = vsel %vm1655_vm0, %v2400_v7, 0.0  ;;  %v2407_v12 = vsel %vm1655_vm0, %v2401_v21, 0.0  ;;  %2641 = vmatpush1.bf16.msra.mxu1 %v2550_v38 }
 0x650   : > { %v2404_v1 = vadd.f32 %v2403_v35, %v2402_v36  ;;  %2642 = vmatprep.subr.bf16.mxu1 %v2554_v20  ;;  %v2572_v36 = vunpack.c.h.s8.bf16 %v2497_v29  ;;  %v2581_v38 = vunpack.c.l.s8.bf16 %v2503_v19  ;;  %v2502_v20 = vld [vmem:[%s4846_s11 + $0xf0] sm:$0xff] }
 0x651   : > { %v2580_v54 = vunpack.c.l.s8.bf16 %v2502_v20  ;;  %v2583_v40 = vunpack.c.h.s8.bf16 %v2502_v20 }
 0x652   : > { %v2406_v11 = vadd.f32 %v2405_v9, %v2404_v1  ;;  %v2500_v1 = vld [vmem:[%s4846_s11 + $0xe0] sm:$0xff]  ;;  %v2571_v9 = vunpack.c.h.s8.bf16 %v2496_v10 }
 0x653   : > { %2643 = vmatpush1.bf16.msra.mxu1 %v2553_v22  ;;  %v2578_v18 = vunpack.c.h.s8.bf16 %v2500_v1  ;;  %v2584_v22 = vunpack.c.h.s8.bf16 %v2503_v19 }
 0x654   : > { %v2408_v25 = vadd.f32 %v2407_v12, %v2406_v11  ;;  %2644 = vmatprep.subr.bf16.mxu1 %v2557_v39  ;;  %v2575_v11 = vunpack.c.l.s8.bf16 %v2500_v1  ;;  %v2499_v12 = vld [vmem:[%s4846_s11 + $0xd8] sm:$0xff]  ;;  %v2506_v39 = vld [vmem:[%s4846_s11 + $0x110] sm:$0xff] }
 0x655   : > { %v2577_v0 = vunpack.c.h.s8.bf16 %v2499_v12 }
 0x656   : > { %2409 = vadd.xlane.f32.xlu1 %v2408_v25  ;;  %v2574_v25 = vunpack.c.l.s8.bf16 %v2499_v12 }
 0x657   : > { %2645 = vmatpush1.bf16.msra.mxu1 %v2556_v17  ;;  %v2587_v17 = vunpack.c.l.s8.bf16 %v2506_v39 }
 0x658   : > { %2646 = vmatprep.subr.bf16.mxu1 %v2560_v33  ;;  %v2505_v33 = vld [vmem:[%s4846_s11 + $0x108] sm:$0xff] }
 0x659   : > { %v2586_v6 = vunpack.c.l.s8.bf16 %v2505_v33  ;;  %v2589_v27 = vunpack.c.h.s8.bf16 %v2505_v33 }
 0x65b   : > { %2647 = vmatpush1.bf16.msra.mxu1 %v2559_v23  ;;  %v2590_v23 = vunpack.c.h.s8.bf16 %v2506_v39 }
 0x65c   : > { %2648 = vmatprep.subr.bf16.mxu1 %v2563_v24  ;;  %v2509_v24 = vld [vmem:[%s4846_s11 + $0x128] sm:$0xff] }
 0x65d   : > { %v2596_v29 = vunpack.c.h.s8.bf16 %v2509_v24 }
 0x65f   : > { %2649 = vmatpush1.bf16.msra.mxu1 %v2562_v2  ;;  %v2593_v2 = vunpack.c.l.s8.bf16 %v2509_v24 }
 0x660   : > { %2650 = vmatprep.subr.bf16.mxu1 %v2566_v28  ;;  %v2508_v28 = vld [vmem:[%s4846_s11 + $0x120] sm:$0xff] }
 0x663   : > { %2651 = vmatpush1.bf16.msra.mxu1 %v2565_v26  ;;  %v2592_v26 = vunpack.c.l.s8.bf16 %v2508_v28 }
 0x664   : > { %2661 = vmatprep.subr.bf16.mxu1 %v2569_v32  ;;  %v2512_v32 = vld [vmem:[%s4846_s11 + $0x140] sm:$0xff] }
 0x665   : > { %v2602_v44 = vunpack.c.h.s8.bf16 %v2512_v32 }
 0x6e3   : > { %v2410_v37 = vpop.xlane.xlu1 %2409 }
 0x6e4   : > { %v2411_v49 = vmul.f32 0.001953125, %v2410_v37  ;;  %v2595_v37 = vunpack.c.h.s8.bf16 %v2508_v28 }
 0x6e6   : > { %v2412_v8 = vadd.f32 1e-05, %v2411_v49  ;;  %v2599_v49 = vunpack.c.l.s8.bf16 %v2512_v32 }
 0x6e8   : > { %3613 = vrsqrt.f32 %v2412_v8  ;;  %v2511_v8 = vld [vmem:[%s4846_s11 + $0x138] sm:$0xff] }
 0x6e9   : > { %v2598_v42 = vunpack.c.l.s8.bf16 %v2511_v8 }
 0x6f2   : > { %v3614_v31 = vpop.eup %3613 }
 0x6f3   : > { %v2415_v47 = vmul.f32 %v3614_v31, %v4862_v61  ;;  %v2414_v48 = vmul.f32 %v3614_v31, %v4859_v60  ;;  %v2417_v50 = vmul.f32 %v3614_v31, %v4868_v62  ;;  %v2416_v53 = vmul.f32 %v3614_v31, %v4865_v30 }
 0x6f4   : > { %v2568_v30 = vunpack.c.l.s8.bf16 %v2496_v10  ;;  %v2489_v10 = vld [vmem:[%s4846_s11 + $0x88] sm:$0xff] }
 0x6f5   : > { %v2440_v55 = vmul.f32 %v2426_v41, %v2415_v47  ;;  %v2439_v57 = vmul.f32 %v2422_v13, %v2414_v48  ;;  %v2442_v5 = vmul.f32 %v2434_v52, %v2417_v50  ;;  %v2441_v16 = vmul.f32 %v2430_v45, %v2416_v53  ;;  %v2515_v41 = vld [vmem:[%s4846_s11 + $0x158] sm:$0xff]  ;;  %v2514_v45 = vld [vmem:[%s4846_s11 + $0x150] sm:$0xff]  ;;  %v2517_v47 = vld [vmem:[%s4846_s11 + $0x168] sm:$0xff] }
 0x6f6   : > { %v2601_v13 = vunpack.c.h.s8.bf16 %v2511_v8  ;;  %v2605_v52 = vunpack.c.l.s8.bf16 %v2515_v41  ;;  %v2604_v31 = vunpack.c.l.s8.bf16 %v2514_v45  ;;  %v2610_v48 = vunpack.c.l.s8.bf16 %v2517_v47  ;;  %v2486_v53 = vld [vmem:[%s4846_s11 + $0x70] sm:$0xff] }
 0x6f7   : > { %v2465_v58 = vadd.f32 %v2451_v43, %v2440_v55  ;;  %v2464_v56 = vadd.f32 %v2447_v46, %v2439_v57  ;;  %v2467_v3 = vadd.f32 %v2459_v59, %v2442_v5  ;;  %v4903_v51 = vadd.f32 %v2455_v14, %v2441_v16  ;;  %v2518_v46 = vld [vmem:[%s4846_s11 + $0x170] sm:$0xff] }
 0x6f8   : > { %v2608_v43 = vunpack.c.h.s8.bf16 %v2515_v41  ;;  %v2607_v59 = vunpack.c.h.s8.bf16 %v2514_v45  ;;  %v2611_v14 = vunpack.c.l.s8.bf16 %v2518_v46  ;;  %v2614_v50 = vunpack.c.h.s8.bf16 %v2518_v46  ;;  %v2474_v16 = vld [vmem:[%s4846_s11 + $0x10] sm:$0xff] }
 0x6f9   : > { %v2469_v7 = vmax.f32 %v2465_v58, 0.0  ;;  %v2468_v61 = vmax.f32 %v2464_v56, 0.0  ;;  %v2471_v21 = vmax.f32 %v2467_v3, 0.0  ;;  %v2613_v55 = vunpack.c.h.s8.bf16 %v2517_v47 }
 0x6fa   : > { %v2470_v57 = vmax.f32 %v4903_v51, 0.0  ;;  %v2546_v5 = vunpack.c.l.s8.bf16 %v2486_v53  ;;  %v2522_v58 = vunpack.c.l.s8.bf16 %v2474_v16  ;;  %v2549_v3 = vunpack.c.h.s8.bf16 %v2486_v53  ;;  %v2477_v51 = vld [vmem:[%s4846_s11 + $0x28] sm:$0xff] }
 0x6fb   : > { %v4906_v60 = vpack.c.bf16 %v2469_v7, %v2469_v7  ;;  %v4908_v62 = vpack.c.bf16 %v2468_v61, %v2468_v61  ;;  %v4911_v35 = vpack.c.bf16 %v2471_v21, %v2471_v21  ;;  %v2525_v7 = vunpack.c.h.s8.bf16 %v2474_v16  ;;  %v3380_v53 = vld [vmem:[%s4261_s4 + $0x33] ss:$8 sm:$0x7] }
 0x6fc   : > { %v4932_v56 = vpack.c.bf16 %v2470_v57, %v2470_v57  ;;  %v2552_v61 = vunpack.c.l.s8.bf16 %v2489_v10  ;;  %v2528_v21 = vunpack.c.l.s8.bf16 %v2477_v51  ;;  %v2531_v1 = vunpack.c.h.s8.bf16 %v2477_v51 }
 0x6fd   : > { %2652 = vmatprep.mubr.bf16.mxu1 %v4906_v60  ;;  %v2792_v57 = vrot.slane %v3380_v53, %v4483_v63 }
 0x6fe   : > { %2653 = vmatmul.mubr.bf16.vlgmr.msra.gmra.mrb[12].mxu1 %v4908_v62 }
 0x6ff   : > { %2662 = vmatpush1.bf16.msra.mxu1 %v2568_v30  ;;  %2693 = vmatprep.mubr.bf16.mxu1 %v4911_v35  ;;  %v2555_v30 = vunpack.c.h.s8.bf16 %v2489_v10 }
 0x700   : > { %2663 = vmatprep.subr.bf16.mxu1 %v2572_v36  ;;  %v2492_v36 = vld [vmem:[%s4846_s11 + $0xa0] sm:$0xff] }
 0x703   : > { %2664 = vmatpush1.bf16.msra.mxu1 %v2571_v9  ;;  %v2558_v9 = vunpack.c.l.s8.bf16 %v2492_v36 }
 0x704   : > { %2665 = vmatprep.subr.bf16.mxu1 %v2575_v11  ;;  %v2480_v11 = vld [vmem:[%s4846_s11 + $0x40] sm:$0xff] }
 0x705   : > { %v2534_v12 = vunpack.c.l.s8.bf16 %v2480_v11 }
 0x707   : > { %2666 = vmatpush1.bf16.msra.mxu1 %v2574_v25  ;;  %v2495_v25 = vld [vmem:[%s4846_s11 + $0xb8] sm:$0xff] }
 0x708   : > { %2667 = vmatprep.subr.bf16.mxu1 %v2578_v18  ;;  %v2537_v18 = vunpack.c.h.s8.bf16 %v2480_v11  ;;  %v2564_v19 = vunpack.c.l.s8.bf16 %v2495_v25  ;;  %v2567_v20 = vunpack.c.h.s8.bf16 %v2495_v25 }
 0x70b   : > { %2668 = vmatpush1.bf16.msra.mxu1 %v2577_v0  ;;  %v2483_v0 = vld [vmem:[%s4846_s11 + $0x58] sm:$0xff] }
 0x70c   : > { %2669 = vmatprep.subr.bf16.mxu1 %v2581_v38  ;;  %v2540_v38 = vunpack.c.l.s8.bf16 %v2483_v0 }
 0x70f   : > { %2670 = vmatpush1.bf16.msra.mxu1 %v2580_v54  ;;  %v2510_v54 = vld [vmem:[%s4846_s11 + $0x130] sm:$0xff] }
 0x710   : > { %2671 = vmatprep.subr.bf16.mxu1 %v2584_v22  ;;  %v2543_v22 = vunpack.c.h.s8.bf16 %v2483_v0  ;;  %v2594_v39 = vunpack.c.l.s8.bf16 %v2510_v54  ;;  %v2597_v33 = vunpack.c.h.s8.bf16 %v2510_v54  ;;  %v2897_v54 = vld [vmem:[%s4971_s30] sm:$0xff] }
 0x713   : > { %2672 = vmatpush1.bf16.msra.mxu1 %v2583_v40  ;;  %v2498_v40 = vld [vmem:[%s4846_s11 + $0xd0] sm:$0xff] }
 0x714   : > { %2673 = vmatprep.subr.bf16.mxu1 %v2587_v17  ;;  %v2570_v17 = vunpack.c.l.s8.bf16 %v2498_v40 }
 0x717   : > { %2674 = vmatpush1.bf16.msra.mxu1 %v2586_v6  ;;  %v2513_v6 = vld [vmem:[%s4846_s11 + $0x148] sm:$0xff] }
 0x718   : > { %2675 = vmatprep.subr.bf16.mxu1 %v2590_v23  ;;  %v2573_v23 = vunpack.c.h.s8.bf16 %v2498_v40  ;;  %v2600_v24 = vunpack.c.l.s8.bf16 %v2513_v6  ;;  %v2603_v28 = vunpack.c.h.s8.bf16 %v2513_v6 }
 0x71b   : > { %2676 = vmatpush1.bf16.msra.mxu1 %v2589_v27  ;;  %v2501_v27 = vld [vmem:[%s4846_s11 + $0xe8] sm:$0xff] }
 0x71c   : > { %2677 = vmatprep.subr.bf16.mxu1 %v2593_v2  ;;  %v2576_v2 = vunpack.c.l.s8.bf16 %v2501_v27 }
 0x71f   : > { %2678 = vmatpush1.bf16.msra.mxu1 %v2592_v26  ;;  %v2516_v26 = vld [vmem:[%s4846_s11 + $0x160] sm:$0xff] }
 0x720   : > { %2679 = vmatprep.subr.bf16.mxu1 %v2596_v29  ;;  %v2579_v29 = vunpack.c.h.s8.bf16 %v2501_v27  ;;  %v2606_v32 = vunpack.c.l.s8.bf16 %v2516_v26 }
 0x723   : > { %2680 = vmatpush1.bf16.msra.mxu1 %v2595_v37 }
 0x724   : > { %2681 = vmatprep.subr.bf16.mxu1 %v2599_v49  ;;  %v2519_v49 = vld [vmem:[%s4846_s11 + $0x178] sm:$0xff] }
 0x727   : > { %2682 = vmatpush1.bf16.msra.mxu1 %v2598_v42  ;;  %v2612_v42 = vunpack.c.l.s8.bf16 %v2519_v49 }
 0x728   : > { %2683 = vmatprep.subr.bf16.mxu1 %v2602_v44  ;;  %v2507_v44 = vld [vmem:[%s4846_s11 + $0x118] sm:$0xff] }
 0x729   : > { %v2588_v41 = vunpack.c.l.s8.bf16 %v2507_v44 }
 0x72b   : > { %2684 = vmatpush1.bf16.msra.mxu1 %v2601_v13  ;;  %v2615_v13 = vunpack.c.h.s8.bf16 %v2519_v49 }
 0x72c   : > { %2685 = vmatprep.subr.bf16.mxu1 %v2605_v52  ;;  %v2591_v52 = vunpack.c.h.s8.bf16 %v2507_v44 }
 0x72f   : > { %2686 = vmatpush1.bf16.msra.mxu1 %v2604_v31 }
 0x730   : > { %2687 = vmatprep.subr.bf16.mxu1 %v2608_v43 }
 0x733   : > { %2688 = vmatpush1.bf16.msra.mxu1 %v2607_v59 }
 0x734   : > { %2689 = vmatprep.subr.bf16.mxu1 %v2611_v14 }
 0x737   : > { %2690 = vmatpush1.bf16.msra.mxu1 %v2610_v48 }
 0x738   : > { %2691 = vmatprep.subr.bf16.mxu1 %v2614_v50 }
 0x73b   : > { %2692 = vmatpush1.bf16.msra.mxu1 %v2613_v55  ;;  %v2788_v55 = vrot.slane %v3380_v53, %v4480_v15 }
 0x73c   : > { %3391 = vmatprep.subr.bf16.mxu1 %v2546_v5  ;;  %v3381_v5 = vld [vmem:[%s4261_s4 + $0x30] ss:$8 sm:$0x7] }
 0x73d   : > { %v2817_v11 = vrot.slane %v3381_v5, %v4492_v4 }
 0x73e   : > { %2694 = vmatmul.mubr.bf16.vlgmr.msra.gmra.mrb[12].mxu1 %v4932_v56 }
 0x73f   : > { %3392 = vmatpush3.bf16.msra.mxu1 %v2522_v58  ;;  %2734 = vmatprep.mubr.bf16.mxu1 %v4906_v60  ;;  %v2561_v60 = vunpack.c.h.s8.bf16 %v2492_v36  ;;  %v2809_v58 = vrot.slane %v3381_v5, %v4480_v15 }
 0x740   : > { %3393 = vmatprep.subr.bf16.mxu1 %v2549_v3 }
 0x743   : > { %3394 = vmatpush3.bf16.msra.mxu1 %v2525_v7 }
 0x744   : > { %3395 = vmatprep.subr.bf16.mxu1 %v2552_v61 }
 0x747   : > { %3396 = vmatpush3.bf16.msra.mxu1 %v2528_v21 }
 0x748   : > { %3397 = vmatprep.subr.bf16.mxu1 %v2555_v30  ;;  %v2796_v30 = vrot.slane %v3380_v53, %v4492_v4 }
 0x74b   : > { %3398 = vmatpush3.bf16.msra.mxu1 %v2531_v1 }
 0x74c   : > { %3399 = vmatprep.subr.bf16.mxu1 %v2558_v9 }
 0x74f   : > { %3400 = vmatpush3.bf16.msra.mxu1 %v2534_v12 }
 0x750   : > { %3401 = vmatprep.subr.bf16.mxu1 %v2561_v60 }
 0x753   : > { %3402 = vmatpush3.bf16.msra.mxu1 %v2537_v18 }
 0x754   : > { %3403 = vmatprep.subr.bf16.mxu1 %v2564_v19 }
 0x757   : > { %3404 = vmatpush3.bf16.msra.mxu1 %v2540_v38 }
 0x758   : > { %3405 = vmatprep.subr.bf16.mxu1 %v2567_v20  ;;  %v2898_v20 = vld [vmem:[%s4971_s30 + $0x8] sm:$0xff] }
 0x759   : > { %v2924_v40 = vunpack.c.h.s8.bf16 %v2898_v20 }
 0x75b   : > { %3406 = vmatpush3.bf16.msra.mxu1 %v2543_v22  ;;  %v2922_v22 = vunpack.c.l.s8.bf16 %v2898_v20 }
 0x75c   : > { %3413 = vmatprep.subr.bf16.mxu1 %v2594_v39  ;;  %v2921_v39 = vunpack.c.l.s8.bf16 %v2897_v54 }
 0x75d   : > { %2972 = vmatprep.subr.bf16.mxu0 %v2922_v22 }
 0x75e   : > { %2735 = vmatmul.mubr.bf16.vlgmr.msra.gmra.mrb[16].mxu1 %v4908_v62  ;;  %v2504_v62 = vld [vmem:[%s4846_s11 + $0x100] sm:$0xff]  ;;  %2973 = vmatpush1.bf16.msra.mxu0 %v2921_v39 }
 0x75f   : > { %3414 = vmatpush3.bf16.msra.mxu1 %v2570_v17  ;;  %2774 = vmatprep.mubr.bf16.mxu1 %v4911_v35  ;;  %v2582_v37 = vunpack.c.l.s8.bf16 %v2504_v62  ;;  %v2609_v35 = vunpack.c.h.s8.bf16 %v2516_v26  ;;  %v2585_v8 = vunpack.c.h.s8.bf16 %v2504_v62  ;;  %v2900_v17 = vld [vmem:[%s4971_s30 + $0x18] sm:$0xff] }
 0x760   : > { %3415 = vmatprep.subr.bf16.mxu1 %v2597_v33  ;;  %v2923_v33 = vunpack.c.h.s8.bf16 %v2897_v54  ;;  %2974 = vmatprep.subr.bf16.mxu0 %v2924_v40  ;;  %v2926_v6 = vunpack.c.l.s8.bf16 %v2900_v17  ;;  %v2928_v27 = vunpack.c.h.s8.bf16 %v2900_v17  ;;  %v2914_v54 = vld [vmem:[%s4971_s30 + $0x88] sm:$0xff] }
 0x761   : > { %v2954_v22 = vunpack.c.l.s8.bf16 %v2914_v54 }
 0x762   : > { %2975 = vmatpush1.bf16.msra.mxu0 %v2923_v33  ;;  %v3382_v33 = vld [vmem:[%s4261_s4 + $0x31] ss:$8 sm:$0x7] }
 0x763   : > { %3416 = vmatpush3.bf16.msra.mxu1 %v2573_v23  ;;  %v2899_v23 = vld [vmem:[%s4971_s30 + $0x10] sm:$0xff]  ;;  %2976 = vmatprep.subr.bf16.mxu0 %v2926_v6 }
 0x764   : > { %3417 = vmatprep.subr.bf16.mxu1 %v2600_v24  ;;  %v2925_v24 = vunpack.c.l.s8.bf16 %v2899_v23  ;;  %v3383_v6 = vld [vmem:[%s4261_s4 + $0x32] ss:$8 sm:$0x7] }
 0x766   : > { %2977 = vmatpush1.bf16.msra.mxu0 %v2925_v24  ;;  %v2860_v24 = vrot.slane %v3382_v33, %v4480_v15 }
 0x767   : > { %3418 = vmatpush3.bf16.msra.mxu1 %v2576_v2  ;;  %v2902_v2 = vld [vmem:[%s4971_s30 + $0x28] sm:$0xff]  ;;  %2978 = vmatprep.subr.bf16.mxu0 %v2928_v27 }
 0x768   : > { %3419 = vmatprep.subr.bf16.mxu1 %v2603_v28  ;;  %v2927_v28 = vunpack.c.h.s8.bf16 %v2899_v23  ;;  %v2930_v26 = vunpack.c.l.s8.bf16 %v2902_v2  ;;  %v2932_v62 = vunpack.c.h.s8.bf16 %v2902_v2  ;;  %v2864_v23 = vrot.slane %v3382_v33, %v4483_v63 }
 0x76a   : > { %2979 = vmatpush1.bf16.msra.mxu0 %v2927_v28  ;;  %v2883_v28 = vrot.slane %v3383_v6, %v4483_v63 }
 0x76b   : > { %3420 = vmatpush3.bf16.msra.mxu1 %v2579_v29  ;;  %v2901_v29 = vld [vmem:[%s4971_s30 + $0x20] sm:$0xff]  ;;  %2980 = vmatprep.subr.bf16.mxu0 %v2930_v26 }
 0x76c   : > { %3421 = vmatprep.subr.bf16.mxu1 %v2606_v32  ;;  %v2929_v32 = vunpack.c.l.s8.bf16 %v2901_v29 }
 0x76e   : > { %2981 = vmatpush1.bf16.msra.mxu0 %v2929_v32 }
 0x76f   : > { %3422 = vmatpush3.bf16.msra.mxu1 %v2582_v37  ;;  %v2904_v37 = vld [vmem:[%s4971_s30 + $0x38] sm:$0xff]  ;;  %2982 = vmatprep.subr.bf16.mxu0 %v2932_v62 }
 0x770   : > { %3423 = vmatprep.subr.bf16.mxu1 %v2609_v35  ;;  %v2931_v35 = vunpack.c.h.s8.bf16 %v2901_v29  ;;  %v2934_v49 = vunpack.c.l.s8.bf16 %v2904_v37  ;;  %v2936_v44 = vunpack.c.h.s8.bf16 %v2904_v37  ;;  %v2879_v29 = vrot.slane %v3383_v6, %v4480_v15 }
 0x772   : > { %2983 = vmatpush1.bf16.msra.mxu0 %v2931_v35 }
 0x773   : > { %3424 = vmatpush3.bf16.msra.mxu1 %v2585_v8  ;;  %v2903_v8 = vld [vmem:[%s4971_s30 + $0x30] sm:$0xff]  ;;  %2984 = vmatprep.subr.bf16.mxu0 %v2934_v49  ;;  %v2913_v49 = vld [vmem:[%s4971_s30 + $0x80] sm:$0xff] }
 0x774   : > { %3425 = vmatprep.subr.bf16.mxu1 %v2612_v42  ;;  %v2933_v42 = vunpack.c.l.s8.bf16 %v2903_v8 }
 0x776   : > { %2985 = vmatpush1.bf16.msra.mxu0 %v2933_v42 }
 0x777   : > { %3426 = vmatpush3.bf16.msra.mxu1 %v2588_v41  ;;  %v2906_v41 = vld [vmem:[%s4971_s30 + $0x48] sm:$0xff]  ;;  %2986 = vmatprep.subr.bf16.mxu0 %v2936_v44 }
 0x778   : > { %3427 = vmatprep.subr.bf16.mxu1 %v2615_v13  ;;  %v2935_v13 = vunpack.c.h.s8.bf16 %v2903_v8 }
 0x77a   : > { %2987 = vmatpush1.bf16.msra.mxu0 %v2935_v13  ;;  %v2953_v13 = vunpack.c.l.s8.bf16 %v2913_v49 }
 0x77b   : > { %3428 = vmatpush3.bf16.msra.mxu1 %v2591_v52  ;;  %v2938_v52 = vunpack.c.l.s8.bf16 %v2906_v41 }
 0x77d   : > { %2988 = vmatprep.subr.bf16.mxu0 %v2938_v52  ;;  %v2956_v52 = vunpack.c.h.s8.bf16 %v2914_v54 }
 0x77e   : > { %2775 = vmatmul.mubr.bf16.vlgmr.msra.gmra.mrb[20].mxu1 %v4932_v56  ;;  %v2813_v56 = vrot.slane %v3381_v5, %v4483_v63 }
 0x811   : > { %v2695_v45 = vpop.f32.mrb[12].mxu1 }
 0x812   : > { %v2697_v31 = vpop.f32.mrb[13].mxu1  ;;  %v2800_v16 = vmul.f32 %v2788_v55, %v2695_v45  ;;  %v2905_v45 = vld [vmem:[%s4971_s30 + $0x40] sm:$0xff] }
 0x813   : > { %v2699_v43 = vpop.f32.mrb[14].mxu1  ;;  %v2801_v3 = vmul.f32 %v2792_v57, %v2697_v31  ;;  %v2937_v31 = vunpack.c.l.s8.bf16 %v2905_v45 }
 0x814   : > { %v2700_v46 = vpop.f32.mrb[15].mxu1  ;;  %v4959_v61 = vadd.f32 %v2809_v58, %v2800_v16  ;;  %v2940_v43 = vunpack.c.h.s8.bf16 %v2906_v41 }
 0x815   : > { %v4961_v51 = vadd.f32 %v2813_v56, %v2801_v3  ;;  %2989 = vmatpush1.bf16.msra.mxu0 %v2937_v31  ;;  %v2939_v46 = vunpack.c.h.s8.bf16 %v2905_v45  ;;  %v2916_v45 = vld [vmem:[%s4971_s30 + $0x98] sm:$0xff]  ;;  %v2955_v31 = vunpack.c.h.s8.bf16 %v2913_v49 }
 0x816   : > { %v2828_v60 = vsel %vm1655_vm0, %v4959_v61, 0.0  ;;  %2990 = vmatprep.subr.bf16.mxu0 %v2940_v43  ;;  %v2958_v43 = vunpack.c.l.s8.bf16 %v2916_v45  ;;  %v3386_v49 = vld [vmem:[%s4261_s4 + $0x35] ss:$8 sm:$0x3] }
 0x817   : > { %v2829_v25 = vsel %vm1655_vm0, %v4961_v51, 0.0 }
 0x818   : > { %v2830_v19 = vadd.f32 %v2829_v25, %v2828_v60  ;;  %v2912_v60 = vld [vmem:[%s4971_s30 + $0x78] sm:$0xff] }
 0x819   : > { %2991 = vmatpush1.bf16.msra.mxu0 %v2939_v46  ;;  %v2915_v46 = vld [vmem:[%s4971_s30 + $0x90] sm:$0xff] }
 0x831   : > { %v3407_v59 = vpop.f32.mrb[16].mxu1 }
 0x832   : > { %v3408_v14 = vpop.f32.mrb[17].mxu1 }
 0x833   : > { %v3409_v47 = vadd.f32 %v3408_v14, %v3407_v59  ;;  %v3410_v48 = vpop.f32.mrb[18].mxu1 }
 0x834   : > { %v3411_v50 = vpop.f32.mrb[19].mxu1 }
 0x851   : > { %v3429_v10 = vpop.f32.mrb[20].mxu1 }
 0x852   : > { %v3430_v7 = vpop.f32.mrb[21].mxu1 }
 0x853   : > { %v3431_v21 = vadd.f32 %v3430_v7, %v3429_v10  ;;  %v3432_v36 = vpop.f32.mrb[22].mxu1  ;;  %v2908_v10 = vld [vmem:[%s4971_s30 + $0x58] sm:$0xff] }
 0x854   : > { %v3433_v1 = vpop.f32.mrb[23].mxu1  ;;  %v2942_v7 = vunpack.c.l.s8.bf16 %v2908_v10 }
 0x855   : > { %v2777_v9 = vadd.f32 %v3431_v21, %v3409_v47  ;;  %v2944_v21 = vunpack.c.h.s8.bf16 %v2908_v10  ;;  %v2919_v10 = vld [vmem:[%s4971_s30 + $0xb0] sm:$0xff] }
 0x856   : > { %2992 = vmatprep.subr.bf16.mxu0 %v2942_v7 }
 0x857   : > { %v2802_v12 = vmul.f32 %v2796_v30, %v2777_v9  ;;  %v2910_v30 = vld [vmem:[%s4971_s30 + $0x68] sm:$0xff]  ;;  %v2909_v9 = vld [vmem:[%s4971_s30 + $0x60] sm:$0xff] }
 0x858   : > { %v2946_v1 = vunpack.c.l.s8.bf16 %v2910_v30  ;;  %v2947_v25 = vunpack.c.h.s8.bf16 %v2909_v9 }
 0x859   : > { %v2823_v18 = vadd.f32 %v2817_v11, %v2802_v12  ;;  %v2945_v11 = vunpack.c.l.s8.bf16 %v2909_v9  ;;  %v2948_v12 = vunpack.c.h.s8.bf16 %v2910_v30  ;;  %v3384_v9 = vld [vmem:[%s4261_s4 + $0x37] ss:$8 sm:$0x3] }
 0x85b   : > { %v2831_v0 = vsel %vm1655_vm0, %v2823_v18, 0.0 }
 0x85c   : > { %v2832_v38 = vadd.f32 %v2831_v0, %v2830_v19  ;;  %v2911_v19 = vld [vmem:[%s4971_s30 + $0x70] sm:$0xff] }
 0x85d   : > { %v2949_v0 = vunpack.c.l.s8.bf16 %v2911_v19  ;;  %v2951_v20 = vunpack.c.h.s8.bf16 %v2911_v19 }
 0x85e   : > { %2833 = vadd.xlane.f32.xlu0 %v2832_v38  ;;  %v2952_v38 = vunpack.c.h.s8.bf16 %v2912_v60 }
 0x8eb   : > { %v2834_v59 = vpop.xlane.xlu0 %2833 }
 0x8ec   : > { %v2836_v14 = vmul.f32 0.0026041667, %v2834_v59  ;;  %v2957_v59 = vunpack.c.l.s8.bf16 %v2915_v46 }
 0x8ee   : > { %v2837_v47 = vsub.f32 %v4959_v61, %v2836_v14  ;;  %v2838_v48 = vsub.f32 %v4961_v51, %v2836_v14  ;;  %v4985_v50 = vsub.f32 %v2823_v18, %v2836_v14  ;;  %v2907_v61 = vld [vmem:[%s4971_s30 + $0x50] sm:$0xff]  ;;  %v2950_v18 = vunpack.c.l.s8.bf16 %v2912_v60 }
 0x8ef   : > { %v2941_v51 = vunpack.c.l.s8.bf16 %v2907_v61  ;;  %v2943_v36 = vunpack.c.h.s8.bf16 %v2907_v61  ;;  %v2960_v14 = vunpack.c.h.s8.bf16 %v2916_v45  ;;  %v2887_v61 = vrot.slane %v3383_v6, %v4492_v4 }
 0x8f0   : > { %v2840_v53 = vmul.f32 %v2837_v47, %v2837_v47  ;;  %v2841_v55 = vmul.f32 %v2838_v48, %v2838_v48  ;;  %v2842_v57 = vmul.f32 %v4985_v50, %v4985_v50  ;;  %v3064_v60 = vrot.slane %v3384_v9, %v4483_v63 }
 0x8f1   : > { %2993 = vmatpush1.bf16.msra.mxu0 %v2941_v51  ;;  %v2965_v51 = vunpack.c.l.s8.bf16 %v2919_v10 }
 0x8f2   : > { %v2843_v5 = vsel %vm1655_vm0, %v2840_v53, 0.0  ;;  %v2844_v16 = vsel %vm1655_vm0, %v2841_v55, 0.0  ;;  %v2846_v3 = vsel %vm1655_vm0, %v2842_v57, 0.0  ;;  %2994 = vmatprep.subr.bf16.mxu0 %v2944_v21  ;;  %v2917_v55 = vld [vmem:[%s4971_s30 + $0xa0] sm:$0xff] }
 0x8f3   : > { %v2845_v58 = vadd.f32 %v2844_v16, %v2843_v5  ;;  %v2961_v57 = vunpack.c.l.s8.bf16 %v2917_v55  ;;  %v2868_v16 = vrot.slane %v3382_v33, %v4492_v4 }
 0x8f5   : > { %v2847_v56 = vadd.f32 %v2846_v3, %v2845_v58  ;;  %2995 = vmatpush1.bf16.msra.mxu0 %v2943_v36  ;;  %v2920_v58 = vld [vmem:[%s4971_s30 + $0xb8] sm:$0xff]  ;;  %v2963_v3 = vunpack.c.h.s8.bf16 %v2917_v55 }
 0x8f6   : > { %2996 = vmatprep.subr.bf16.mxu0 %v2946_v1  ;;  %v2968_v21 = vunpack.c.h.s8.bf16 %v2920_v58 }
 0x8f7   : > { %2848 = vadd.xlane.f32.xlu1 %v2847_v56  ;;  %v2966_v56 = vunpack.c.l.s8.bf16 %v2920_v58 }
 0x8f9   : > { %2997 = vmatpush1.bf16.msra.mxu0 %v2945_v11  ;;  %v3385_v11 = vld [vmem:[%s4261_s4 + $0x34] ss:$8 sm:$0x3] }
 0x8fa   : > { %2998 = vmatprep.subr.bf16.mxu0 %v2948_v12  ;;  %v3060_v12 = vrot.slane %v3384_v9, %v4480_v15  ;;  %v3075_v4 = vrot.slane %v3385_v11, %v4480_v15 }
 0x8fd   : > { %2999 = vmatpush1.bf16.msra.mxu0 %v2947_v25 }
 0x8fe   : > { %3000 = vmatprep.subr.bf16.mxu0 %v2950_v18  ;;  %v3079_v18 = vrot.slane %v3385_v11, %v4483_v63 }
 0x901   : > { %3001 = vmatpush1.bf16.msra.mxu0 %v2949_v0 }
 0x902   : > { %3002 = vmatprep.subr.bf16.mxu0 %v2952_v38 }
 0x905   : > { %3003 = vmatpush1.bf16.msra.mxu0 %v2951_v20 }
 0x906   : > { %3013 = vmatprep.subr.bf16.mxu0 %v2954_v22 }
 0x984   : > { %v2849_v39 = vpop.xlane.xlu1 %2848 }
 0x985   : > { %v2850_v40 = vmul.f32 0.0026041667, %v2849_v39 }
 0x987   : > { %v2851_v17 = vadd.f32 1e-05, %v2850_v40 }
 0x989   : > { %3615 = vrsqrt.f32 %v2851_v17 }
 0x993   : > { %v3616_v27 = vpop.eup %3615 }
 0x994   : > { %v2854_v2 = vmul.f32 %v3616_v27, %v2838_v48  ;;  %v2853_v26 = vmul.f32 %v3616_v27, %v2837_v47  ;;  %v2918_v47 = vld [vmem:[%s4971_s30 + $0xa8] sm:$0xff]  ;;  %v2959_v48 = vunpack.c.h.s8.bf16 %v2915_v46 }
 0x995   : > { %v2962_v53 = vunpack.c.l.s8.bf16 %v2918_v47  ;;  %v2964_v5 = vunpack.c.h.s8.bf16 %v2918_v47 }
 0x996   : > { %v2873_v32 = vmul.f32 %v2864_v23, %v2854_v2  ;;  %v2872_v62 = vmul.f32 %v2860_v24, %v2853_v26 }
 0x998   : > { %v2892_v37 = vadd.f32 %v2883_v28, %v2873_v32  ;;  %v2891_v35 = vadd.f32 %v2879_v29, %v2872_v62 }
 0x99a   : > { %v2895_v8 = vmax.f32 %v2892_v37, 0.0  ;;  %v2894_v42 = vmax.f32 %v2891_v35, 0.0 }
 0x99c   : > { %v2970_v44 = vpack.c.bf16 %v2895_v8, %v2895_v8  ;;  %v2969_v41 = vpack.c.bf16 %v2894_v42, %v2894_v42  ;;  %v3387_v8 = vld [vmem:[%s4261_s4 + $0x36] ss:$8 sm:$0x3]  ;;  %v3113_v42 = vrot.slane %v3386_v49, %v4480_v15 }
 0x99d   : > { %v3126_v45 = vrot.slane %v3387_v8, %v4480_v15 }
 0x99e   : > { %3004 = vmatprep.mubr.bf16.mxu0 %v2970_v44  ;;  %v3117_v44 = vrot.slane %v3386_v49, %v4483_v63 }
 0x99f   : > { %3005 = vmatmul.mubr.bf16.vlgmr.msra.gmra.mrb[12].mxu0 %v2969_v41 }
 0x9a0   : > { %3014 = vmatpush1.bf16.msra.mxu0 %v2953_v13  ;;  %3045 = vmatprep.mubr.bf16.mxu0 %v3901_v34  ;;  %v2855_v34 = vmul.f32 %v3616_v27, %v4985_v50  ;;  %v2967_v50 = vunpack.c.h.s8.bf16 %v2919_v10 }
 0x9a1   : > { %3015 = vmatprep.subr.bf16.mxu0 %v2956_v52 }
 0x9a2   : > { %v2874_v7 = vmul.f32 %v2868_v16, %v2855_v34 }
 0x9a4   : > { %3016 = vmatpush1.bf16.msra.mxu0 %v2955_v31  ;;  %v2893_v30 = vadd.f32 %v2887_v61, %v2874_v7  ;;  %v3130_v31 = vrot.slane %v3387_v8, %v4483_v63 }
 0x9a5   : > { %3017 = vmatprep.subr.bf16.mxu0 %v2958_v43  ;;  %v3388_v43 = vld [vmem:[%s4261_s4 + $0x60] ss:$8 sm:$0x3] }
 0x9a6   : > { %v2896_v36 = vmax.f32 %v2893_v30, 0.0 }
 0x9a8   : > { %3018 = vmatpush1.bf16.msra.mxu0 %v2957_v59  ;;  %v2971_v1 = vpack.c.bf16 %v2896_v36, %v2896_v36 }
 0x9a9   : > { %3019 = vmatprep.subr.bf16.mxu0 %v2960_v14 }
 0x9ac   : > { %3020 = vmatpush1.bf16.msra.mxu0 %v2959_v48  ;;  %v3143_v48 = vrot.slane %v3388_v43, %v4480_v15 }
 0x9ad   : > { %3021 = vmatprep.subr.bf16.mxu0 %v2962_v53  ;;  %v3147_v53 = vrot.slane %v3388_v43, %v4483_v63 }
 0x9b0   : > { %3022 = vmatpush1.bf16.msra.mxu0 %v2961_v57 }
 0x9b1   : > { %3023 = vmatprep.subr.bf16.mxu0 %v2964_v5 }
 0x9b4   : > { %3024 = vmatpush1.bf16.msra.mxu0 %v2963_v3 }
 0x9b5   : > { %3025 = vmatprep.subr.bf16.mxu0 %v2966_v56  ;;  %v3157_v56 = vld [vmem:[%s4261_s4 + $0x61] ss:$0 sm:$0xff] }
 0x9b8   : > { %3026 = vmatpush1.bf16.msra.mxu0 %v2965_v51 }
 0x9b9   : > { %3027 = vmatprep.subr.bf16.mxu0 %v2968_v21 }
 0x9bc   : > { %3028 = vmatpush1.bf16.msra.mxu0 %v2967_v50 }
 0x9bf   : > { %3046 = vmatmul.mubr.bf16.vlgmr.msra.gmra.mrb[12].mxu0 %v2971_v1 }
 0xa92   : > { %v3047_v25 = vpop.f32.mrb[12].mxu0 }
 0xa93   : > { %v3067_v19 = vmul.f32 %v3060_v12, %v3047_v25  ;;  %v3049_v0 = vpop.f32.mrb[13].mxu0 }
 0xa94   : > { %v3068_v38 = vmul.f32 %v3064_v60, %v3049_v0  ;;  %v3051_v20 = vpop.f32.mrb[14].mxu0 }
 0xa95   : > { %v3082_v54 = vadd.f32 %v3075_v4, %v3067_v19  ;;  %v3052_v22 = vpop.f32.mrb[15].mxu0 }
 0xa96   : > { %v3083_v39 = vadd.f32 %v3079_v18, %v3068_v38 }
 0xa97   : > { %v3088_v40 = vsel %vm1655_vm0, %v3082_v54, 0.0 }
 0xa98   : > { %v3089_v17 = vsel %vm1655_vm0, %v3083_v39, 0.0 }
 0xa99   : > { %v3090_v33 = vadd.f32 %v3089_v17, %v3088_v40 }
 0xa9b   : > { %3091 = vadd.xlane.f32.xlu0 %v3090_v33 }
 0xb28   : > { %v3092_v6 = vpop.xlane.xlu0 %3091 }
 0xb29   : > { %v3094_v23 = vmul.f32 0.00390625, %v3092_v6 }
 0xb2b   : > { %v3095_v24 = vsub.f32 %v3082_v54, %v3094_v23  ;;  %v3096_v27 = vsub.f32 %v3083_v39, %v3094_v23 }
 0xb2d   : > { %v3097_v2 = vmul.f32 %v3095_v24, %v3095_v24  ;;  %v3098_v28 = vmul.f32 %v3096_v27, %v3096_v27 }
 0xb2f   : > { %v3099_v26 = vsel %vm1655_vm0, %v3097_v2, 0.0  ;;  %v3100_v29 = vsel %vm1655_vm0, %v3098_v28, 0.0 }
 0xb30   : > { %v3101_v32 = vadd.f32 %v3100_v29, %v3099_v26 }
 0xb32   : > { %3102 = vadd.xlane.f32.xlu1 %v3101_v32 }
 0xbbf   : > { %v3103_v62 = vpop.xlane.xlu1 %3102 }
 0xbc0   : > { %v3104_v37 = vmul.f32 0.00390625, %v3103_v62 }
 0xbc2   : > { %v3105_v35 = vadd.f32 1e-05, %v3104_v37 }
 0xbc4   : > { %3617 = vrsqrt.f32 %v3105_v35 }
 0xbce   : > { %v3618_v41 = vpop.eup %3617 }
 0xbcf   : > { %v3107_v13 = vmul.f32 %v3618_v41, %v3095_v24  ;;  %v3108_v52 = vmul.f32 %v3618_v41, %v3096_v27 }
 0xbd1   : > { %v3120_v46 = vmul.f32 %v3113_v42, %v3107_v13  ;;  %v3121_v59 = vmul.f32 %v3117_v44, %v3108_v52 }
 0xbd3   : > { %v3133_v14 = vadd.f32 %v3126_v45, %v3120_v46  ;;  %v3134_v47 = vadd.f32 %v3130_v31, %v3121_v59 }
 0xbd5   : > { %v3135_v55 = vmax.f32 %v3133_v14, 0.0  ;;  %v3136_v57 = vmax.f32 %v3134_v47, 0.0 }
 0xbd7   : > { %v3150_v5 = vmul.f32 %v3143_v48, %v3135_v55  ;;  %v3151_v34 = vmul.f32 %v3147_v53, %v3136_v57 }
 0xbd9   : > { %v3152_v16 = vsel %vm1655_vm0, %v3150_v5, 0.0  ;;  %v3153_v58 = vsel %vm1655_vm0, %v3151_v34, 0.0 }
 0xbda   : > { %v3154_v3 = vadd.f32 %v3153_v58, %v3152_v16 }
 0xbdc   : > { %3155 = vadd.xlane.f32.xlu0 %v3154_v3 }
 0xc69   : > { %v3156_v15 = vpop.xlane.xlu0 %3155 }
 0xc6a   : > { %v3158_v63 = vadd.f32 %v3157_v56, %v3156_v15 }
 0xc6c   : > { %3160 = vst.msk [vmem:[%s502_s10] sm:$0x3] %vm3159_vm1, %v3158_v63 }
 0xc6d PF: > { %s19_s29 = sadd.s32 1, %s3883_s29   ;;  %s5112_s8 = sld [smem:[#allocation14_spill]] }
 0xc6e   : > { %p16_p5 = scmp.ge.s32.totalorder %s19_s29, 4   ;;  %s5113_s26 = sld [smem:[#allocation16_spill]] }
 0xc6f   : > { %s5114_s21 = sld [smem:[#allocation15_spill]]  ;;  %s5115_s24 = smov %s3867_s25 }
 0xc70   : > { %s5117_s27 = smov %s3879_s28  ;;  %18 = sbr.rel (!%p16_p5) target bundleno = 9 (0x9), region = 161 }
 0xc73   : > { %s5116_s25 = smov %s5112_s8 }
 0xc75   : > { %s5118_s28 = smov %s5114_s21 }
 0xc77   :  { %3186 = vsyncpa [#allocation3], 1 }
 0xc78   :  { %3188 = vsyncpa [#allocation3 + $0x1], 1 }
 0xc79   :  { %3189 = vsyncpa [#allocation5], 1 }

</bundles_post_ra>
